<compile_context>
chip_gen: v7x
topology: tpu7x:2x2x1
jax: 0.10.0
libtpu: 0.0.40
codegen_flags: <defaults>
</compile_context>

<pallas_src>
import functools

import jax
import jax.numpy as jnp
from jax.experimental import pallas as pl
from jax.experimental.pallas import tpu as pltpu


HID_PAD = 128   # padded hidden size: each gate = one full 128-lane segment


def _lstm_kernel(x_ref,      # (T*Bp, I)   time-major, batch-padded, flattened
                 wih0_ref,   # (I, 4*Hp)   layer-0 input weights (gate-padded)
                 b0_ref,     # (1, 4*Hp)   b_ih_l0 + b_hh_l0
                 whh0_ref,   # (Hp, 4*Hp)  layer-0 recurrent weights
                 wih1_ref,   # (Hp, 4*Hp)  layer-1 input weights
                 whh1_ref,   # (Hp, 4*Hp)  layer-1 recurrent weights
                 b1_ref,     # (1, 4*Hp)   b_ih_l1 + b_hh_l1
                 wfc_ref,    # (1, Hp)     fc weight row (output_size == 1)
                 bfc_ref,    # (1, 1)      fc bias
                 out_ref):   # (Bp, 1)
    Bp = out_ref.shape[0]
    Hp = whh0_ref.shape[0]
    T = x_ref.shape[0] // Bp
    I = x_ref.shape[1]

    def _sigmoid(v):
        # sigmoid(x) == 0.5 * (1 + tanh(0.5 x)): one EUP op instead of exp+recip.
        return 0.5 * jnp.tanh(0.5 * v) + 0.5

    def _gates_to_state(gates, c):
        # PyTorch gate order [i | f | g | o]; each gate is a 128-lane-aligned
        # static slice (zero-cost view thanks to Hp = 128 padding).
        i_g = _sigmoid(gates[:, 0 * Hp:1 * Hp])
        f_g = _sigmoid(gates[:, 1 * Hp:2 * Hp])
        g_g = jnp.tanh(gates[:, 2 * Hp:3 * Hp])
        o_g = _sigmoid(gates[:, 3 * Hp:4 * Hp])
        c_new = f_g * c + i_g * g_g
        h_new = o_g * jnp.tanh(c_new)
        return h_new, c_new

    zeros = jnp.zeros((Bp, Hp), jnp.float32)
    h0, c0, h1, c1 = zeros, zeros, zeros, zeros

    # T is static & small: fully unroll; layer-1(t) work overlaps layer-0(t+1)
    # and the Whh1 half of layer-1(t) overlaps layer-0(t).
    for t in range(T):
        # ---- off-critical-path pieces (no dependence on this step's h0) ----
        x_t = x_ref[t * Bp:(t + 1) * Bp, :]                      # (Bp, I)
        if I == 1:
            # K=1 projection as a VPU broadcast outer product (no MXU fill).
            xg_t = x_t * wih0_ref[...] + b0_ref[...]             # (Bp, 4Hp)
        else:
            xg_t = (jnp.dot(x_t, wih0_ref[...],
                            preferred_element_type=jnp.float32)
                    + b0_ref[...])
        # layer-1 recurrent half: depends only on h1(t-1), issues in parallel
        # with layer-0's recurrent matmul below.
        g1_hh = (jnp.dot(h1, whh1_ref[...],
                         preferred_element_type=jnp.float32)
                 + b1_ref[...])

        # ---- layer 0: recurrent matmul + precomputed input contribution ----
        g0 = (jnp.dot(h0, whh0_ref[...],
                      preferred_element_type=jnp.float32)
              + xg_t)
        h0, c0 = _gates_to_state(g0, c0)

        # ---- layer 1: only this K=Hp matmul sits behind h0_new ----
        g1 = g1_hh + jnp.dot(h0, wih1_ref[...],
                             preferred_element_type=jnp.float32)
        h1, c1 = _gates_to_state(g1, c1)

    # fc epilogue (output_size == 1): VPU mul + lane reduce, no final MXU pass.
    # Pad lanes of h1 and wfc are both zero, so they contribute nothing.
    out_ref[...] = (jnp.sum(h1 * wfc_ref[...], axis=-1, keepdims=True)
                    + bfc_ref[...])


def _round_up(n, m):
    return (n + m - 1) // m * m


@functools.partial(jax.jit, static_argnames=("out_size",))
def lstm_model_forward(x, params, *, out_size=1):
    """x: (B, T, I) float32, batch_first like the PyTorch module."""
    B, T, I = x.shape
    Bp = _round_up(B, 8)                      # f32 sublane multiple

    # Time-major, pad batch, flatten (T, Bp) -> rows so the kernel slices each
    # timestep at a static, sublane-aligned offset.
    x_tm = jnp.transpose(x, (1, 0, 2))                        # (T, B, I)
    x_tm = jnp.pad(x_tm, ((0, 0), (0, Bp - B), (0, 0)))       # (T, Bp, I)
    x2d = x_tm.reshape(T * Bp, I)

    vmem = pl.BlockSpec(memory_space=pltpu.MemorySpace.VMEM)
    out_p = pl.pallas_call(
        _lstm_kernel,
        out_shape=jax.ShapeDtypeStruct((Bp, 1), jnp.float32),
        in_specs=[vmem] * 9,
        out_specs=vmem,
    )(x2d,
      params["wih0_p"], params["b0_p"], params["whh0_p"],
      params["wih1_p"], params["whh1_p"], params["b1_p"],
      params["wfc_p"], params["bfc_p"])
    return out_p[:B, :out_size]


# ----------------------------- parameter prep -------------------------------

def init_raw_params(key, input_size=1, hidden_size=50, output_size=1):
    """PyTorch-layout weights, uniform(-1/sqrt(H), 1/sqrt(H)) init."""
    H, I, O = hidden_size, input_size, output_size
    k = 1.0 / jnp.sqrt(jnp.float32(H))
    keys = jax.random.split(key, 10)
    u = lambda kk, shape: jax.random.uniform(kk, shape, jnp.float32, -k, k)
    return {
        "w_ih_l0": u(keys[0], (4 * H, I)),
        "w_hh_l0": u(keys[1], (4 * H, H)),
        "b_ih_l0": u(keys[2], (4 * H,)),
        "b_hh_l0": u(keys[3], (4 * H,)),
        "w_ih_l1": u(keys[4], (4 * H, H)),
        "w_hh_l1": u(keys[5], (4 * H, H)),
        "b_ih_l1": u(keys[6], (4 * H,)),
        "b_hh_l1": u(keys[7], (4 * H,)),
        "w_fc":    u(keys[8], (O, H)),
        "b_fc":    u(keys[9], (O,)),
    }


def _pad_gate_cols(w, H, Hp):
    """(rows, 4H) -> (rows, 4Hp); gate g's H cols placed at [g*Hp, g*Hp + H)."""
    rows = w.shape[0]
    out = jnp.zeros((rows, 4 * Hp), w.dtype)
    for g in range(4):
        out = out.at[:, g * Hp:g * Hp + H].set(w[:, g * H:(g + 1) * H])
    return out


def _pad_rows(w, rows_p):
    return jnp.pad(w, ((0, rows_p - w.shape[0]), (0, 0)))


def pack_params(raw, hidden_size=50, output_size=1, Hp=HID_PAD):
    """Transpose to (in, out) layouts, fuse biases, lane-pad gates/hidden."""
    assert output_size == 1, "fc epilogue is specialized for output_size == 1"
    H = hidden_size
    wih0 = _pad_gate_cols(raw["w_ih_l0"].T, H, Hp)                   # (I, 4Hp)
    whh0 = _pad_rows(_pad_gate_cols(raw["w_hh_l0"].T, H, Hp), Hp)    # (Hp, 4Hp)
    b0 = _pad_gate_cols((raw["b_ih_l0"] + raw["b_hh_l0"])[None, :], H, Hp)
    wih1 = _pad_rows(_pad_gate_cols(raw["w_ih_l1"].T, H, Hp), Hp)    # (Hp, 4Hp)
    whh1 = _pad_rows(_pad_gate_cols(raw["w_hh_l1"].T, H, Hp), Hp)    # (Hp, 4Hp)
    b1 = _pad_gate_cols((raw["b_ih_l1"] + raw["b_hh_l1"])[None, :], H, Hp)
    wfc = jnp.zeros((1, Hp), jnp.float32).at[0, :H].set(raw["w_fc"][0])
    bfc = raw["b_fc"].reshape(1, 1).astype(jnp.float32)
    return {
        "wih0_p": wih0, "whh0_p": whh0, "b0_p": b0,
        "wih1_p": wih1, "whh1_p": whh1, "b1_p": b1,
        "wfc_p": wfc, "bfc_p": bfc,
    }


# ------------------------------- reference ----------------------------------

def reference_forward(x, raw, hidden_size=50):
    """Pure-JAX replica of the PyTorch forward (unpadded, standard sigmoid)."""
    B, T, _ = x.shape
    H = hidden_size

    def cell(x_t, h, c, w_ih, w_hh, b_ih, b_hh):
        gates = x_t @ w_ih.T + h @ w_hh.T + b_ih + b_hh
        i = jax.nn.sigmoid(gates[:, 0 * H:1 * H])
        f = jax.nn.sigmoid(gates[:, 1 * H:2 * H])
        g = jnp.tanh(gates[:, 2 * H:3 * H])
        o = jax.nn.sigmoid(gates[:, 3 * H:4 * H])
        c_new = f * c + i * g
        return o * jnp.tanh(c_new), c_new

    h0 = jnp.zeros((B, H), jnp.float32); c0 = jnp.zeros((B, H), jnp.float32)
    h1 = jnp.zeros((B, H), jnp.float32); c1 = jnp.zeros((B, H), jnp.float32)
    for t in range(T):
        h0, c0 = cell(x[:, t, :], h0, c0, raw["w_ih_l0"], raw["w_hh_l0"],
                      raw["b_ih_l0"], raw["b_hh_l0"])
        h1, c1 = cell(h0, h1, c1, raw["w_ih_l1"], raw["w_hh_l1"],
                      raw["b_ih_l1"], raw["b_hh_l1"])
    return h1 @ raw["w_fc"].T + raw["b_fc"][None, :]


if __name__ == "__main__":
    B, T, I, H, O = 4, 8, 1, 50, 1   # module defaults: input=1, hidden=50, out=1

    key = jax.random.PRNGKey(0)
    kx, kp = jax.random.split(key)
    x = jax.random.normal(kx, (B, T, I), dtype=jnp.float32)

    raw = init_raw_params(kp, input_size=I, hidden_size=H, output_size=O)
    params = pack_params(raw, hidden_size=H, output_size=O)

    out = lstm_model_forward(x, params, out_size=O)
    out = jax.block_until_ready(out)

    ref = reference_forward(x, raw, hidden_size=H)
    assert out.shape == (B, O), out.shape
    assert jnp.allclose(out, ref, atol=1e-4, rtol=1e-4), (out, ref)

    print("KERNEL_OK")
</pallas_src>

<mosaic_0001>
module attributes {stable_mosaic.version = 11 : i64} {
  func.func @_lstm_kernel(%arg0: memref<64x1xf32, #tpu.memory_space<vmem>>, %arg1: memref<1x512xf32, #tpu.memory_space<vmem>>, %arg2: memref<1x512xf32, #tpu.memory_space<vmem>>, %arg3: memref<128x512xf32, #tpu.memory_space<vmem>>, %arg4: memref<128x512xf32, #tpu.memory_space<vmem>>, %arg5: memref<128x512xf32, #tpu.memory_space<vmem>>, %arg6: memref<1x512xf32, #tpu.memory_space<vmem>>, %arg7: memref<1x128xf32, #tpu.memory_space<vmem>>, %arg8: memref<1x1xf32, #tpu.memory_space<vmem>>, %arg9: memref<8x1xf32, #tpu.memory_space<vmem>>) attributes {dimension_semantics = [], scalar_prefetch = 0 : i64, scratch_operands = 0 : i64, tpu.core_type = #tpu.core_type<tc>} {
    %cst = arith.constant 0.000000e+00 : f32
    %0 = vector.broadcast %cst : f32 to vector<8x128xf32>
    %c0 = arith.constant 0 : index
    %c0_0 = arith.constant 0 : index
    %1 = vector.load %arg0[%c0, %c0_0] : memref<64x1xf32, #tpu.memory_space<vmem>>, vector<8x1xf32>
    %c0_1 = arith.constant 0 : index
    %c0_2 = arith.constant 0 : index
    %2 = vector.load %arg1[%c0_1, %c0_2] : memref<1x512xf32, #tpu.memory_space<vmem>>, vector<1x512xf32>
    %3 = vector.broadcast %1 : vector<8x1xf32> to vector<8x512xf32>
    %4 = vector.broadcast %2 : vector<1x512xf32> to vector<8x512xf32>
    %5 = arith.mulf %3, %4 : vector<8x512xf32>
    %c0_3 = arith.constant 0 : index
    %c0_4 = arith.constant 0 : index
    %6 = vector.load %arg2[%c0_3, %c0_4] : memref<1x512xf32, #tpu.memory_space<vmem>>, vector<1x512xf32>
    %7 = vector.broadcast %6 : vector<1x512xf32> to vector<8x512xf32>
    %8 = arith.addf %5, %7 : vector<8x512xf32>
    %c0_5 = arith.constant 0 : index
    %c0_6 = arith.constant 0 : index
    %9 = vector.load %arg5[%c0_5, %c0_6] : memref<128x512xf32, #tpu.memory_space<vmem>>, vector<128x512xf32>
    %cst_7 = arith.constant dense<0.000000e+00> : vector<8x512xf32>
    %10 = tpu.matmul %0, %9, %cst_7 {dimension_numbers = #tpu.dot_dimension_numbers<[1], [0], [0], [1], [0, 0, 1, 1], [], []>} : vector<8x128xf32>, vector<128x512xf32>, vector<8x512xf32> -> vector<8x512xf32>
    %c0_8 = arith.constant 0 : index
    %c0_9 = arith.constant 0 : index
    %11 = vector.load %arg6[%c0_8, %c0_9] : memref<1x512xf32, #tpu.memory_space<vmem>>, vector<1x512xf32>
    %12 = vector.broadcast %11 : vector<1x512xf32> to vector<8x512xf32>
    %13 = arith.addf %10, %12 : vector<8x512xf32>
    %c0_10 = arith.constant 0 : index
    %c0_11 = arith.constant 0 : index
    %14 = vector.load %arg3[%c0_10, %c0_11] : memref<128x512xf32, #tpu.memory_space<vmem>>, vector<128x512xf32>
    %cst_12 = arith.constant dense<0.000000e+00> : vector<8x512xf32>
    %15 = tpu.matmul %0, %14, %cst_12 {dimension_numbers = #tpu.dot_dimension_numbers<[1], [0], [0], [1], [0, 0, 1, 1], [], []>} : vector<8x128xf32>, vector<128x512xf32>, vector<8x512xf32> -> vector<8x512xf32>
    %16 = arith.addf %15, %8 : vector<8x512xf32>
    %17 = vector.extract_strided_slice %16 {offsets = [0, 0], sizes = [8, 128], strides = [1, 1]} : vector<8x512xf32> to vector<8x128xf32>
    %cst_13 = arith.constant 5.000000e-01 : f32
    %18 = vector.broadcast %cst_13 : f32 to vector<8x128xf32>
    %19 = arith.mulf %18, %17 : vector<8x128xf32>
    %20 = math.tanh %19 : vector<8x128xf32>
    %cst_14 = arith.constant 5.000000e-01 : f32
    %21 = vector.broadcast %cst_14 : f32 to vector<8x128xf32>
    %22 = arith.mulf %21, %20 : vector<8x128xf32>
    %cst_15 = arith.constant 5.000000e-01 : f32
    %23 = vector.broadcast %cst_15 : f32 to vector<8x128xf32>
    %24 = arith.addf %22, %23 : vector<8x128xf32>
    %25 = vector.extract_strided_slice %16 {offsets = [0, 128], sizes = [8, 128], strides = [1, 1]} : vector<8x512xf32> to vector<8x128xf32>
    %cst_16 = arith.constant 5.000000e-01 : f32
    %26 = vector.broadcast %cst_16 : f32 to vector<8x128xf32>
    %27 = arith.mulf %26, %25 : vector<8x128xf32>
    %28 = math.tanh %27 : vector<8x128xf32>
    %cst_17 = arith.constant 5.000000e-01 : f32
    %29 = vector.broadcast %cst_17 : f32 to vector<8x128xf32>
    %30 = arith.mulf %29, %28 : vector<8x128xf32>
    %cst_18 = arith.constant 5.000000e-01 : f32
    %31 = vector.broadcast %cst_18 : f32 to vector<8x128xf32>
    %32 = arith.addf %30, %31 : vector<8x128xf32>
    %33 = vector.extract_strided_slice %16 {offsets = [0, 256], sizes = [8, 128], strides = [1, 1]} : vector<8x512xf32> to vector<8x128xf32>
    %34 = math.tanh %33 : vector<8x128xf32>
    %35 = vector.extract_strided_slice %16 {offsets = [0, 384], sizes = [8, 128], strides = [1, 1]} : vector<8x512xf32> to vector<8x128xf32>
    %cst_19 = arith.constant 5.000000e-01 : f32
    %36 = vector.broadcast %cst_19 : f32 to vector<8x128xf32>
    %37 = arith.mulf %36, %35 : vector<8x128xf32>
    %38 = math.tanh %37 : vector<8x128xf32>
    %cst_20 = arith.constant 5.000000e-01 : f32
    %39 = vector.broadcast %cst_20 : f32 to vector<8x128xf32>
    %40 = arith.mulf %39, %38 : vector<8x128xf32>
    %cst_21 = arith.constant 5.000000e-01 : f32
    %41 = vector.broadcast %cst_21 : f32 to vector<8x128xf32>
    %42 = arith.addf %40, %41 : vector<8x128xf32>
    %43 = arith.mulf %32, %0 : vector<8x128xf32>
    %44 = arith.mulf %24, %34 : vector<8x128xf32>
    %45 = arith.addf %43, %44 : vector<8x128xf32>
    %46 = math.tanh %45 : vector<8x128xf32>
    %47 = arith.mulf %42, %46 : vector<8x128xf32>
    %c0_22 = arith.constant 0 : index
    %c0_23 = arith.constant 0 : index
    %48 = vector.load %arg4[%c0_22, %c0_23] : memref<128x512xf32, #tpu.memory_space<vmem>>, vector<128x512xf32>
    %cst_24 = arith.constant dense<0.000000e+00> : vector<8x512xf32>
    %49 = tpu.matmul %47, %48, %cst_24 {dimension_numbers = #tpu.dot_dimension_numbers<[1], [0], [0], [1], [0, 0, 1, 1], [], []>} : vector<8x128xf32>, vector<128x512xf32>, vector<8x512xf32> -> vector<8x512xf32>
    %50 = arith.addf %13, %49 : vector<8x512xf32>
    %51 = vector.extract_strided_slice %50 {offsets = [0, 0], sizes = [8, 128], strides = [1, 1]} : vector<8x512xf32> to vector<8x128xf32>
    %cst_25 = arith.constant 5.000000e-01 : f32
    %52 = vector.broadcast %cst_25 : f32 to vector<8x128xf32>
    %53 = arith.mulf %52, %51 : vector<8x128xf32>
    %54 = math.tanh %53 : vector<8x128xf32>
    %cst_26 = arith.constant 5.000000e-01 : f32
    %55 = vector.broadcast %cst_26 : f32 to vector<8x128xf32>
    %56 = arith.mulf %55, %54 : vector<8x128xf32>
    %cst_27 = arith.constant 5.000000e-01 : f32
    %57 = vector.broadcast %cst_27 : f32 to vector<8x128xf32>
    %58 = arith.addf %56, %57 : vector<8x128xf32>
    %59 = vector.extract_strided_slice %50 {offsets = [0, 128], sizes = [8, 128], strides = [1, 1]} : vector<8x512xf32> to vector<8x128xf32>
    %cst_28 = arith.constant 5.000000e-01 : f32
    %60 = vector.broadcast %cst_28 : f32 to vector<8x128xf32>
    %61 = arith.mulf %60, %59 : vector<8x128xf32>
    %62 = math.tanh %61 : vector<8x128xf32>
    %cst_29 = arith.constant 5.000000e-01 : f32
    %63 = vector.broadcast %cst_29 : f32 to vector<8x128xf32>
    %64 = arith.mulf %63, %62 : vector<8x128xf32>
    %cst_30 = arith.constant 5.000000e-01 : f32
    %65 = vector.broadcast %cst_30 : f32 to vector<8x128xf32>
    %66 = arith.addf %64, %65 : vector<8x128xf32>
    %67 = vector.extract_strided_slice %50 {offsets = [0, 256], sizes = [8, 128], strides = [1, 1]} : vector<8x512xf32> to vector<8x128xf32>
    %68 = math.tanh %67 : vector<8x128xf32>
    %69 = vector.extract_strided_slice %50 {offsets = [0, 384], sizes = [8, 128], strides = [1, 1]} : vector<8x512xf32> to vector<8x128xf32>
    %cst_31 = arith.constant 5.000000e-01 : f32
    %70 = vector.broadcast %cst_31 : f32 to vector<8x128xf32>
    %71 = arith.mulf %70, %69 : vector<8x128xf32>
    %72 = math.tanh %71 : vector<8x128xf32>
    %cst_32 = arith.constant 5.000000e-01 : f32
    %73 = vector.broadcast %cst_32 : f32 to vector<8x128xf32>
    %74 = arith.mulf %73, %72 : vector<8x128xf32>
    %cst_33 = arith.constant 5.000000e-01 : f32
    %75 = vector.broadcast %cst_33 : f32 to vector<8x128xf32>
    %76 = arith.addf %74, %75 : vector<8x128xf32>
    %77 = arith.mulf %66, %0 : vector<8x128xf32>
    %78 = arith.mulf %58, %68 : vector<8x128xf32>
    %79 = arith.addf %77, %78 : vector<8x128xf32>
    %80 = math.tanh %79 : vector<8x128xf32>
    %81 = arith.mulf %76, %80 : vector<8x128xf32>
    %c8 = arith.constant 8 : index
    %c0_34 = arith.constant 0 : index
    %82 = vector.load %arg0[%c8, %c0_34] : memref<64x1xf32, #tpu.memory_space<vmem>>, vector<8x1xf32>
    %c0_35 = arith.constant 0 : index
    %c0_36 = arith.constant 0 : index
    %83 = vector.load %arg1[%c0_35, %c0_36] : memref<1x512xf32, #tpu.memory_space<vmem>>, vector<1x512xf32>
    %84 = vector.broadcast %82 : vector<8x1xf32> to vector<8x512xf32>
    %85 = vector.broadcast %83 : vector<1x512xf32> to vector<8x512xf32>
    %86 = arith.mulf %84, %85 : vector<8x512xf32>
    %c0_37 = arith.constant 0 : index
    %c0_38 = arith.constant 0 : index
    %87 = vector.load %arg2[%c0_37, %c0_38] : memref<1x512xf32, #tpu.memory_space<vmem>>, vector<1x512xf32>
    %88 = vector.broadcast %87 : vector<1x512xf32> to vector<8x512xf32>
    %89 = arith.addf %86, %88 : vector<8x512xf32>
    %c0_39 = arith.constant 0 : index
    %c0_40 = arith.constant 0 : index
    %90 = vector.load %arg5[%c0_39, %c0_40] : memref<128x512xf32, #tpu.memory_space<vmem>>, vector<128x512xf32>
    %cst_41 = arith.constant dense<0.000000e+00> : vector<8x512xf32>
    %91 = tpu.matmul %81, %90, %cst_41 {dimension_numbers = #tpu.dot_dimension_numbers<[1], [0], [0], [1], [0, 0, 1, 1], [], []>} : vector<8x128xf32>, vector<128x512xf32>, vector<8x512xf32> -> vector<8x512xf32>
    %c0_42 = arith.constant 0 : index
    %c0_43 = arith.constant 0 : index
    %92 = vector.load %arg6[%c0_42, %c0_43] : memref<1x512xf32, #tpu.memory_space<vmem>>, vector<1x512xf32>
    %93 = vector.broadcast %92 : vector<1x512xf32> to vector<8x512xf32>
    %94 = arith.addf %91, %93 : vector<8x512xf32>
    %c0_44 = arith.constant 0 : index
    %c0_45 = arith.constant 0 : index
    %95 = vector.load %arg3[%c0_44, %c0_45] : memref<128x512xf32, #tpu.memory_space<vmem>>, vector<128x512xf32>
    %cst_46 = arith.constant dense<0.000000e+00> : vector<8x512xf32>
    %96 = tpu.matmul %47, %95, %cst_46 {dimension_numbers = #tpu.dot_dimension_numbers<[1], [0], [0], [1], [0, 0, 1, 1], [], []>} : vector<8x128xf32>, vector<128x512xf32>, vector<8x512xf32> -> vector<8x512xf32>
    %97 = arith.addf %96, %89 : vector<8x512xf32>
    %98 = vector.extract_strided_slice %97 {offsets = [0, 0], sizes = [8, 128], strides = [1, 1]} : vector<8x512xf32> to vector<8x128xf32>
    %cst_47 = arith.constant 5.000000e-01 : f32
    %99 = vector.broadcast %cst_47 : f32 to vector<8x128xf32>
    %100 = arith.mulf %99, %98 : vector<8x128xf32>
    %101 = math.tanh %100 : vector<8x128xf32>
    %cst_48 = arith.constant 5.000000e-01 : f32
    %102 = vector.broadcast %cst_48 : f32 to vector<8x128xf32>
    %103 = arith.mulf %102, %101 : vector<8x128xf32>
    %cst_49 = arith.constant 5.000000e-01 : f32
    %104 = vector.broadcast %cst_49 : f32 to vector<8x128xf32>
    %105 = arith.addf %103, %104 : vector<8x128xf32>
    %106 = vector.extract_strided_slice %97 {offsets = [0, 128], sizes = [8, 128], strides = [1, 1]} : vector<8x512xf32> to vector<8x128xf32>
    %cst_50 = arith.constant 5.000000e-01 : f32
    %107 = vector.broadcast %cst_50 : f32 to vector<8x128xf32>
    %108 = arith.mulf %107, %106 : vector<8x128xf32>
    %109 = math.tanh %108 : vector<8x128xf32>
    %cst_51 = arith.constant 5.000000e-01 : f32
    %110 = vector.broadcast %cst_51 : f32 to vector<8x128xf32>
    %111 = arith.mulf %110, %109 : vector<8x128xf32>
    %cst_52 = arith.constant 5.000000e-01 : f32
    %112 = vector.broadcast %cst_52 : f32 to vector<8x128xf32>
    %113 = arith.addf %111, %112 : vector<8x128xf32>
    %114 = vector.extract_strided_slice %97 {offsets = [0, 256], sizes = [8, 128], strides = [1, 1]} : vector<8x512xf32> to vector<8x128xf32>
    %115 = math.tanh %114 : vector<8x128xf32>
    %116 = vector.extract_strided_slice %97 {offsets = [0, 384], sizes = [8, 128], strides = [1, 1]} : vector<8x512xf32> to vector<8x128xf32>
    %cst_53 = arith.constant 5.000000e-01 : f32
    %117 = vector.broadcast %cst_53 : f32 to vector<8x128xf32>
    %118 = arith.mulf %117, %116 : vector<8x128xf32>
    %119 = math.tanh %118 : vector<8x128xf32>
    %cst_54 = arith.constant 5.000000e-01 : f32
    %120 = vector.broadcast %cst_54 : f32 to vector<8x128xf32>
    %121 = arith.mulf %120, %119 : vector<8x128xf32>
    %cst_55 = arith.constant 5.000000e-01 : f32
    %122 = vector.broadcast %cst_55 : f32 to vector<8x128xf32>
    %123 = arith.addf %121, %122 : vector<8x128xf32>
    %124 = arith.mulf %113, %45 : vector<8x128xf32>
    %125 = arith.mulf %105, %115 : vector<8x128xf32>
    %126 = arith.addf %124, %125 : vector<8x128xf32>
    %127 = math.tanh %126 : vector<8x128xf32>
    %128 = arith.mulf %123, %127 : vector<8x128xf32>
    %c0_56 = arith.constant 0 : index
    %c0_57 = arith.constant 0 : index
    %129 = vector.load %arg4[%c0_56, %c0_57] : memref<128x512xf32, #tpu.memory_space<vmem>>, vector<128x512xf32>
    %cst_58 = arith.constant dense<0.000000e+00> : vector<8x512xf32>
    %130 = tpu.matmul %128, %129, %cst_58 {dimension_numbers = #tpu.dot_dimension_numbers<[1], [0], [0], [1], [0, 0, 1, 1], [], []>} : vector<8x128xf32>, vector<128x512xf32>, vector<8x512xf32> -> vector<8x512xf32>
    %131 = arith.addf %94, %130 : vector<8x512xf32>
    %132 = vector.extract_strided_slice %131 {offsets = [0, 0], sizes = [8, 128], strides = [1, 1]} : vector<8x512xf32> to vector<8x128xf32>
    %cst_59 = arith.constant 5.000000e-01 : f32
    %133 = vector.broadcast %cst_59 : f32 to vector<8x128xf32>
    %134 = arith.mulf %133, %132 : vector<8x128xf32>
    %135 = math.tanh %134 : vector<8x128xf32>
    %cst_60 = arith.constant 5.000000e-01 : f32
    %136 = vector.broadcast %cst_60 : f32 to vector<8x128xf32>
    %137 = arith.mulf %136, %135 : vector<8x128xf32>
    %cst_61 = arith.constant 5.000000e-01 : f32
    %138 = vector.broadcast %cst_61 : f32 to vector<8x128xf32>
    %139 = arith.addf %137, %138 : vector<8x128xf32>
    %140 = vector.extract_strided_slice %131 {offsets = [0, 128], sizes = [8, 128], strides = [1, 1]} : vector<8x512xf32> to vector<8x128xf32>
    %cst_62 = arith.constant 5.000000e-01 : f32
    %141 = vector.broadcast %cst_62 : f32 to vector<8x128xf32>
    %142 = arith.mulf %141, %140 : vector<8x128xf32>
    %143 = math.tanh %142 : vector<8x128xf32>
    %cst_63 = arith.constant 5.000000e-01 : f32
    %144 = vector.broadcast %cst_63 : f32 to vector<8x128xf32>
    %145 = arith.mulf %144, %143 : vector<8x128xf32>
    %cst_64 = arith.constant 5.000000e-01 : f32
    %146 = vector.broadcast %cst_64 : f32 to vector<8x128xf32>
    %147 = arith.addf %145, %146 : vector<8x128xf32>
    %148 = vector.extract_strided_slice %131 {offsets = [0, 256], sizes = [8, 128], strides = [1, 1]} : vector<8x512xf32> to vector<8x128xf32>
    %149 = math.tanh %148 : vector<8x128xf32>
    %150 = vector.extract_strided_slice %131 {offsets = [0, 384], sizes = [8, 128], strides = [1, 1]} : vector<8x512xf32> to vector<8x128xf32>
    %cst_65 = arith.constant 5.000000e-01 : f32
    %151 = vector.broadcast %cst_65 : f32 to vector<8x128xf32>
    %152 = arith.mulf %151, %150 : vector<8x128xf32>
    %153 = math.tanh %152 : vector<8x128xf32>
    %cst_66 = arith.constant 5.000000e-01 : f32
    %154 = vector.broadcast %cst_66 : f32 to vector<8x128xf32>
    %155 = arith.mulf %154, %153 : vector<8x128xf32>
    %cst_67 = arith.constant 5.000000e-01 : f32
    %156 = vector.broadcast %cst_67 : f32 to vector<8x128xf32>
    %157 = arith.addf %155, %156 : vector<8x128xf32>
    %158 = arith.mulf %147, %79 : vector<8x128xf32>
    %159 = arith.mulf %139, %149 : vector<8x128xf32>
    %160 = arith.addf %158, %159 : vector<8x128xf32>
    %161 = math.tanh %160 : vector<8x128xf32>
    %162 = arith.mulf %157, %161 : vector<8x128xf32>
    %c16 = arith.constant 16 : index
    %c0_68 = arith.constant 0 : index
    %163 = vector.load %arg0[%c16, %c0_68] : memref<64x1xf32, #tpu.memory_space<vmem>>, vector<8x1xf32>
    %c0_69 = arith.constant 0 : index
    %c0_70 = arith.constant 0 : index
    %164 = vector.load %arg1[%c0_69, %c0_70] : memref<1x512xf32, #tpu.memory_space<vmem>>, vector<1x512xf32>
    %165 = vector.broadcast %163 : vector<8x1xf32> to vector<8x512xf32>
    %166 = vector.broadcast %164 : vector<1x512xf32> to vector<8x512xf32>
    %167 = arith.mulf %165, %166 : vector<8x512xf32>
    %c0_71 = arith.constant 0 : index
    %c0_72 = arith.constant 0 : index
    %168 = vector.load %arg2[%c0_71, %c0_72] : memref<1x512xf32, #tpu.memory_space<vmem>>, vector<1x512xf32>
    %169 = vector.broadcast %168 : vector<1x512xf32> to vector<8x512xf32>
    %170 = arith.addf %167, %169 : vector<8x512xf32>
    %c0_73 = arith.constant 0 : index
    %c0_74 = arith.constant 0 : index
    %171 = vector.load %arg5[%c0_73, %c0_74] : memref<128x512xf32, #tpu.memory_space<vmem>>, vector<128x512xf32>
    %cst_75 = arith.constant dense<0.000000e+00> : vector<8x512xf32>
    %172 = tpu.matmul %162, %171, %cst_75 {dimension_numbers = #tpu.dot_dimension_numbers<[1], [0], [0], [1], [0, 0, 1, 1], [], []>} : vector<8x128xf32>, vector<128x512xf32>, vector<8x512xf32> -> vector<8x512xf32>
    %c0_76 = arith.constant 0 : index
    %c0_77 = arith.constant 0 : index
    %173 = vector.load %arg6[%c0_76, %c0_77] : memref<1x512xf32, #tpu.memory_space<vmem>>, vector<1x512xf32>
    %174 = vector.broadcast %173 : vector<1x512xf32> to vector<8x512xf32>
    %175 = arith.addf %172, %174 : vector<8x512xf32>
    %c0_78 = arith.constant 0 : index
    %c0_79 = arith.constant 0 : index
    %176 = vector.load %arg3[%c0_78, %c0_79] : memref<128x512xf32, #tpu.memory_space<vmem>>, vector<128x512xf32>
    %cst_80 = arith.constant dense<0.000000e+00> : vector<8x512xf32>
    %177 = tpu.matmul %128, %176, %cst_80 {dimension_numbers = #tpu.dot_dimension_numbers<[1], [0], [0], [1], [0, 0, 1, 1], [], []>} : vector<8x128xf32>, vector<128x512xf32>, vector<8x512xf32> -> vector<8x512xf32>
    %178 = arith.addf %177, %170 : vector<8x512xf32>
    %179 = vector.extract_strided_slice %178 {offsets = [0, 0], sizes = [8, 128], strides = [1, 1]} : vector<8x512xf32> to vector<8x128xf32>
    %cst_81 = arith.constant 5.000000e-01 : f32
    %180 = vector.broadcast %cst_81 : f32 to vector<8x128xf32>
    %181 = arith.mulf %180, %179 : vector<8x128xf32>
    %182 = math.tanh %181 : vector<8x128xf32>
    %cst_82 = arith.constant 5.000000e-01 : f32
    %183 = vector.broadcast %cst_82 : f32 to vector<8x128xf32>
    %184 = arith.mulf %183, %182 : vector<8x128xf32>
    %cst_83 = arith.constant 5.000000e-01 : f32
    %185 = vector.broadcast %cst_83 : f32 to vector<8x128xf32>
    %186 = arith.addf %184, %185 : vector<8x128xf32>
    %187 = vector.extract_strided_slice %178 {offsets = [0, 128], sizes = [8, 128], strides = [1, 1]} : vector<8x512xf32> to vector<8x128xf32>
    %cst_84 = arith.constant 5.000000e-01 : f32
    %188 = vector.broadcast %cst_84 : f32 to vector<8x128xf32>
    %189 = arith.mulf %188, %187 : vector<8x128xf32>
    %190 = math.tanh %189 : vector<8x128xf32>
    %cst_85 = arith.constant 5.000000e-01 : f32
    %191 = vector.broadcast %cst_85 : f32 to vector<8x128xf32>
    %192 = arith.mulf %191, %190 : vector<8x128xf32>
    %cst_86 = arith.constant 5.000000e-01 : f32
    %193 = vector.broadcast %cst_86 : f32 to vector<8x128xf32>
    %194 = arith.addf %192, %193 : vector<8x128xf32>
    %195 = vector.extract_strided_slice %178 {offsets = [0, 256], sizes = [8, 128], strides = [1, 1]} : vector<8x512xf32> to vector<8x128xf32>
    %196 = math.tanh %195 : vector<8x128xf32>
    %197 = vector.extract_strided_slice %178 {offsets = [0, 384], sizes = [8, 128], strides = [1, 1]} : vector<8x512xf32> to vector<8x128xf32>
    %cst_87 = arith.constant 5.000000e-01 : f32
    %198 = vector.broadcast %cst_87 : f32 to vector<8x128xf32>
    %199 = arith.mulf %198, %197 : vector<8x128xf32>
    %200 = math.tanh %199 : vector<8x128xf32>
    %cst_88 = arith.constant 5.000000e-01 : f32
    %201 = vector.broadcast %cst_88 : f32 to vector<8x128xf32>
    %202 = arith.mulf %201, %200 : vector<8x128xf32>
    %cst_89 = arith.constant 5.000000e-01 : f32
    %203 = vector.broadcast %cst_89 : f32 to vector<8x128xf32>
    %204 = arith.addf %202, %203 : vector<8x128xf32>
    %205 = arith.mulf %194, %126 : vector<8x128xf32>
    %206 = arith.mulf %186, %196 : vector<8x128xf32>
    %207 = arith.addf %205, %206 : vector<8x128xf32>
    %208 = math.tanh %207 : vector<8x128xf32>
    %209 = arith.mulf %204, %208 : vector<8x128xf32>
    %c0_90 = arith.constant 0 : index
    %c0_91 = arith.constant 0 : index
    %210 = vector.load %arg4[%c0_90, %c0_91] : memref<128x512xf32, #tpu.memory_space<vmem>>, vector<128x512xf32>
    %cst_92 = arith.constant dense<0.000000e+00> : vector<8x512xf32>
    %211 = tpu.matmul %209, %210, %cst_92 {dimension_numbers = #tpu.dot_dimension_numbers<[1], [0], [0], [1], [0, 0, 1, 1], [], []>} : vector<8x128xf32>, vector<128x512xf32>, vector<8x512xf32> -> vector<8x512xf32>
    %212 = arith.addf %175, %211 : vector<8x512xf32>
    %213 = vector.extract_strided_slice %212 {offsets = [0, 0], sizes = [8, 128], strides = [1, 1]} : vector<8x512xf32> to vector<8x128xf32>
    %cst_93 = arith.constant 5.000000e-01 : f32
    %214 = vector.broadcast %cst_93 : f32 to vector<8x128xf32>
    %215 = arith.mulf %214, %213 : vector<8x128xf32>
    %216 = math.tanh %215 : vector<8x128xf32>
    %cst_94 = arith.constant 5.000000e-01 : f32
    %217 = vector.broadcast %cst_94 : f32 to vector<8x128xf32>
    %218 = arith.mulf %217, %216 : vector<8x128xf32>
    %cst_95 = arith.constant 5.000000e-01 : f32
    %219 = vector.broadcast %cst_95 : f32 to vector<8x128xf32>
    %220 = arith.addf %218, %219 : vector<8x128xf32>
    %221 = vector.extract_strided_slice %212 {offsets = [0, 128], sizes = [8, 128], strides = [1, 1]} : vector<8x512xf32> to vector<8x128xf32>
    %cst_96 = arith.constant 5.000000e-01 : f32
    %222 = vector.broadcast %cst_96 : f32 to vector<8x128xf32>
    %223 = arith.mulf %222, %221 : vector<8x128xf32>
    %224 = math.tanh %223 : vector<8x128xf32>
    %cst_97 = arith.constant 5.000000e-01 : f32
    %225 = vector.broadcast %cst_97 : f32 to vector<8x128xf32>
    %226 = arith.mulf %225, %224 : vector<8x128xf32>
    %cst_98 = arith.constant 5.000000e-01 : f32
    %227 = vector.broadcast %cst_98 : f32 to vector<8x128xf32>
    %228 = arith.addf %226, %227 : vector<8x128xf32>
    %229 = vector.extract_strided_slice %212 {offsets = [0, 256], sizes = [8, 128], strides = [1, 1]} : vector<8x512xf32> to vector<8x128xf32>
    %230 = math.tanh %229 : vector<8x128xf32>
    %231 = vector.extract_strided_slice %212 {offsets = [0, 384], sizes = [8, 128], strides = [1, 1]} : vector<8x512xf32> to vector<8x128xf32>
    %cst_99 = arith.constant 5.000000e-01 : f32
    %232 = vector.broadcast %cst_99 : f32 to vector<8x128xf32>
    %233 = arith.mulf %232, %231 : vector<8x128xf32>
    %234 = math.tanh %233 : vector<8x128xf32>
    %cst_100 = arith.constant 5.000000e-01 : f32
    %235 = vector.broadcast %cst_100 : f32 to vector<8x128xf32>
    %236 = arith.mulf %235, %234 : vector<8x128xf32>
    %cst_101 = arith.constant 5.000000e-01 : f32
    %237 = vector.broadcast %cst_101 : f32 to vector<8x128xf32>
    %238 = arith.addf %236, %237 : vector<8x128xf32>
    %239 = arith.mulf %228, %160 : vector<8x128xf32>
    %240 = arith.mulf %220, %230 : vector<8x128xf32>
    %241 = arith.addf %239, %240 : vector<8x128xf32>
    %242 = math.tanh %241 : vector<8x128xf32>
    %243 = arith.mulf %238, %242 : vector<8x128xf32>
    %c24 = arith.constant 24 : index
    %c0_102 = arith.constant 0 : index
    %244 = vector.load %arg0[%c24, %c0_102] : memref<64x1xf32, #tpu.memory_space<vmem>>, vector<8x1xf32>
    %c0_103 = arith.constant 0 : index
    %c0_104 = arith.constant 0 : index
    %245 = vector.load %arg1[%c0_103, %c0_104] : memref<1x512xf32, #tpu.memory_space<vmem>>, vector<1x512xf32>
    %246 = vector.broadcast %244 : vector<8x1xf32> to vector<8x512xf32>
    %247 = vector.broadcast %245 : vector<1x512xf32> to vector<8x512xf32>
    %248 = arith.mulf %246, %247 : vector<8x512xf32>
    %c0_105 = arith.constant 0 : index
    %c0_106 = arith.constant 0 : index
    %249 = vector.load %arg2[%c0_105, %c0_106] : memref<1x512xf32, #tpu.memory_space<vmem>>, vector<1x512xf32>
    %250 = vector.broadcast %249 : vector<1x512xf32> to vector<8x512xf32>
    %251 = arith.addf %248, %250 : vector<8x512xf32>
    %c0_107 = arith.constant 0 : index
    %c0_108 = arith.constant 0 : index
    %252 = vector.load %arg5[%c0_107, %c0_108] : memref<128x512xf32, #tpu.memory_space<vmem>>, vector<128x512xf32>
    %cst_109 = arith.constant dense<0.000000e+00> : vector<8x512xf32>
    %253 = tpu.matmul %243, %252, %cst_109 {dimension_numbers = #tpu.dot_dimension_numbers<[1], [0], [0], [1], [0, 0, 1, 1], [], []>} : vector<8x128xf32>, vector<128x512xf32>, vector<8x512xf32> -> vector<8x512xf32>
    %c0_110 = arith.constant 0 : index
    %c0_111 = arith.constant 0 : index
    %254 = vector.load %arg6[%c0_110, %c0_111] : memref<1x512xf32, #tpu.memory_space<vmem>>, vector<1x512xf32>
    %255 = vector.broadcast %254 : vector<1x512xf32> to vector<8x512xf32>
    %256 = arith.addf %253, %255 : vector<8x512xf32>
    %c0_112 = arith.constant 0 : index
    %c0_113 = arith.constant 0 : index
    %257 = vector.load %arg3[%c0_112, %c0_113] : memref<128x512xf32, #tpu.memory_space<vmem>>, vector<128x512xf32>
    %cst_114 = arith.constant dense<0.000000e+00> : vector<8x512xf32>
    %258 = tpu.matmul %209, %257, %cst_114 {dimension_numbers = #tpu.dot_dimension_numbers<[1], [0], [0], [1], [0, 0, 1, 1], [], []>} : vector<8x128xf32>, vector<128x512xf32>, vector<8x512xf32> -> vector<8x512xf32>
    %259 = arith.addf %258, %251 : vector<8x512xf32>
    %260 = vector.extract_strided_slice %259 {offsets = [0, 0], sizes = [8, 128], strides = [1, 1]} : vector<8x512xf32> to vector<8x128xf32>
    %cst_115 = arith.constant 5.000000e-01 : f32
    %261 = vector.broadcast %cst_115 : f32 to vector<8x128xf32>
    %262 = arith.mulf %261, %260 : vector<8x128xf32>
    %263 = math.tanh %262 : vector<8x128xf32>
    %cst_116 = arith.constant 5.000000e-01 : f32
    %264 = vector.broadcast %cst_116 : f32 to vector<8x128xf32>
    %265 = arith.mulf %264, %263 : vector<8x128xf32>
    %cst_117 = arith.constant 5.000000e-01 : f32
    %266 = vector.broadcast %cst_117 : f32 to vector<8x128xf32>
    %267 = arith.addf %265, %266 : vector<8x128xf32>
    %268 = vector.extract_strided_slice %259 {offsets = [0, 128], sizes = [8, 128], strides = [1, 1]} : vector<8x512xf32> to vector<8x128xf32>
    %cst_118 = arith.constant 5.000000e-01 : f32
    %269 = vector.broadcast %cst_118 : f32 to vector<8x128xf32>
    %270 = arith.mulf %269, %268 : vector<8x128xf32>
    %271 = math.tanh %270 : vector<8x128xf32>
    %cst_119 = arith.constant 5.000000e-01 : f32
    %272 = vector.broadcast %cst_119 : f32 to vector<8x128xf32>
    %273 = arith.mulf %272, %271 : vector<8x128xf32>
    %cst_120 = arith.constant 5.000000e-01 : f32
    %274 = vector.broadcast %cst_120 : f32 to vector<8x128xf32>
    %275 = arith.addf %273, %274 : vector<8x128xf32>
    %276 = vector.extract_strided_slice %259 {offsets = [0, 256], sizes = [8, 128], strides = [1, 1]} : vector<8x512xf32> to vector<8x128xf32>
    %277 = math.tanh %276 : vector<8x128xf32>
    %278 = vector.extract_strided_slice %259 {offsets = [0, 384], sizes = [8, 128], strides = [1, 1]} : vector<8x512xf32> to vector<8x128xf32>
    %cst_121 = arith.constant 5.000000e-01 : f32
    %279 = vector.broadcast %cst_121 : f32 to vector<8x128xf32>
    %280 = arith.mulf %279, %278 : vector<8x128xf32>
    %281 = math.tanh %280 : vector<8x128xf32>
    %cst_122 = arith.constant 5.000000e-01 : f32
    %282 = vector.broadcast %cst_122 : f32 to vector<8x128xf32>
    %283 = arith.mulf %282, %281 : vector<8x128xf32>
    %cst_123 = arith.constant 5.000000e-01 : f32
    %284 = vector.broadcast %cst_123 : f32 to vector<8x128xf32>
    %285 = arith.addf %283, %284 : vector<8x128xf32>
    %286 = arith.mulf %275, %207 : vector<8x128xf32>
    %287 = arith.mulf %267, %277 : vector<8x128xf32>
    %288 = arith.addf %286, %287 : vector<8x128xf32>
    %289 = math.tanh %288 : vector<8x128xf32>
    %290 = arith.mulf %285, %289 : vector<8x128xf32>
    %c0_124 = arith.constant 0 : index
    %c0_125 = arith.constant 0 : index
    %291 = vector.load %arg4[%c0_124, %c0_125] : memref<128x512xf32, #tpu.memory_space<vmem>>, vector<128x512xf32>
    %cst_126 = arith.constant dense<0.000000e+00> : vector<8x512xf32>
    %292 = tpu.matmul %290, %291, %cst_126 {dimension_numbers = #tpu.dot_dimension_numbers<[1], [0], [0], [1], [0, 0, 1, 1], [], []>} : vector<8x128xf32>, vector<128x512xf32>, vector<8x512xf32> -> vector<8x512xf32>
    %293 = arith.addf %256, %292 : vector<8x512xf32>
    %294 = vector.extract_strided_slice %293 {offsets = [0, 0], sizes = [8, 128], strides = [1, 1]} : vector<8x512xf32> to vector<8x128xf32>
    %cst_127 = arith.constant 5.000000e-01 : f32
    %295 = vector.broadcast %cst_127 : f32 to vector<8x128xf32>
    %296 = arith.mulf %295, %294 : vector<8x128xf32>
    %297 = math.tanh %296 : vector<8x128xf32>
    %cst_128 = arith.constant 5.000000e-01 : f32
    %298 = vector.broadcast %cst_128 : f32 to vector<8x128xf32>
    %299 = arith.mulf %298, %297 : vector<8x128xf32>
    %cst_129 = arith.constant 5.000000e-01 : f32
    %300 = vector.broadcast %cst_129 : f32 to vector<8x128xf32>
    %301 = arith.addf %299, %300 : vector<8x128xf32>
    %302 = vector.extract_strided_slice %293 {offsets = [0, 128], sizes = [8, 128], strides = [1, 1]} : vector<8x512xf32> to vector<8x128xf32>
    %cst_130 = arith.constant 5.000000e-01 : f32
    %303 = vector.broadcast %cst_130 : f32 to vector<8x128xf32>
    %304 = arith.mulf %303, %302 : vector<8x128xf32>
    %305 = math.tanh %304 : vector<8x128xf32>
    %cst_131 = arith.constant 5.000000e-01 : f32
    %306 = vector.broadcast %cst_131 : f32 to vector<8x128xf32>
    %307 = arith.mulf %306, %305 : vector<8x128xf32>
    %cst_132 = arith.constant 5.000000e-01 : f32
    %308 = vector.broadcast %cst_132 : f32 to vector<8x128xf32>
    %309 = arith.addf %307, %308 : vector<8x128xf32>
    %310 = vector.extract_strided_slice %293 {offsets = [0, 256], sizes = [8, 128], strides = [1, 1]} : vector<8x512xf32> to vector<8x128xf32>
    %311 = math.tanh %310 : vector<8x128xf32>
    %312 = vector.extract_strided_slice %293 {offsets = [0, 384], sizes = [8, 128], strides = [1, 1]} : vector<8x512xf32> to vector<8x128xf32>
    %cst_133 = arith.constant 5.000000e-01 : f32
    %313 = vector.broadcast %cst_133 : f32 to vector<8x128xf32>
    %314 = arith.mulf %313, %312 : vector<8x128xf32>
    %315 = math.tanh %314 : vector<8x128xf32>
    %cst_134 = arith.constant 5.000000e-01 : f32
    %316 = vector.broadcast %cst_134 : f32 to vector<8x128xf32>
    %317 = arith.mulf %316, %315 : vector<8x128xf32>
    %cst_135 = arith.constant 5.000000e-01 : f32
    %318 = vector.broadcast %cst_135 : f32 to vector<8x128xf32>
    %319 = arith.addf %317, %318 : vector<8x128xf32>
    %320 = arith.mulf %309, %241 : vector<8x128xf32>
    %321 = arith.mulf %301, %311 : vector<8x128xf32>
    %322 = arith.addf %320, %321 : vector<8x128xf32>
    %323 = math.tanh %322 : vector<8x128xf32>
    %324 = arith.mulf %319, %323 : vector<8x128xf32>
    %c32 = arith.constant 32 : index
    %c0_136 = arith.constant 0 : index
    %325 = vector.load %arg0[%c32, %c0_136] : memref<64x1xf32, #tpu.memory_space<vmem>>, vector<8x1xf32>
    %c0_137 = arith.constant 0 : index
    %c0_138 = arith.constant 0 : index
    %326 = vector.load %arg1[%c0_137, %c0_138] : memref<1x512xf32, #tpu.memory_space<vmem>>, vector<1x512xf32>
    %327 = vector.broadcast %325 : vector<8x1xf32> to vector<8x512xf32>
    %328 = vector.broadcast %326 : vector<1x512xf32> to vector<8x512xf32>
    %329 = arith.mulf %327, %328 : vector<8x512xf32>
    %c0_139 = arith.constant 0 : index
    %c0_140 = arith.constant 0 : index
    %330 = vector.load %arg2[%c0_139, %c0_140] : memref<1x512xf32, #tpu.memory_space<vmem>>, vector<1x512xf32>
    %331 = vector.broadcast %330 : vector<1x512xf32> to vector<8x512xf32>
    %332 = arith.addf %329, %331 : vector<8x512xf32>
    %c0_141 = arith.constant 0 : index
    %c0_142 = arith.constant 0 : index
    %333 = vector.load %arg5[%c0_141, %c0_142] : memref<128x512xf32, #tpu.memory_space<vmem>>, vector<128x512xf32>
    %cst_143 = arith.constant dense<0.000000e+00> : vector<8x512xf32>
    %334 = tpu.matmul %324, %333, %cst_143 {dimension_numbers = #tpu.dot_dimension_numbers<[1], [0], [0], [1], [0, 0, 1, 1], [], []>} : vector<8x128xf32>, vector<128x512xf32>, vector<8x512xf32> -> vector<8x512xf32>
    %c0_144 = arith.constant 0 : index
    %c0_145 = arith.constant 0 : index
    %335 = vector.load %arg6[%c0_144, %c0_145] : memref<1x512xf32, #tpu.memory_space<vmem>>, vector<1x512xf32>
    %336 = vector.broadcast %335 : vector<1x512xf32> to vector<8x512xf32>
    %337 = arith.addf %334, %336 : vector<8x512xf32>
    %c0_146 = arith.constant 0 : index
    %c0_147 = arith.constant 0 : index
    %338 = vector.load %arg3[%c0_146, %c0_147] : memref<128x512xf32, #tpu.memory_space<vmem>>, vector<128x512xf32>
    %cst_148 = arith.constant dense<0.000000e+00> : vector<8x512xf32>
    %339 = tpu.matmul %290, %338, %cst_148 {dimension_numbers = #tpu.dot_dimension_numbers<[1], [0], [0], [1], [0, 0, 1, 1], [], []>} : vector<8x128xf32>, vector<128x512xf32>, vector<8x512xf32> -> vector<8x512xf32>
    %340 = arith.addf %339, %332 : vector<8x512xf32>
    %341 = vector.extract_strided_slice %340 {offsets = [0, 0], sizes = [8, 128], strides = [1, 1]} : vector<8x512xf32> to vector<8x128xf32>
    %cst_149 = arith.constant 5.000000e-01 : f32
    %342 = vector.broadcast %cst_149 : f32 to vector<8x128xf32>
    %343 = arith.mulf %342, %341 : vector<8x128xf32>
    %344 = math.tanh %343 : vector<8x128xf32>
    %cst_150 = arith.constant 5.000000e-01 : f32
    %345 = vector.broadcast %cst_150 : f32 to vector<8x128xf32>
    %346 = arith.mulf %345, %344 : vector<8x128xf32>
    %cst_151 = arith.constant 5.000000e-01 : f32
    %347 = vector.broadcast %cst_151 : f32 to vector<8x128xf32>
    %348 = arith.addf %346, %347 : vector<8x128xf32>
    %349 = vector.extract_strided_slice %340 {offsets = [0, 128], sizes = [8, 128], strides = [1, 1]} : vector<8x512xf32> to vector<8x128xf32>
    %cst_152 = arith.constant 5.000000e-01 : f32
    %350 = vector.broadcast %cst_152 : f32 to vector<8x128xf32>
    %351 = arith.mulf %350, %349 : vector<8x128xf32>
    %352 = math.tanh %351 : vector<8x128xf32>
    %cst_153 = arith.constant 5.000000e-01 : f32
    %353 = vector.broadcast %cst_153 : f32 to vector<8x128xf32>
    %354 = arith.mulf %353, %352 : vector<8x128xf32>
    %cst_154 = arith.constant 5.000000e-01 : f32
    %355 = vector.broadcast %cst_154 : f32 to vector<8x128xf32>
    %356 = arith.addf %354, %355 : vector<8x128xf32>
    %357 = vector.extract_strided_slice %340 {offsets = [0, 256], sizes = [8, 128], strides = [1, 1]} : vector<8x512xf32> to vector<8x128xf32>
    %358 = math.tanh %357 : vector<8x128xf32>
    %359 = vector.extract_strided_slice %340 {offsets = [0, 384], sizes = [8, 128], strides = [1, 1]} : vector<8x512xf32> to vector<8x128xf32>
    %cst_155 = arith.constant 5.000000e-01 : f32
    %360 = vector.broadcast %cst_155 : f32 to vector<8x128xf32>
    %361 = arith.mulf %360, %359 : vector<8x128xf32>
    %362 = math.tanh %361 : vector<8x128xf32>
    %cst_156 = arith.constant 5.000000e-01 : f32
    %363 = vector.broadcast %cst_156 : f32 to vector<8x128xf32>
    %364 = arith.mulf %363, %362 : vector<8x128xf32>
    %cst_157 = arith.constant 5.000000e-01 : f32
    %365 = vector.broadcast %cst_157 : f32 to vector<8x128xf32>
    %366 = arith.addf %364, %365 : vector<8x128xf32>
    %367 = arith.mulf %356, %288 : vector<8x128xf32>
    %368 = arith.mulf %348, %358 : vector<8x128xf32>
    %369 = arith.addf %367, %368 : vector<8x128xf32>
    %370 = math.tanh %369 : vector<8x128xf32>
    %371 = arith.mulf %366, %370 : vector<8x128xf32>
    %c0_158 = arith.constant 0 : index
    %c0_159 = arith.constant 0 : index
    %372 = vector.load %arg4[%c0_158, %c0_159] : memref<128x512xf32, #tpu.memory_space<vmem>>, vector<128x512xf32>
    %cst_160 = arith.constant dense<0.000000e+00> : vector<8x512xf32>
    %373 = tpu.matmul %371, %372, %cst_160 {dimension_numbers = #tpu.dot_dimension_numbers<[1], [0], [0], [1], [0, 0, 1, 1], [], []>} : vector<8x128xf32>, vector<128x512xf32>, vector<8x512xf32> -> vector<8x512xf32>
    %374 = arith.addf %337, %373 : vector<8x512xf32>
    %375 = vector.extract_strided_slice %374 {offsets = [0, 0], sizes = [8, 128], strides = [1, 1]} : vector<8x512xf32> to vector<8x128xf32>
    %cst_161 = arith.constant 5.000000e-01 : f32
    %376 = vector.broadcast %cst_161 : f32 to vector<8x128xf32>
    %377 = arith.mulf %376, %375 : vector<8x128xf32>
    %378 = math.tanh %377 : vector<8x128xf32>
    %cst_162 = arith.constant 5.000000e-01 : f32
    %379 = vector.broadcast %cst_162 : f32 to vector<8x128xf32>
    %380 = arith.mulf %379, %378 : vector<8x128xf32>
    %cst_163 = arith.constant 5.000000e-01 : f32
    %381 = vector.broadcast %cst_163 : f32 to vector<8x128xf32>
    %382 = arith.addf %380, %381 : vector<8x128xf32>
    %383 = vector.extract_strided_slice %374 {offsets = [0, 128], sizes = [8, 128], strides = [1, 1]} : vector<8x512xf32> to vector<8x128xf32>
    %cst_164 = arith.constant 5.000000e-01 : f32
    %384 = vector.broadcast %cst_164 : f32 to vector<8x128xf32>
    %385 = arith.mulf %384, %383 : vector<8x128xf32>
    %386 = math.tanh %385 : vector<8x128xf32>
    %cst_165 = arith.constant 5.000000e-01 : f32
    %387 = vector.broadcast %cst_165 : f32 to vector<8x128xf32>
    %388 = arith.mulf %387, %386 : vector<8x128xf32>
    %cst_166 = arith.constant 5.000000e-01 : f32
    %389 = vector.broadcast %cst_166 : f32 to vector<8x128xf32>
    %390 = arith.addf %388, %389 : vector<8x128xf32>
    %391 = vector.extract_strided_slice %374 {offsets = [0, 256], sizes = [8, 128], strides = [1, 1]} : vector<8x512xf32> to vector<8x128xf32>
    %392 = math.tanh %391 : vector<8x128xf32>
    %393 = vector.extract_strided_slice %374 {offsets = [0, 384], sizes = [8, 128], strides = [1, 1]} : vector<8x512xf32> to vector<8x128xf32>
    %cst_167 = arith.constant 5.000000e-01 : f32
    %394 = vector.broadcast %cst_167 : f32 to vector<8x128xf32>
    %395 = arith.mulf %394, %393 : vector<8x128xf32>
    %396 = math.tanh %395 : vector<8x128xf32>
    %cst_168 = arith.constant 5.000000e-01 : f32
    %397 = vector.broadcast %cst_168 : f32 to vector<8x128xf32>
    %398 = arith.mulf %397, %396 : vector<8x128xf32>
    %cst_169 = arith.constant 5.000000e-01 : f32
    %399 = vector.broadcast %cst_169 : f32 to vector<8x128xf32>
    %400 = arith.addf %398, %399 : vector<8x128xf32>
    %401 = arith.mulf %390, %322 : vector<8x128xf32>
    %402 = arith.mulf %382, %392 : vector<8x128xf32>
    %403 = arith.addf %401, %402 : vector<8x128xf32>
    %404 = math.tanh %403 : vector<8x128xf32>
    %405 = arith.mulf %400, %404 : vector<8x128xf32>
    %c40 = arith.constant 40 : index
    %c0_170 = arith.constant 0 : index
    %406 = vector.load %arg0[%c40, %c0_170] : memref<64x1xf32, #tpu.memory_space<vmem>>, vector<8x1xf32>
    %c0_171 = arith.constant 0 : index
    %c0_172 = arith.constant 0 : index
    %407 = vector.load %arg1[%c0_171, %c0_172] : memref<1x512xf32, #tpu.memory_space<vmem>>, vector<1x512xf32>
    %408 = vector.broadcast %406 : vector<8x1xf32> to vector<8x512xf32>
    %409 = vector.broadcast %407 : vector<1x512xf32> to vector<8x512xf32>
    %410 = arith.mulf %408, %409 : vector<8x512xf32>
    %c0_173 = arith.constant 0 : index
    %c0_174 = arith.constant 0 : index
    %411 = vector.load %arg2[%c0_173, %c0_174] : memref<1x512xf32, #tpu.memory_space<vmem>>, vector<1x512xf32>
    %412 = vector.broadcast %411 : vector<1x512xf32> to vector<8x512xf32>
    %413 = arith.addf %410, %412 : vector<8x512xf32>
    %c0_175 = arith.constant 0 : index
    %c0_176 = arith.constant 0 : index
    %414 = vector.load %arg5[%c0_175, %c0_176] : memref<128x512xf32, #tpu.memory_space<vmem>>, vector<128x512xf32>
    %cst_177 = arith.constant dense<0.000000e+00> : vector<8x512xf32>
    %415 = tpu.matmul %405, %414, %cst_177 {dimension_numbers = #tpu.dot_dimension_numbers<[1], [0], [0], [1], [0, 0, 1, 1], [], []>} : vector<8x128xf32>, vector<128x512xf32>, vector<8x512xf32> -> vector<8x512xf32>
    %c0_178 = arith.constant 0 : index
    %c0_179 = arith.constant 0 : index
    %416 = vector.load %arg6[%c0_178, %c0_179] : memref<1x512xf32, #tpu.memory_space<vmem>>, vector<1x512xf32>
    %417 = vector.broadcast %416 : vector<1x512xf32> to vector<8x512xf32>
    %418 = arith.addf %415, %417 : vector<8x512xf32>
    %c0_180 = arith.constant 0 : index
    %c0_181 = arith.constant 0 : index
    %419 = vector.load %arg3[%c0_180, %c0_181] : memref<128x512xf32, #tpu.memory_space<vmem>>, vector<128x512xf32>
    %cst_182 = arith.constant dense<0.000000e+00> : vector<8x512xf32>
    %420 = tpu.matmul %371, %419, %cst_182 {dimension_numbers = #tpu.dot_dimension_numbers<[1], [0], [0], [1], [0, 0, 1, 1], [], []>} : vector<8x128xf32>, vector<128x512xf32>, vector<8x512xf32> -> vector<8x512xf32>
    %421 = arith.addf %420, %413 : vector<8x512xf32>
    %422 = vector.extract_strided_slice %421 {offsets = [0, 0], sizes = [8, 128], strides = [1, 1]} : vector<8x512xf32> to vector<8x128xf32>
    %cst_183 = arith.constant 5.000000e-01 : f32
    %423 = vector.broadcast %cst_183 : f32 to vector<8x128xf32>
    %424 = arith.mulf %423, %422 : vector<8x128xf32>
    %425 = math.tanh %424 : vector<8x128xf32>
    %cst_184 = arith.constant 5.000000e-01 : f32
    %426 = vector.broadcast %cst_184 : f32 to vector<8x128xf32>
    %427 = arith.mulf %426, %425 : vector<8x128xf32>
    %cst_185 = arith.constant 5.000000e-01 : f32
    %428 = vector.broadcast %cst_185 : f32 to vector<8x128xf32>
    %429 = arith.addf %427, %428 : vector<8x128xf32>
    %430 = vector.extract_strided_slice %421 {offsets = [0, 128], sizes = [8, 128], strides = [1, 1]} : vector<8x512xf32> to vector<8x128xf32>
    %cst_186 = arith.constant 5.000000e-01 : f32
    %431 = vector.broadcast %cst_186 : f32 to vector<8x128xf32>
    %432 = arith.mulf %431, %430 : vector<8x128xf32>
    %433 = math.tanh %432 : vector<8x128xf32>
    %cst_187 = arith.constant 5.000000e-01 : f32
    %434 = vector.broadcast %cst_187 : f32 to vector<8x128xf32>
    %435 = arith.mulf %434, %433 : vector<8x128xf32>
    %cst_188 = arith.constant 5.000000e-01 : f32
    %436 = vector.broadcast %cst_188 : f32 to vector<8x128xf32>
    %437 = arith.addf %435, %436 : vector<8x128xf32>
    %438 = vector.extract_strided_slice %421 {offsets = [0, 256], sizes = [8, 128], strides = [1, 1]} : vector<8x512xf32> to vector<8x128xf32>
    %439 = math.tanh %438 : vector<8x128xf32>
    %440 = vector.extract_strided_slice %421 {offsets = [0, 384], sizes = [8, 128], strides = [1, 1]} : vector<8x512xf32> to vector<8x128xf32>
    %cst_189 = arith.constant 5.000000e-01 : f32
    %441 = vector.broadcast %cst_189 : f32 to vector<8x128xf32>
    %442 = arith.mulf %441, %440 : vector<8x128xf32>
    %443 = math.tanh %442 : vector<8x128xf32>
    %cst_190 = arith.constant 5.000000e-01 : f32
    %444 = vector.broadcast %cst_190 : f32 to vector<8x128xf32>
    %445 = arith.mulf %444, %443 : vector<8x128xf32>
    %cst_191 = arith.constant 5.000000e-01 : f32
    %446 = vector.broadcast %cst_191 : f32 to vector<8x128xf32>
    %447 = arith.addf %445, %446 : vector<8x128xf32>
    %448 = arith.mulf %437, %369 : vector<8x128xf32>
    %449 = arith.mulf %429, %439 : vector<8x128xf32>
    %450 = arith.addf %448, %449 : vector<8x128xf32>
    %451 = math.tanh %450 : vector<8x128xf32>
    %452 = arith.mulf %447, %451 : vector<8x128xf32>
    %c0_192 = arith.constant 0 : index
    %c0_193 = arith.constant 0 : index
    %453 = vector.load %arg4[%c0_192, %c0_193] : memref<128x512xf32, #tpu.memory_space<vmem>>, vector<128x512xf32>
    %cst_194 = arith.constant dense<0.000000e+00> : vector<8x512xf32>
    %454 = tpu.matmul %452, %453, %cst_194 {dimension_numbers = #tpu.dot_dimension_numbers<[1], [0], [0], [1], [0, 0, 1, 1], [], []>} : vector<8x128xf32>, vector<128x512xf32>, vector<8x512xf32> -> vector<8x512xf32>
    %455 = arith.addf %418, %454 : vector<8x512xf32>
    %456 = vector.extract_strided_slice %455 {offsets = [0, 0], sizes = [8, 128], strides = [1, 1]} : vector<8x512xf32> to vector<8x128xf32>
    %cst_195 = arith.constant 5.000000e-01 : f32
    %457 = vector.broadcast %cst_195 : f32 to vector<8x128xf32>
    %458 = arith.mulf %457, %456 : vector<8x128xf32>
    %459 = math.tanh %458 : vector<8x128xf32>
    %cst_196 = arith.constant 5.000000e-01 : f32
    %460 = vector.broadcast %cst_196 : f32 to vector<8x128xf32>
    %461 = arith.mulf %460, %459 : vector<8x128xf32>
    %cst_197 = arith.constant 5.000000e-01 : f32
    %462 = vector.broadcast %cst_197 : f32 to vector<8x128xf32>
    %463 = arith.addf %461, %462 : vector<8x128xf32>
    %464 = vector.extract_strided_slice %455 {offsets = [0, 128], sizes = [8, 128], strides = [1, 1]} : vector<8x512xf32> to vector<8x128xf32>
    %cst_198 = arith.constant 5.000000e-01 : f32
    %465 = vector.broadcast %cst_198 : f32 to vector<8x128xf32>
    %466 = arith.mulf %465, %464 : vector<8x128xf32>
    %467 = math.tanh %466 : vector<8x128xf32>
    %cst_199 = arith.constant 5.000000e-01 : f32
    %468 = vector.broadcast %cst_199 : f32 to vector<8x128xf32>
    %469 = arith.mulf %468, %467 : vector<8x128xf32>
    %cst_200 = arith.constant 5.000000e-01 : f32
    %470 = vector.broadcast %cst_200 : f32 to vector<8x128xf32>
    %471 = arith.addf %469, %470 : vector<8x128xf32>
    %472 = vector.extract_strided_slice %455 {offsets = [0, 256], sizes = [8, 128], strides = [1, 1]} : vector<8x512xf32> to vector<8x128xf32>
    %473 = math.tanh %472 : vector<8x128xf32>
    %474 = vector.extract_strided_slice %455 {offsets = [0, 384], sizes = [8, 128], strides = [1, 1]} : vector<8x512xf32> to vector<8x128xf32>
    %cst_201 = arith.constant 5.000000e-01 : f32
    %475 = vector.broadcast %cst_201 : f32 to vector<8x128xf32>
    %476 = arith.mulf %475, %474 : vector<8x128xf32>
    %477 = math.tanh %476 : vector<8x128xf32>
    %cst_202 = arith.constant 5.000000e-01 : f32
    %478 = vector.broadcast %cst_202 : f32 to vector<8x128xf32>
    %479 = arith.mulf %478, %477 : vector<8x128xf32>
    %cst_203 = arith.constant 5.000000e-01 : f32
    %480 = vector.broadcast %cst_203 : f32 to vector<8x128xf32>
    %481 = arith.addf %479, %480 : vector<8x128xf32>
    %482 = arith.mulf %471, %403 : vector<8x128xf32>
    %483 = arith.mulf %463, %473 : vector<8x128xf32>
    %484 = arith.addf %482, %483 : vector<8x128xf32>
    %485 = math.tanh %484 : vector<8x128xf32>
    %486 = arith.mulf %481, %485 : vector<8x128xf32>
    %c48 = arith.constant 48 : index
    %c0_204 = arith.constant 0 : index
    %487 = vector.load %arg0[%c48, %c0_204] : memref<64x1xf32, #tpu.memory_space<vmem>>, vector<8x1xf32>
    %c0_205 = arith.constant 0 : index
    %c0_206 = arith.constant 0 : index
    %488 = vector.load %arg1[%c0_205, %c0_206] : memref<1x512xf32, #tpu.memory_space<vmem>>, vector<1x512xf32>
    %489 = vector.broadcast %487 : vector<8x1xf32> to vector<8x512xf32>
    %490 = vector.broadcast %488 : vector<1x512xf32> to vector<8x512xf32>
    %491 = arith.mulf %489, %490 : vector<8x512xf32>
    %c0_207 = arith.constant 0 : index
    %c0_208 = arith.constant 0 : index
    %492 = vector.load %arg2[%c0_207, %c0_208] : memref<1x512xf32, #tpu.memory_space<vmem>>, vector<1x512xf32>
    %493 = vector.broadcast %492 : vector<1x512xf32> to vector<8x512xf32>
    %494 = arith.addf %491, %493 : vector<8x512xf32>
    %c0_209 = arith.constant 0 : index
    %c0_210 = arith.constant 0 : index
    %495 = vector.load %arg5[%c0_209, %c0_210] : memref<128x512xf32, #tpu.memory_space<vmem>>, vector<128x512xf32>
    %cst_211 = arith.constant dense<0.000000e+00> : vector<8x512xf32>
    %496 = tpu.matmul %486, %495, %cst_211 {dimension_numbers = #tpu.dot_dimension_numbers<[1], [0], [0], [1], [0, 0, 1, 1], [], []>} : vector<8x128xf32>, vector<128x512xf32>, vector<8x512xf32> -> vector<8x512xf32>
    %c0_212 = arith.constant 0 : index
    %c0_213 = arith.constant 0 : index
    %497 = vector.load %arg6[%c0_212, %c0_213] : memref<1x512xf32, #tpu.memory_space<vmem>>, vector<1x512xf32>
    %498 = vector.broadcast %497 : vector<1x512xf32> to vector<8x512xf32>
    %499 = arith.addf %496, %498 : vector<8x512xf32>
    %c0_214 = arith.constant 0 : index
    %c0_215 = arith.constant 0 : index
    %500 = vector.load %arg3[%c0_214, %c0_215] : memref<128x512xf32, #tpu.memory_space<vmem>>, vector<128x512xf32>
    %cst_216 = arith.constant dense<0.000000e+00> : vector<8x512xf32>
    %501 = tpu.matmul %452, %500, %cst_216 {dimension_numbers = #tpu.dot_dimension_numbers<[1], [0], [0], [1], [0, 0, 1, 1], [], []>} : vector<8x128xf32>, vector<128x512xf32>, vector<8x512xf32> -> vector<8x512xf32>
    %502 = arith.addf %501, %494 : vector<8x512xf32>
    %503 = vector.extract_strided_slice %502 {offsets = [0, 0], sizes = [8, 128], strides = [1, 1]} : vector<8x512xf32> to vector<8x128xf32>
    %cst_217 = arith.constant 5.000000e-01 : f32
    %504 = vector.broadcast %cst_217 : f32 to vector<8x128xf32>
    %505 = arith.mulf %504, %503 : vector<8x128xf32>
    %506 = math.tanh %505 : vector<8x128xf32>
    %cst_218 = arith.constant 5.000000e-01 : f32
    %507 = vector.broadcast %cst_218 : f32 to vector<8x128xf32>
    %508 = arith.mulf %507, %506 : vector<8x128xf32>
    %cst_219 = arith.constant 5.000000e-01 : f32
    %509 = vector.broadcast %cst_219 : f32 to vector<8x128xf32>
    %510 = arith.addf %508, %509 : vector<8x128xf32>
    %511 = vector.extract_strided_slice %502 {offsets = [0, 128], sizes = [8, 128], strides = [1, 1]} : vector<8x512xf32> to vector<8x128xf32>
    %cst_220 = arith.constant 5.000000e-01 : f32
    %512 = vector.broadcast %cst_220 : f32 to vector<8x128xf32>
    %513 = arith.mulf %512, %511 : vector<8x128xf32>
    %514 = math.tanh %513 : vector<8x128xf32>
    %cst_221 = arith.constant 5.000000e-01 : f32
    %515 = vector.broadcast %cst_221 : f32 to vector<8x128xf32>
    %516 = arith.mulf %515, %514 : vector<8x128xf32>
    %cst_222 = arith.constant 5.000000e-01 : f32
    %517 = vector.broadcast %cst_222 : f32 to vector<8x128xf32>
    %518 = arith.addf %516, %517 : vector<8x128xf32>
    %519 = vector.extract_strided_slice %502 {offsets = [0, 256], sizes = [8, 128], strides = [1, 1]} : vector<8x512xf32> to vector<8x128xf32>
    %520 = math.tanh %519 : vector<8x128xf32>
    %521 = vector.extract_strided_slice %502 {offsets = [0, 384], sizes = [8, 128], strides = [1, 1]} : vector<8x512xf32> to vector<8x128xf32>
    %cst_223 = arith.constant 5.000000e-01 : f32
    %522 = vector.broadcast %cst_223 : f32 to vector<8x128xf32>
    %523 = arith.mulf %522, %521 : vector<8x128xf32>
    %524 = math.tanh %523 : vector<8x128xf32>
    %cst_224 = arith.constant 5.000000e-01 : f32
    %525 = vector.broadcast %cst_224 : f32 to vector<8x128xf32>
    %526 = arith.mulf %525, %524 : vector<8x128xf32>
    %cst_225 = arith.constant 5.000000e-01 : f32
    %527 = vector.broadcast %cst_225 : f32 to vector<8x128xf32>
    %528 = arith.addf %526, %527 : vector<8x128xf32>
    %529 = arith.mulf %518, %450 : vector<8x128xf32>
    %530 = arith.mulf %510, %520 : vector<8x128xf32>
    %531 = arith.addf %529, %530 : vector<8x128xf32>
    %532 = math.tanh %531 : vector<8x128xf32>
    %533 = arith.mulf %528, %532 : vector<8x128xf32>
    %c0_226 = arith.constant 0 : index
    %c0_227 = arith.constant 0 : index
    %534 = vector.load %arg4[%c0_226, %c0_227] : memref<128x512xf32, #tpu.memory_space<vmem>>, vector<128x512xf32>
    %cst_228 = arith.constant dense<0.000000e+00> : vector<8x512xf32>
    %535 = tpu.matmul %533, %534, %cst_228 {dimension_numbers = #tpu.dot_dimension_numbers<[1], [0], [0], [1], [0, 0, 1, 1], [], []>} : vector<8x128xf32>, vector<128x512xf32>, vector<8x512xf32> -> vector<8x512xf32>
    %536 = arith.addf %499, %535 : vector<8x512xf32>
    %537 = vector.extract_strided_slice %536 {offsets = [0, 0], sizes = [8, 128], strides = [1, 1]} : vector<8x512xf32> to vector<8x128xf32>
    %cst_229 = arith.constant 5.000000e-01 : f32
    %538 = vector.broadcast %cst_229 : f32 to vector<8x128xf32>
    %539 = arith.mulf %538, %537 : vector<8x128xf32>
    %540 = math.tanh %539 : vector<8x128xf32>
    %cst_230 = arith.constant 5.000000e-01 : f32
    %541 = vector.broadcast %cst_230 : f32 to vector<8x128xf32>
    %542 = arith.mulf %541, %540 : vector<8x128xf32>
    %cst_231 = arith.constant 5.000000e-01 : f32
    %543 = vector.broadcast %cst_231 : f32 to vector<8x128xf32>
    %544 = arith.addf %542, %543 : vector<8x128xf32>
    %545 = vector.extract_strided_slice %536 {offsets = [0, 128], sizes = [8, 128], strides = [1, 1]} : vector<8x512xf32> to vector<8x128xf32>
    %cst_232 = arith.constant 5.000000e-01 : f32
    %546 = vector.broadcast %cst_232 : f32 to vector<8x128xf32>
    %547 = arith.mulf %546, %545 : vector<8x128xf32>
    %548 = math.tanh %547 : vector<8x128xf32>
    %cst_233 = arith.constant 5.000000e-01 : f32
    %549 = vector.broadcast %cst_233 : f32 to vector<8x128xf32>
    %550 = arith.mulf %549, %548 : vector<8x128xf32>
    %cst_234 = arith.constant 5.000000e-01 : f32
    %551 = vector.broadcast %cst_234 : f32 to vector<8x128xf32>
    %552 = arith.addf %550, %551 : vector<8x128xf32>
    %553 = vector.extract_strided_slice %536 {offsets = [0, 256], sizes = [8, 128], strides = [1, 1]} : vector<8x512xf32> to vector<8x128xf32>
    %554 = math.tanh %553 : vector<8x128xf32>
    %555 = vector.extract_strided_slice %536 {offsets = [0, 384], sizes = [8, 128], strides = [1, 1]} : vector<8x512xf32> to vector<8x128xf32>
    %cst_235 = arith.constant 5.000000e-01 : f32
    %556 = vector.broadcast %cst_235 : f32 to vector<8x128xf32>
    %557 = arith.mulf %556, %555 : vector<8x128xf32>
    %558 = math.tanh %557 : vector<8x128xf32>
    %cst_236 = arith.constant 5.000000e-01 : f32
    %559 = vector.broadcast %cst_236 : f32 to vector<8x128xf32>
    %560 = arith.mulf %559, %558 : vector<8x128xf32>
    %cst_237 = arith.constant 5.000000e-01 : f32
    %561 = vector.broadcast %cst_237 : f32 to vector<8x128xf32>
    %562 = arith.addf %560, %561 : vector<8x128xf32>
    %563 = arith.mulf %552, %484 : vector<8x128xf32>
    %564 = arith.mulf %544, %554 : vector<8x128xf32>
    %565 = arith.addf %563, %564 : vector<8x128xf32>
    %566 = math.tanh %565 : vector<8x128xf32>
    %567 = arith.mulf %562, %566 : vector<8x128xf32>
    %c56 = arith.constant 56 : index
    %c0_238 = arith.constant 0 : index
    %568 = vector.load %arg0[%c56, %c0_238] : memref<64x1xf32, #tpu.memory_space<vmem>>, vector<8x1xf32>
    %c0_239 = arith.constant 0 : index
    %c0_240 = arith.constant 0 : index
    %569 = vector.load %arg1[%c0_239, %c0_240] : memref<1x512xf32, #tpu.memory_space<vmem>>, vector<1x512xf32>
    %570 = vector.broadcast %568 : vector<8x1xf32> to vector<8x512xf32>
    %571 = vector.broadcast %569 : vector<1x512xf32> to vector<8x512xf32>
    %572 = arith.mulf %570, %571 : vector<8x512xf32>
    %c0_241 = arith.constant 0 : index
    %c0_242 = arith.constant 0 : index
    %573 = vector.load %arg2[%c0_241, %c0_242] : memref<1x512xf32, #tpu.memory_space<vmem>>, vector<1x512xf32>
    %574 = vector.broadcast %573 : vector<1x512xf32> to vector<8x512xf32>
    %575 = arith.addf %572, %574 : vector<8x512xf32>
    %c0_243 = arith.constant 0 : index
    %c0_244 = arith.constant 0 : index
    %576 = vector.load %arg5[%c0_243, %c0_244] : memref<128x512xf32, #tpu.memory_space<vmem>>, vector<128x512xf32>
    %cst_245 = arith.constant dense<0.000000e+00> : vector<8x512xf32>
    %577 = tpu.matmul %567, %576, %cst_245 {dimension_numbers = #tpu.dot_dimension_numbers<[1], [0], [0], [1], [0, 0, 1, 1], [], []>} : vector<8x128xf32>, vector<128x512xf32>, vector<8x512xf32> -> vector<8x512xf32>
    %c0_246 = arith.constant 0 : index
    %c0_247 = arith.constant 0 : index
    %578 = vector.load %arg6[%c0_246, %c0_247] : memref<1x512xf32, #tpu.memory_space<vmem>>, vector<1x512xf32>
    %579 = vector.broadcast %578 : vector<1x512xf32> to vector<8x512xf32>
    %580 = arith.addf %577, %579 : vector<8x512xf32>
    %c0_248 = arith.constant 0 : index
    %c0_249 = arith.constant 0 : index
    %581 = vector.load %arg3[%c0_248, %c0_249] : memref<128x512xf32, #tpu.memory_space<vmem>>, vector<128x512xf32>
    %cst_250 = arith.constant dense<0.000000e+00> : vector<8x512xf32>
    %582 = tpu.matmul %533, %581, %cst_250 {dimension_numbers = #tpu.dot_dimension_numbers<[1], [0], [0], [1], [0, 0, 1, 1], [], []>} : vector<8x128xf32>, vector<128x512xf32>, vector<8x512xf32> -> vector<8x512xf32>
    %583 = arith.addf %582, %575 : vector<8x512xf32>
    %584 = vector.extract_strided_slice %583 {offsets = [0, 0], sizes = [8, 128], strides = [1, 1]} : vector<8x512xf32> to vector<8x128xf32>
    %cst_251 = arith.constant 5.000000e-01 : f32
    %585 = vector.broadcast %cst_251 : f32 to vector<8x128xf32>
    %586 = arith.mulf %585, %584 : vector<8x128xf32>
    %587 = math.tanh %586 : vector<8x128xf32>
    %cst_252 = arith.constant 5.000000e-01 : f32
    %588 = vector.broadcast %cst_252 : f32 to vector<8x128xf32>
    %589 = arith.mulf %588, %587 : vector<8x128xf32>
    %cst_253 = arith.constant 5.000000e-01 : f32
    %590 = vector.broadcast %cst_253 : f32 to vector<8x128xf32>
    %591 = arith.addf %589, %590 : vector<8x128xf32>
    %592 = vector.extract_strided_slice %583 {offsets = [0, 128], sizes = [8, 128], strides = [1, 1]} : vector<8x512xf32> to vector<8x128xf32>
    %cst_254 = arith.constant 5.000000e-01 : f32
    %593 = vector.broadcast %cst_254 : f32 to vector<8x128xf32>
    %594 = arith.mulf %593, %592 : vector<8x128xf32>
    %595 = math.tanh %594 : vector<8x128xf32>
    %cst_255 = arith.constant 5.000000e-01 : f32
    %596 = vector.broadcast %cst_255 : f32 to vector<8x128xf32>
    %597 = arith.mulf %596, %595 : vector<8x128xf32>
    %cst_256 = arith.constant 5.000000e-01 : f32
    %598 = vector.broadcast %cst_256 : f32 to vector<8x128xf32>
    %599 = arith.addf %597, %598 : vector<8x128xf32>
    %600 = vector.extract_strided_slice %583 {offsets = [0, 256], sizes = [8, 128], strides = [1, 1]} : vector<8x512xf32> to vector<8x128xf32>
    %601 = math.tanh %600 : vector<8x128xf32>
    %602 = vector.extract_strided_slice %583 {offsets = [0, 384], sizes = [8, 128], strides = [1, 1]} : vector<8x512xf32> to vector<8x128xf32>
    %cst_257 = arith.constant 5.000000e-01 : f32
    %603 = vector.broadcast %cst_257 : f32 to vector<8x128xf32>
    %604 = arith.mulf %603, %602 : vector<8x128xf32>
    %605 = math.tanh %604 : vector<8x128xf32>
    %cst_258 = arith.constant 5.000000e-01 : f32
    %606 = vector.broadcast %cst_258 : f32 to vector<8x128xf32>
    %607 = arith.mulf %606, %605 : vector<8x128xf32>
    %cst_259 = arith.constant 5.000000e-01 : f32
    %608 = vector.broadcast %cst_259 : f32 to vector<8x128xf32>
    %609 = arith.addf %607, %608 : vector<8x128xf32>
    %610 = arith.mulf %599, %531 : vector<8x128xf32>
    %611 = arith.mulf %591, %601 : vector<8x128xf32>
    %612 = arith.addf %610, %611 : vector<8x128xf32>
    %613 = math.tanh %612 : vector<8x128xf32>
    %614 = arith.mulf %609, %613 : vector<8x128xf32>
    %c0_260 = arith.constant 0 : index
    %c0_261 = arith.constant 0 : index
    %615 = vector.load %arg4[%c0_260, %c0_261] : memref<128x512xf32, #tpu.memory_space<vmem>>, vector<128x512xf32>
    %cst_262 = arith.constant dense<0.000000e+00> : vector<8x512xf32>
    %616 = tpu.matmul %614, %615, %cst_262 {dimension_numbers = #tpu.dot_dimension_numbers<[1], [0], [0], [1], [0, 0, 1, 1], [], []>} : vector<8x128xf32>, vector<128x512xf32>, vector<8x512xf32> -> vector<8x512xf32>
    %617 = arith.addf %580, %616 : vector<8x512xf32>
    %618 = vector.extract_strided_slice %617 {offsets = [0, 0], sizes = [8, 128], strides = [1, 1]} : vector<8x512xf32> to vector<8x128xf32>
    %cst_263 = arith.constant 5.000000e-01 : f32
    %619 = vector.broadcast %cst_263 : f32 to vector<8x128xf32>
    %620 = arith.mulf %619, %618 : vector<8x128xf32>
    %621 = math.tanh %620 : vector<8x128xf32>
    %cst_264 = arith.constant 5.000000e-01 : f32
    %622 = vector.broadcast %cst_264 : f32 to vector<8x128xf32>
    %623 = arith.mulf %622, %621 : vector<8x128xf32>
    %cst_265 = arith.constant 5.000000e-01 : f32
    %624 = vector.broadcast %cst_265 : f32 to vector<8x128xf32>
    %625 = arith.addf %623, %624 : vector<8x128xf32>
    %626 = vector.extract_strided_slice %617 {offsets = [0, 128], sizes = [8, 128], strides = [1, 1]} : vector<8x512xf32> to vector<8x128xf32>
    %cst_266 = arith.constant 5.000000e-01 : f32
    %627 = vector.broadcast %cst_266 : f32 to vector<8x128xf32>
    %628 = arith.mulf %627, %626 : vector<8x128xf32>
    %629 = math.tanh %628 : vector<8x128xf32>
    %cst_267 = arith.constant 5.000000e-01 : f32
    %630 = vector.broadcast %cst_267 : f32 to vector<8x128xf32>
    %631 = arith.mulf %630, %629 : vector<8x128xf32>
    %cst_268 = arith.constant 5.000000e-01 : f32
    %632 = vector.broadcast %cst_268 : f32 to vector<8x128xf32>
    %633 = arith.addf %631, %632 : vector<8x128xf32>
    %634 = vector.extract_strided_slice %617 {offsets = [0, 256], sizes = [8, 128], strides = [1, 1]} : vector<8x512xf32> to vector<8x128xf32>
    %635 = math.tanh %634 : vector<8x128xf32>
    %636 = vector.extract_strided_slice %617 {offsets = [0, 384], sizes = [8, 128], strides = [1, 1]} : vector<8x512xf32> to vector<8x128xf32>
    %cst_269 = arith.constant 5.000000e-01 : f32
    %637 = vector.broadcast %cst_269 : f32 to vector<8x128xf32>
    %638 = arith.mulf %637, %636 : vector<8x128xf32>
    %639 = math.tanh %638 : vector<8x128xf32>
    %cst_270 = arith.constant 5.000000e-01 : f32
    %640 = vector.broadcast %cst_270 : f32 to vector<8x128xf32>
    %641 = arith.mulf %640, %639 : vector<8x128xf32>
    %cst_271 = arith.constant 5.000000e-01 : f32
    %642 = vector.broadcast %cst_271 : f32 to vector<8x128xf32>
    %643 = arith.addf %641, %642 : vector<8x128xf32>
    %644 = arith.mulf %633, %565 : vector<8x128xf32>
    %645 = arith.mulf %625, %635 : vector<8x128xf32>
    %646 = arith.addf %644, %645 : vector<8x128xf32>
    %647 = math.tanh %646 : vector<8x128xf32>
    %648 = arith.mulf %643, %647 : vector<8x128xf32>
    %c0_272 = arith.constant 0 : index
    %c0_273 = arith.constant 0 : index
    %649 = vector.load %arg7[%c0_272, %c0_273] : memref<1x128xf32, #tpu.memory_space<vmem>>, vector<1x128xf32>
    %650 = vector.broadcast %649 : vector<1x128xf32> to vector<8x128xf32>
    %651 = arith.mulf %648, %650 : vector<8x128xf32>
    %cst_274 = arith.constant dense<0.000000e+00> : vector<8xf32>
    %652 = vector.multi_reduction <add>, %651, %cst_274 [1] : vector<8x128xf32> to vector<8xf32>
    %653 = vector.shape_cast %652 : vector<8xf32> to vector<8x1xf32>
    %c0_275 = arith.constant 0 : index
    %c0_276 = arith.constant 0 : index
    %654 = vector.load %arg8[%c0_275, %c0_276] : memref<1x1xf32, #tpu.memory_space<vmem>>, vector<1x1xf32>
    %655 = vector.broadcast %654 : vector<1x1xf32> to vector<8x1xf32>
    %656 = arith.addf %653, %655 : vector<8x1xf32>
    %c0_277 = arith.constant 0 : index
    %c0_278 = arith.constant 0 : index
    %657 = vector.load %arg9[%c0_277, %c0_278] : memref<8x1xf32, #tpu.memory_space<vmem>>, vector<8x1xf32>
    tpu.vector_store %arg9[%c0_277, %c0_278], %656 {strides = array<i32>} : memref<8x1xf32, #tpu.memory_space<vmem>>, vector<8x1xf32>,
    return
  }
}

</mosaic_0001>

<bundles_post_ra>
// kernel: lstm_model_forward.1
= control target key start
LH: loop header
LB: loop body
LE: loop exit
PB: predicated region body
PF: predicated region fallthrough
CT: control target
= control target key end

     0   :  { %s7441_s0 = inlined_call_operand.vmem [shape: f32[64,1], index: 0, kind: input, shape index: {}]   ;;  %s7442_s1 = inlined_call_operand.vmem [shape: f32[1,512], index: 1, kind: input, shape index: {}]   ;;  %s7443_s2 = inlined_call_operand.vmem [shape: f32[1,512], index: 2, kind: input, shape index: {}]   ;;  %s7444_s3 = inlined_call_operand.hbm [shape: f32[128,512], index: 3, kind: input, shape index: {}]   ;;  %s7445_s4 = inlined_call_operand.hbm [shape: f32[128,512], index: 4, kind: input, shape index: {}]   ;;  %s7446_s5 = inlined_call_operand.hbm [shape: f32[128,512], index: 5, kind: input, shape index: {}]   ;;  %s7447_s6 = inlined_call_operand.vmem [shape: f32[1,512], index: 6, kind: input, shape index: {}]   ;;  %s7448_s7 = inlined_call_operand.vmem [shape: f32[1,128], index: 7, kind: input, shape index: {}]   ;;  %s7449_s8 = inlined_call_operand.<no memory space> [shape: f32[1,1], index: 8, kind: input, shape index: {}]   ;;  %s7450_s9 = inlined_call_operand.vmem [shape: f32[8,1], index: 9, kind: output, shape index: {}]  }
   0x1   :  { %v14_v0 = vstv %s7449_s8 }
   0x2   :  { %15 = vst [vmem:[#allocation2] sm:$0x1] %v14_v0 }
   0x3   :  { %16 = vsyncpa [#allocation4], 0 }
   0x4   :  { %17 = vsyncpa [#allocation6], 0  ;;  %s6040_s11 = smov [#allocation5]   ;;  %s6041_s13 = smov [#allocation3]  }
   0x5   :  { %s41_s12 = sshll.u32 %s6040_s11, 4  ;;  %s29_s14 = sshll.u32 %s6041_s13, 4  ;;  %s42_s12 = int_to_ptr.vmem [resolvable:$true] %s41_s12  ;;  %s6100_s14 = int_to_ptr.vmem [resolvable:$true] %s29_s14 }
   0x6   :  { %s5970_s17 = scalar_lea.hbm %s7445_s4, 8192 }
   0x7   :  { %p5971_p0 = scmp.ne.s32.totalorder %s7445_s4, %s5970_s17  ;;  %p5974_p1 = scmp.lt.u32.totalorder %s5970_s17, %s7445_s4 }
   0x9   :  { %p5976_p2 = pnand %p5974_p1, %p5971_p0 }
   0xb   :  { %5979 = shalt.err (!%p5976_p2)
}
   0xc   :  { %s5980_s21 = scalar_lea.vmem %s42_s12, 8192  ;;  %p5985_p4 = scmp.lt.s32.totalorder %s42_s12, %s42_s12 }
   0xd   :  { %p5981_p3 = scmp.ne.s32.totalorder %s42_s12, %s5980_s21  ;;  %p5986_p5 = scmp.lt.s32.totalorder %s5980_s21, %s5980_s21 }
   0xf   :  { %p5987_p6 = por %p5986_p5, %p5985_p4 }
  0x11   :  { %p5988_p7 = pnand %p5987_p6, %p5981_p3 }
  0x13   :  { %5991 = shalt.err (!%p5988_p7)
}
  0x14   :  { %s6042_s22 = smov 512   ;;  %s6043_s23 = smov 32  }
  0x15   :  { %47 = dma.hbm_to_vmem [thread:$0]  %s7445_s4, 8192, %s42_s12, [#allocation6], %s6042_s22, %s6042_s22, %s6043_s23  }
  0x16   :  { %s5992_s28 = scalar_lea.hbm %s7444_s3, 8192 }
  0x17   :  { %p5993_p8 = scmp.ne.s32.totalorder %s7444_s3, %s5992_s28  ;;  %p5996_p9 = scmp.lt.u32.totalorder %s5992_s28, %s7444_s3 }
  0x19   :  { %p5998_p10 = pnand %p5996_p9, %p5993_p8 }
  0x1b   :  { %6001 = shalt.err (!%p5998_p10)
}
  0x1c   :  { %s6002_s13 = scalar_lea.vmem %s6100_s14, 8192  ;;  %p6007_p12 = scmp.lt.s32.totalorder %s6100_s14, %s6100_s14 }
  0x1d   :  { %p6003_p11 = scmp.ne.s32.totalorder %s6100_s14, %s6002_s13  ;;  %p6008_p13 = scmp.lt.s32.totalorder %s6002_s13, %s6002_s13 }
  0x1f   :  { %p6009_p0 = por %p6008_p13, %p6007_p12 }
  0x21   :  { %p6010_p1 = pnand %p6009_p0, %p6003_p11 }
  0x23   :  { %6013 = shalt.err (!%p6010_p1)
}
  0x24   :  { %35 = dma.hbm_to_vmem [thread:$0]  %s7444_s3, 8192, %s6100_s14, [#allocation4], %s6042_s22, %s6042_s22, %s6043_s23  }
  0x25   :  { %s6044_s15 = smov [#allocation7]   ;;  %s6014_s19 = scalar_lea.hbm %s7446_s5, 8192 }
  0x26   :  { %s53_s16 = sshll.u32 %s6044_s15, 4  ;;  %p6015_p2 = scmp.ne.s32.totalorder %s7446_s5, %s6014_s19  ;;  %s54_s16 = int_to_ptr.vmem [resolvable:$true] %s53_s16 }
  0x27   :  { %p6018_p3 = scmp.lt.u32.totalorder %s6014_s19, %s7446_s5 }
  0x29   :  { %p6020_p4 = pnand %p6018_p3, %p6015_p2 }
  0x2b   :  { %6023 = shalt.err (!%p6020_p4)
}
  0x2c   :  { %s6024_s25 = scalar_lea.vmem %s54_s16, 8192  ;;  %p6029_p6 = scmp.lt.s32.totalorder %s54_s16, %s54_s16 }
  0x2d   :  { %p6025_p5 = scmp.ne.s32.totalorder %s54_s16, %s6024_s25  ;;  %p6030_p7 = scmp.lt.s32.totalorder %s6024_s25, %s6024_s25 }
  0x2f   :  { %p6031_p8 = por %p6030_p7, %p6029_p6 }
  0x31   :  { %p6032_p9 = pnand %p6031_p8, %p6025_p5 }
  0x33   :  { %6035 = shalt.err (!%p6032_p9)
}
  0x34   :  { %59 = dma.hbm_to_vmem [thread:$0]  %s7446_s5, 8192, %s54_s16, [#allocation6], %s6042_s22, %s6042_s22, %s6043_s23  }
  0x35   :  { %6036 = dma.done.wait [#allocation4], 8192  }
  0x36   :  { %6037 = vsyncadd [#allocation4], 4294959104 }
  0x37   :  { %6038 = dma.done.wait [#allocation6], 16384  }
  0x38   :  { %6039 = vsyncadd [#allocation6], 4294950912  ;;  %v7451_v1 = vmov 0.0   ;;  %v6046_v2 = vmov 0   ;;  %v134_v3 = vld [vmem:[#allocation7 + $0x8] sm:$0xff]  ;;  %v136_v5 = vld [vmem:[#allocation7 + $0x18] sm:$0xff] }
  0x39   :  { %283 = vmatprep.mubr.f32.mxu0 %v7451_v1  ;;  %354 = vmatprep.mubr.f32.mxu1 %v7451_v1  ;;  %v138_v4 = vld [vmem:[#allocation7 + $0x28] sm:$0xff]  ;;  %v140_v7 = vld [vmem:[#allocation7 + $0x38] sm:$0xff]  ;;  %v133_v8 = vld [vmem:[#allocation7] sm:$0xff]  ;;  %vm4191_vm0 = vcmask 7168  }
  0x3a   :  { %5808 = vset.pattern.permute.xlu0 %v6046_v2  ;;  %5809 = vset.pattern.permute.xlu1 %v6046_v2  ;;  %v6154_v6 = vpack.c.bf16 %v138_v4, %v134_v3  ;;  %v137_v9 = vld [vmem:[#allocation7 + $0x20] sm:$0xff]  ;;  %v6156_v10 = vpack.c.bf16 %v140_v7, %v136_v5  ;;  %v135_v12 = vld [vmem:[#allocation7 + $0x10] sm:$0xff]  ;;  %v142_v14 = vld [vmem:[#allocation7 + $0x48] sm:$0xff] }
  0x3b   :  { %v6158_v11 = vpack.c.bf16 %v137_v9, %v133_v8  ;;  %v139_v13 = vld [vmem:[#allocation7 + $0x30] sm:$0xff]  ;;  %v146_v16 = vld [vmem:[#allocation7 + $0x68] sm:$0xff]  ;;  %v144_v17 = vld [vmem:[#allocation7 + $0x58] sm:$0xff] }
  0x3c   :  { %7597 = vst [vmem:[#allocation10_spill] sm:$0xff] %v6154_v6  ;;  %7598 = vst [vmem:[#allocation11_spill] sm:$0xff] %v6156_v10  ;;  %4202 = vmatprep.subr.bf16.mxu0 %v6154_v6  ;;  %v6161_v15 = vpack.c.bf16 %v139_v13, %v135_v12  ;;  %v148_v18 = vld [vmem:[#allocation7 + $0x78] sm:$0xff]  ;;  %4234 = vmatprep.subr.bf16.mxu1 %v6156_v10  ;;  %v6165_v19 = vpack.c.bf16 %v146_v16, %v142_v14  ;;  %v141_v21 = vld [vmem:[#allocation7 + $0x40] sm:$0xff] }
  0x3d   :  { %4204 = vmatpush1.bf16.msra.mxu0 %v6158_v11  ;;  %v6167_v20 = vpack.c.bf16 %v148_v18, %v144_v17  ;;  %v145_v22 = vld [vmem:[#allocation7 + $0x60] sm:$0xff]  ;;  %v143_v23 = vld [vmem:[#allocation7 + $0x50] sm:$0xff]  ;;  %v150_v26 = vld [vmem:[#allocation7 + $0x88] sm:$0xff] }
  0x3e   :  { %4236 = vmatpush1.bf16.msra.mxu1 %v6161_v15  ;;  %v6170_v24 = vpack.c.bf16 %v145_v22, %v141_v21  ;;  %v147_v25 = vld [vmem:[#allocation7 + $0x70] sm:$0xff]  ;;  %v154_v27 = vld [vmem:[#allocation7 + $0xa8] sm:$0xff]  ;;  %4206 = vmatprep.subr.bf16.mxu0 %v6165_v19  ;;  %v152_v30 = vld [vmem:[#allocation7 + $0x98] sm:$0xff] }
  0x3f   :  { %4238 = vmatprep.subr.bf16.mxu1 %v6167_v20  ;;  %v6174_v28 = vpack.c.bf16 %v147_v25, %v143_v23  ;;  %v6176_v29 = vpack.c.bf16 %v154_v27, %v150_v26  ;;  %v156_v31 = vld [vmem:[#allocation7 + $0xb8] sm:$0xff]  ;;  %v149_v32 = vld [vmem:[#allocation7 + $0x80] sm:$0xff]  ;;  %v151_v35 = vld [vmem:[#allocation7 + $0x90] sm:$0xff] }
  0x40   :  { %v6178_v33 = vpack.c.bf16 %v156_v31, %v152_v30  ;;  %v153_v34 = vld [vmem:[#allocation7 + $0xa0] sm:$0xff]  ;;  %v155_v36 = vld [vmem:[#allocation7 + $0xb0] sm:$0xff]  ;;  %v158_v38 = vld [vmem:[#allocation7 + $0xc8] sm:$0xff] }
  0x41   :  { %4208 = vmatpush1.bf16.msra.mxu0 %v6170_v24  ;;  %v6181_v37 = vpack.c.bf16 %v153_v34, %v149_v32  ;;  %v162_v39 = vld [vmem:[#allocation7 + $0xe8] sm:$0xff]  ;;  %v160_v40 = vld [vmem:[#allocation7 + $0xd8] sm:$0xff]  ;;  %v6185_v41 = vpack.c.bf16 %v155_v36, %v151_v35  ;;  %v157_v44 = vld [vmem:[#allocation7 + $0xc0] sm:$0xff] }
  0x42   :  { %4240 = vmatpush1.bf16.msra.mxu1 %v6174_v28  ;;  %4210 = vmatprep.subr.bf16.mxu0 %v6176_v29  ;;  %v6187_v42 = vpack.c.bf16 %v162_v39, %v158_v38  ;;  %v164_v43 = vld [vmem:[#allocation7 + $0xf8] sm:$0xff]  ;;  %v161_v45 = vld [vmem:[#allocation7 + $0xe0] sm:$0xff]  ;;  %v159_v47 = vld [vmem:[#allocation7 + $0xd0] sm:$0xff] }
  0x43   :  { %4242 = vmatprep.subr.bf16.mxu1 %v6178_v33  ;;  %v6190_v46 = vpack.c.bf16 %v164_v43, %v160_v40  ;;  %v163_v48 = vld [vmem:[#allocation7 + $0xf0] sm:$0xff]  ;;  %v166_v49 = vld [vmem:[#allocation7 + $0x108] sm:$0xff]  ;;  %v168_v51 = vld [vmem:[#allocation7 + $0x118] sm:$0xff]  ;;  %v6193_v53 = vpack.c.bf16 %v161_v45, %v157_v44 }
  0x44   :  { %v170_v50 = vld [vmem:[#allocation7 + $0x128] sm:$0xff]  ;;  %v172_v52 = vld [vmem:[#allocation7 + $0x138] sm:$0xff]  ;;  %v6197_v54 = vpack.c.bf16 %v163_v48, %v159_v47  ;;  %v165_v56 = vld [vmem:[#allocation7 + $0x100] sm:$0xff] }
  0x45   :  { %4212 = vmatpush1.bf16.msra.mxu0 %v6181_v37  ;;  %v6199_v55 = vpack.c.bf16 %v170_v50, %v166_v49  ;;  %v169_v57 = vld [vmem:[#allocation7 + $0x120] sm:$0xff]  ;;  %v167_v58 = vld [vmem:[#allocation7 + $0x110] sm:$0xff]  ;;  %v6202_v59 = vpack.c.bf16 %v172_v52, %v168_v51  ;;  %v174_v61 = vld [vmem:[#allocation7 + $0x148] sm:$0xff] }
  0x46   :  { %4244 = vmatpush1.bf16.msra.mxu1 %v6185_v41  ;;  %4214 = vmatprep.subr.bf16.mxu0 %v6187_v42  ;;  %v171_v60 = vld [vmem:[#allocation7 + $0x130] sm:$0xff]  ;;  %v178_v62 = vld [vmem:[#allocation7 + $0x168] sm:$0xff]  ;;  %v176_v63 = vld [vmem:[#allocation7 + $0x158] sm:$0xff]  ;;  %v6205_v2 = vpack.c.bf16 %v169_v57, %v165_v56 }
  0x47   :  { %4246 = vmatprep.subr.bf16.mxu1 %v6190_v46  ;;  %v180_v0 = vld [vmem:[#allocation7 + $0x178] sm:$0xff]  ;;  %v6209_v3 = vpack.c.bf16 %v171_v60, %v167_v58  ;;  %v6211_v4 = vpack.c.bf16 %v178_v62, %v174_v61  ;;  %v173_v5 = vld [vmem:[#allocation7 + $0x140] sm:$0xff]  ;;  %v175_v8 = vld [vmem:[#allocation7 + $0x150] sm:$0xff] }
  0x48   :  { %v177_v7 = vld [vmem:[#allocation7 + $0x160] sm:$0xff]  ;;  %v6214_v9 = vpack.c.bf16 %v180_v0, %v176_v63  ;;  %v179_v12 = vld [vmem:[#allocation7 + $0x170] sm:$0xff]  ;;  %v182_v13 = vld [vmem:[#allocation7 + $0x188] sm:$0xff] }
  0x49   :  { %4216 = vmatpush1.bf16.msra.mxu0 %v6193_v53  ;;  %v186_v14 = vld [vmem:[#allocation7 + $0x1a8] sm:$0xff]  ;;  %v184_v16 = vld [vmem:[#allocation7 + $0x198] sm:$0xff]  ;;  %v6217_v18 = vpack.c.bf16 %v177_v7, %v173_v5  ;;  %v6221_v21 = vpack.c.bf16 %v179_v12, %v175_v8  ;;  %v181_v23 = vld [vmem:[#allocation7 + $0x180] sm:$0xff] }
  0x4a   :  { %4248 = vmatpush1.bf16.msra.mxu1 %v6197_v54  ;;  %4218 = vmatprep.subr.bf16.mxu0 %v6199_v55  ;;  %v188_v17 = vld [vmem:[#allocation7 + $0x1b8] sm:$0xff]  ;;  %v6223_v22 = vpack.c.bf16 %v186_v14, %v182_v13  ;;  %v185_v25 = vld [vmem:[#allocation7 + $0x1a0] sm:$0xff]  ;;  %v183_v26 = vld [vmem:[#allocation7 + $0x190] sm:$0xff] }
  0x4b   :  { %4250 = vmatprep.subr.bf16.mxu1 %v6202_v59  ;;  %v6226_v27 = vpack.c.bf16 %v188_v17, %v184_v16  ;;  %v187_v30 = vld [vmem:[#allocation7 + $0x1b0] sm:$0xff]  ;;  %v190_v31 = vld [vmem:[#allocation7 + $0x1c8] sm:$0xff]  ;;  %v192_v34 = vld [vmem:[#allocation7 + $0x1d8] sm:$0xff]  ;;  %v6229_v36 = vpack.c.bf16 %v185_v25, %v181_v23 }
  0x4c   :  { %v194_v32 = vld [vmem:[#allocation7 + $0x1e8] sm:$0xff]  ;;  %v196_v35 = vld [vmem:[#allocation7 + $0x1f8] sm:$0xff]  ;;  %v6233_v38 = vpack.c.bf16 %v187_v30, %v183_v26  ;;  %v189_v40 = vld [vmem:[#allocation7 + $0x1c0] sm:$0xff] }
  0x4d   :  { %4220 = vmatpush1.bf16.msra.mxu0 %v6205_v2  ;;  %v6235_v39 = vpack.c.bf16 %v194_v32, %v190_v31  ;;  %v193_v43 = vld [vmem:[#allocation7 + $0x1e0] sm:$0xff]  ;;  %v191_v44 = vld [vmem:[#allocation7 + $0x1d0] sm:$0xff]  ;;  %v6238_v45 = vpack.c.bf16 %v196_v35, %v192_v34  ;;  %v362_v48 = vld [vmem:[#allocation3 + $0x8] sm:$0xff] }
  0x4e   :  { %4252 = vmatpush1.bf16.msra.mxu1 %v6209_v3  ;;  %4222 = vmatprep.subr.bf16.mxu0 %v6211_v4  ;;  %v195_v47 = vld [vmem:[#allocation7 + $0x1f0] sm:$0xff]  ;;  %v366_v49 = vld [vmem:[#allocation3 + $0x28] sm:$0xff]  ;;  %v364_v50 = vld [vmem:[#allocation3 + $0x18] sm:$0xff]  ;;  %v6241_v52 = vpack.c.bf16 %v193_v43, %v189_v40 }
  0x4f   :  { %4254 = vmatprep.subr.bf16.mxu1 %v6214_v9  ;;  %v368_v51 = vld [vmem:[#allocation3 + $0x38] sm:$0xff]  ;;  %v6245_v56 = vpack.c.bf16 %v195_v47, %v191_v44  ;;  %v6247_v57 = vpack.c.bf16 %v366_v49, %v362_v48  ;;  %v361_v58 = vld [vmem:[#allocation3] sm:$0xff]  ;;  %v363_v61 = vld [vmem:[#allocation3 + $0x10] sm:$0xff] }
  0x50   :  { %v365_v60 = vld [vmem:[#allocation3 + $0x20] sm:$0xff]  ;;  %v6250_v62 = vpack.c.bf16 %v368_v51, %v364_v50  ;;  %v367_v63 = vld [vmem:[#allocation3 + $0x30] sm:$0xff]  ;;  %v370_v0 = vld [vmem:[#allocation3 + $0x48] sm:$0xff] }
  0x51   :  { %4224 = vmatpush1.bf16.msra.mxu0 %v6217_v18  ;;  %v374_v5 = vld [vmem:[#allocation3 + $0x68] sm:$0xff]  ;;  %v372_v7 = vld [vmem:[#allocation3 + $0x58] sm:$0xff]  ;;  %v6253_v12 = vpack.c.bf16 %v365_v60, %v361_v58  ;;  %v6257_v13 = vpack.c.bf16 %v367_v63, %v363_v61  ;;  %v369_v16 = vld [vmem:[#allocation3 + $0x40] sm:$0xff] }
  0x52   :  { %4256 = vmatpush1.bf16.msra.mxu1 %v6221_v21  ;;  %4226 = vmatprep.subr.bf16.mxu0 %v6223_v22  ;;  %v376_v8 = vld [vmem:[#allocation3 + $0x78] sm:$0xff]  ;;  %v6259_v14 = vpack.c.bf16 %v374_v5, %v370_v0  ;;  %v373_v17 = vld [vmem:[#allocation3 + $0x60] sm:$0xff]  ;;  %v371_v23 = vld [vmem:[#allocation3 + $0x50] sm:$0xff] }
  0x53   :  { %4258 = vmatprep.subr.bf16.mxu1 %v6226_v27  ;;  %7599 = vst [vmem:[#allocation12_spill] sm:$0xff] %v6257_v13  ;;  %v6262_v25 = vpack.c.bf16 %v376_v8, %v372_v7  ;;  %v375_v26 = vld [vmem:[#allocation3 + $0x70] sm:$0xff]  ;;  %v378_v30 = vld [vmem:[#allocation3 + $0x88] sm:$0xff]  ;;  %v380_v32 = vld [vmem:[#allocation3 + $0x98] sm:$0xff]  ;;  %v6267_v35 = vpack.c.bf16 %v373_v17, %v369_v16 }
  0x54   :  { %7600 = vst [vmem:[#allocation13_spill] sm:$0xff] %v6259_v14  ;;  %v382_v31 = vld [vmem:[#allocation3 + $0xa8] sm:$0xff]  ;;  %v384_v34 = vld [vmem:[#allocation3 + $0xb8] sm:$0xff]  ;;  %v6271_v40 = vpack.c.bf16 %v375_v26, %v371_v23  ;;  %v377_v44 = vld [vmem:[#allocation3 + $0x80] sm:$0xff] }
  0x55   :  { %4228 = vmatpush1.bf16.msra.mxu0 %v6229_v36  ;;  %7601 = vst [vmem:[#allocation14_spill] sm:$0xff] %v6262_v25  ;;  %7602 = vst [vmem:[#allocation15_spill] sm:$0xff] %v6267_v35  ;;  %v6273_v43 = vpack.c.bf16 %v382_v31, %v378_v30  ;;  %v381_v47 = vld [vmem:[#allocation3 + $0xa0] sm:$0xff]  ;;  %v379_v48 = vld [vmem:[#allocation3 + $0x90] sm:$0xff]  ;;  %v6276_v49 = vpack.c.bf16 %v384_v34, %v380_v32 }
  0x56   :  { %4260 = vmatpush1.bf16.msra.mxu1 %v6233_v38  ;;  %4230 = vmatprep.subr.bf16.mxu0 %v6235_v39  ;;  %7603 = vst [vmem:[#allocation16_spill] sm:$0xff] %v6271_v40  ;;  %v383_v50 = vld [vmem:[#allocation3 + $0xb0] sm:$0xff]  ;;  %v386_v51 = vld [vmem:[#allocation3 + $0xc8] sm:$0xff]  ;;  %v388_v60 = vld [vmem:[#allocation3 + $0xd8] sm:$0xff]  ;;  %v6281_v63 = vpack.c.bf16 %v381_v47, %v377_v44 }
  0x57   :  { %4262 = vmatprep.subr.bf16.mxu1 %v6238_v45  ;;  %7604 = vst [vmem:[#allocation17_spill] sm:$0xff] %v6273_v43  ;;  %7605 = vst [vmem:[#allocation18_spill] sm:$0xff] %v6276_v49  ;;  %v390_v58 = vld [vmem:[#allocation3 + $0xe8] sm:$0xff]  ;;  %v392_v61 = vld [vmem:[#allocation3 + $0xf8] sm:$0xff]  ;;  %v6285_v5 = vpack.c.bf16 %v383_v50, %v379_v48 }
  0x58   :  { %7606 = vst [vmem:[#allocation19_spill] sm:$0xff] %v6281_v63  ;;  %v385_v0 = vld [vmem:[#allocation3 + $0xc0] sm:$0xff]  ;;  %v6287_v7 = vpack.c.bf16 %v390_v58, %v386_v51  ;;  %v387_v16 = vld [vmem:[#allocation3 + $0xd0] sm:$0xff]  ;;  %v6290_v23 = vpack.c.bf16 %v392_v61, %v388_v60  ;;  %v394_v26 = vld [vmem:[#allocation3 + $0x108] sm:$0xff] }
  0x59   :  { %4232 = vmatpush1.bf16.msra.mxu0 %v6241_v52  ;;  %7607 = vst [vmem:[#allocation20_spill] sm:$0xff] %v6285_v5  ;;  %v389_v8 = vld [vmem:[#allocation3 + $0xe0] sm:$0xff]  ;;  %v391_v17 = vld [vmem:[#allocation3 + $0xf0] sm:$0xff]  ;;  %v398_v30 = vld [vmem:[#allocation3 + $0x128] sm:$0xff] }
  0x5a   :  { %4264 = vmatpush1.bf16.msra.mxu1 %v6245_v56  ;;  %4266 = vmatprep.subr.bf16.mxu0 %v6247_v57  ;;  %7608 = vst [vmem:[#allocation21_spill] sm:$0xff] %v6287_v7  ;;  %7609 = vst [vmem:[#allocation22_spill] sm:$0xff] %v6290_v23  ;;  %v75_v31 = vld [vmem:[%s7441_s0] sm:$0xff]  ;;  %v6296_v44 = vpack.c.bf16 %v389_v8, %v385_v0  ;;  %v813_v47 = vld [vmem:[%s7441_s0 + $0x8] sm:$0xff]  ;;  %v6303_v48 = vpack.c.bf16 %v391_v17, %v387_v16 }
  0x5b   :  { %4298 = vmatprep.subr.bf16.mxu1 %v6250_v62  ;;  %v396_v32 = vld [vmem:[#allocation3 + $0x118] sm:$0xff]  ;;  %79 = vperm.xlu0 %5808, %v75_v31   ;;  %v6305_v50 = vpack.c.bf16 %v398_v30, %v394_v26  ;;  %v393_v51 = vld [vmem:[#allocation3 + $0x100] sm:$0xff]  ;;  %v395_v60 = vld [vmem:[#allocation3 + $0x110] sm:$0xff] }
  0x5c   :  { %284 = vmatmul.mubr.f32.vlgmr.msra.gmra.mrb[0].mxu0 %v7451_v1  ;;  %v400_v34 = vld [vmem:[#allocation3 + $0x138] sm:$0xff]  ;;  %7610 = vst [vmem:[#allocation23_spill] sm:$0xff] %v6296_v44  ;;  %7611 = vst [vmem:[#allocation24_spill] sm:$0xff] %v6303_v48  ;;  %v397_v58 = vld [vmem:[#allocation3 + $0x120] sm:$0xff] }
  0x5d   :  { %355 = vmatmul.mubr.f32.vlgmr.msra.gmra.mrb[0].mxu1 %v7451_v1  ;;  %4268 = vmatpush1.bf16.msra.mxu0 %v6253_v12  ;;  %7612 = vst [vmem:[#allocation25_spill] sm:$0xff] %v6305_v50  ;;  %v6308_v61 = vpack.c.bf16 %v400_v34, %v396_v32  ;;  %v399_v0 = vld [vmem:[#allocation3 + $0x130] sm:$0xff]  ;;  %v402_v8 = vld [vmem:[#allocation3 + $0x148] sm:$0xff]  ;;  %v2253_v16 = vld [vmem:[%s7441_s0 + $0x20] sm:$0xff] }
  0x5e   :  { %4300 = vmatpush1.bf16.msra.mxu1 %v6257_v13  ;;  %4270 = vmatprep.subr.bf16.mxu0 %v6259_v14  ;;  %v406_v31 = vld [vmem:[#allocation3 + $0x168] sm:$0xff]  ;;  %v6318_v17 = vpack.c.bf16 %v399_v0, %v395_v60  ;;  %v401_v30 = vld [vmem:[#allocation3 + $0x140] sm:$0xff]  ;;  %v403_v34 = vld [vmem:[#allocation3 + $0x150] sm:$0xff] }
  0x5f   :  { %4302 = vmatprep.subr.bf16.mxu1 %v6262_v25  ;;  %489 = vmatprep.mubr.f32.mxu0 %v7451_v1  ;;  %7613 = vst [vmem:[#allocation26_spill] sm:$0xff] %v6308_v61  ;;  %v6320_v26 = vpack.c.bf16 %v406_v31, %v402_v8  ;;  %v405_v32 = vld [vmem:[#allocation3 + $0x160] sm:$0xff]  ;;  %v3213_v60 = vld [vmem:[%s7441_s0 + $0x30] sm:$0xff] }
  0x60   :  { %560 = vmatprep.mubr.f32.mxu1 %v7451_v1  ;;  %v404_v1 = vld [vmem:[#allocation3 + $0x158] sm:$0xff]  ;;  %816 = vperm.xlu0 %5808, %v813_v47   ;;  %7615 = vst [vmem:[#allocation28_spill] sm:$0xff] %v6318_v17  ;;  %v409_v0 = vld [vmem:[#allocation3 + $0x180] sm:$0xff]  ;;  %v411_v31 = vld [vmem:[#allocation3 + $0x190] sm:$0xff] }
  0x61   :  { %4272 = vmatpush1.bf16.msra.mxu0 %v6267_v35  ;;  %7616 = vst [vmem:[#allocation29_spill] sm:$0xff] %v6320_v26  ;;  %v413_v8 = vld [vmem:[#allocation3 + $0x1a0] sm:$0xff] }
  0x62   :  { %4304 = vmatpush1.bf16.msra.mxu1 %v6271_v40  ;;  %4274 = vmatprep.subr.bf16.mxu0 %v6273_v43 }
  0x63   :  { %4306 = vmatprep.subr.bf16.mxu1 %v6276_v49 }
  0x64   :  { %2256 = vperm.xlu0 %5808, %v2253_v16  }
  0x65   :  { %4276 = vmatpush1.bf16.msra.mxu0 %v6281_v63  ;;  %v408_v63 = vld [vmem:[#allocation3 + $0x178] sm:$0xff] }
  0x66   :  { %4308 = vmatpush1.bf16.msra.mxu1 %v6285_v5  ;;  %4278 = vmatprep.subr.bf16.mxu0 %v6287_v7  ;;  %v6311_v7 = vpack.c.bf16 %v397_v58, %v393_v51  ;;  %v6323_v47 = vpack.c.bf16 %v408_v63, %v404_v1  ;;  %v407_v51 = vld [vmem:[#allocation3 + $0x170] sm:$0xff]  ;;  %v410_v58 = vld [vmem:[#allocation3 + $0x188] sm:$0xff]  ;;  %v416_v5 = vld [vmem:[#allocation3 + $0x1b8] sm:$0xff] }
  0x67   :  { %4310 = vmatprep.subr.bf16.mxu1 %v6290_v23  ;;  %v412_v23 = vld [vmem:[#allocation3 + $0x198] sm:$0xff]  ;;  %v6333_v1 = vpack.c.bf16 %v407_v51, %v403_v34 }
  0x68   :  { %7614 = vst [vmem:[#allocation27_spill] sm:$0xff] %v6311_v7  ;;  %7617 = vst [vmem:[#allocation30_spill] sm:$0xff] %v6323_v47  ;;  %v6338_v16 = vpack.c.bf16 %v416_v5, %v412_v23  ;;  %3216 = vperm.xlu0 %5808, %v3213_v60   ;;  %v417_v5 = vld [vmem:[#allocation3 + $0x1c0] sm:$0xff]  ;;  %v423_v60 = vld [vmem:[#allocation3 + $0x1f0] sm:$0xff] }
  0x69   :  { %4280 = vmatpush1.bf16.msra.mxu0 %v6296_v44  ;;  %v414_v44 = vld [vmem:[#allocation3 + $0x1a8] sm:$0xff]  ;;  %7619 = vst [vmem:[#allocation32_spill] sm:$0xff] %v6333_v1  ;;  %v421_v23 = vld [vmem:[#allocation3 + $0x1e0] sm:$0xff] }
  0x6a   :  { %4312 = vmatpush1.bf16.msra.mxu1 %v6303_v48  ;;  %4282 = vmatprep.subr.bf16.mxu0 %v6305_v50  ;;  %v6326_v50 = vpack.c.bf16 %v405_v32, %v401_v30  ;;  %v6335_v63 = vpack.c.bf16 %v414_v44, %v410_v58  ;;  %7621 = vst [vmem:[#allocation34_spill] sm:$0xff] %v6338_v16  ;;  %v415_v30 = vld [vmem:[#allocation3 + $0x1b0] sm:$0xff]  ;;  %v418_v32 = vld [vmem:[#allocation3 + $0x1c8] sm:$0xff]  ;;  %v424_v48 = vld [vmem:[#allocation3 + $0x1f8] sm:$0xff] }
  0x6b   :  { %4314 = vmatprep.subr.bf16.mxu1 %v6308_v61  ;;  %v420_v61 = vld [vmem:[#allocation3 + $0x1d8] sm:$0xff]  ;;  %v6345_v44 = vpack.c.bf16 %v415_v30, %v411_v31  ;;  %v419_v58 = vld [vmem:[#allocation3 + $0x1d0] sm:$0xff] }
  0x6c   :  { %7618 = vst [vmem:[#allocation31_spill] sm:$0xff] %v6326_v50  ;;  %7620 = vst [vmem:[#allocation33_spill] sm:$0xff] %v6335_v63  ;;  %v6350_v51 = vpack.c.bf16 %v424_v48, %v420_v61  ;;  %v586_v48 = vld [vmem:[#allocation5 + $0x8] sm:$0xff]  ;;  %v588_v31 = vld [vmem:[#allocation5 + $0x18] sm:$0xff] }
  0x6d   :  { %4284 = vmatpush1.bf16.msra.mxu0 %v6311_v7  ;;  %v422_v7 = vld [vmem:[#allocation3 + $0x1e8] sm:$0xff]  ;;  %7623 = vst [vmem:[#allocation36_spill] sm:$0xff] %v6345_v44 }
  0x6e   :  { %4316 = vmatpush1.bf16.msra.mxu1 %v6318_v17  ;;  %4286 = vmatprep.subr.bf16.mxu0 %v6320_v26  ;;  %v6341_v26 = vpack.c.bf16 %v413_v8, %v409_v0  ;;  %v6347_v34 = vpack.c.bf16 %v422_v7, %v418_v32  ;;  %7625 = vst [vmem:[#allocation38_spill] sm:$0xff] %v6350_v51  ;;  %v7628_v7 = vmov 0.0   ;;  %v590_v61 = vld [vmem:[#allocation5 + $0x28] sm:$0xff]  ;;  %v592_v32 = vld [vmem:[#allocation5 + $0x38] sm:$0xff] }
  0x6f   :  { %4318 = vmatprep.subr.bf16.mxu1 %v6323_v47  ;;  %v6353_v0 = vpack.c.bf16 %v421_v23, %v417_v5  ;;  %v6357_v8 = vpack.c.bf16 %v423_v60, %v419_v58  ;;  %v6366_v30 = vpack.c.bf16 %v590_v61, %v586_v48  ;;  %v585_v5 = vld [vmem:[#allocation5] sm:$0xff]  ;;  %v6368_v58 = vpack.c.bf16 %v592_v32, %v588_v31  ;;  %v598_v48 = vld [vmem:[#allocation5 + $0x68] sm:$0xff]  ;;  %v596_v61 = vld [vmem:[#allocation5 + $0x58] sm:$0xff] }
  0x70   :  { %7622 = vst [vmem:[#allocation35_spill] sm:$0xff] %v6341_v26  ;;  %7624 = vst [vmem:[#allocation37_spill] sm:$0xff] %v6347_v34  ;;  %v589_v23 = vld [vmem:[#allocation5 + $0x20] sm:$0xff]  ;;  %v600_v31 = vld [vmem:[#allocation5 + $0x78] sm:$0xff] }
  0x71   :  { %4288 = vmatpush1.bf16.msra.mxu0 %v6326_v50  ;;  %7626 = vst [vmem:[#allocation39_spill] sm:$0xff] %v6353_v0  ;;  %7627 = vst [vmem:[#allocation40_spill] sm:$0xff] %v6357_v8  ;;  %v6370_v60 = vpack.c.bf16 %v589_v23, %v585_v5  ;;  %v593_v32 = vld [vmem:[#allocation5 + $0x40] sm:$0xff]  ;;  %v6380_v23 = vpack.c.bf16 %v600_v31, %v596_v61  ;;  %v608_v61 = vld [vmem:[#allocation5 + $0xb8] sm:$0xff] }
  0x72   :  { %4320 = vmatpush1.bf16.msra.mxu1 %v6333_v1  ;;  %4290 = vmatprep.subr.bf16.mxu0 %v6335_v63  ;;  %7629 = vst [vmem:[#allocation41_spill] sm:$0xff] %v6366_v30  ;;  %7630 = vst [vmem:[#allocation42_spill] sm:$0xff] %v6368_v58  ;;  %v597_v5 = vld [vmem:[#allocation5 + $0x60] sm:$0xff] }
  0x73   :  { %4322 = vmatprep.subr.bf16.mxu1 %v6338_v16  ;;  %7631 = vst [vmem:[#allocation43_spill] sm:$0xff] %v6370_v60  ;;  %7634 = vst [vmem:[#allocation46_spill] sm:$0xff] %v6380_v23  ;;  %v601_v31 = vld [vmem:[#allocation5 + $0x80] sm:$0xff] }
  0x75   :  { %4292 = vmatpush1.bf16.msra.mxu0 %v6341_v26  ;;  %v6382_v26 = vpack.c.bf16 %v597_v5, %v593_v32  ;;  %v605_v32 = vld [vmem:[#allocation5 + $0xa0] sm:$0xff] }
  0x76   :  { %4324 = vmatpush1.bf16.msra.mxu1 %v6345_v44  ;;  %4294 = vmatprep.subr.bf16.mxu0 %v6347_v34  ;;  %v594_v34 = vld [vmem:[#allocation5 + $0x48] sm:$0xff] }
  0x77   :  { %4326 = vmatprep.subr.bf16.mxu1 %v6350_v51  ;;  %v6378_v44 = vpack.c.bf16 %v598_v48, %v594_v34  ;;  %7635 = vst [vmem:[#allocation47_spill] sm:$0xff] %v6382_v26  ;;  %v606_v34 = vld [vmem:[#allocation5 + $0xa8] sm:$0xff]  ;;  %v604_v48 = vld [vmem:[#allocation5 + $0x98] sm:$0xff] }
  0x78   :  { %v6392_v5 = vpack.c.bf16 %v608_v61, %v604_v48  ;;  %v616_v48 = vld [vmem:[#allocation5 + $0xf8] sm:$0xff]  ;;  %v609_v61 = vld [vmem:[#allocation5 + $0xc0] sm:$0xff] }
  0x79   :  { %4296 = vmatpush1.bf16.msra.mxu0 %v6353_v0  ;;  %v591_v0 = vld [vmem:[#allocation5 + $0x30] sm:$0xff]  ;;  %7633 = vst [vmem:[#allocation45_spill] sm:$0xff] %v6378_v44 }
  0x7a   :  { %4328 = vmatpush1.bf16.msra.mxu1 %v6357_v8  ;;  %v587_v8 = vld [vmem:[#allocation5 + $0x10] sm:$0xff]  ;;  %4330 = vmatprep.subr.bf16.mxu0 %v6366_v30  ;;  %7638 = vst [vmem:[#allocation50_spill] sm:$0xff] %v6392_v5  ;;  %v6394_v30 = vpack.c.bf16 %v605_v32, %v601_v31  ;;  %v613_v31 = vld [vmem:[#allocation5 + $0xe0] sm:$0xff] }
  0x7b   :  { %v6373_v51 = vpack.c.bf16 %v591_v0, %v587_v8  ;;  %4362 = vmatprep.subr.bf16.mxu1 %v6368_v58  ;;  %v595_v0 = vld [vmem:[#allocation5 + $0x50] sm:$0xff] }
  0x7c   :  { %490 = vmatmul.mubr.f32.vlgmr.msra.gmra.mrb[2].mxu0 %v7628_v7  ;;  %v599_v8 = vld [vmem:[#allocation5 + $0x70] sm:$0xff]  ;;  %7639 = vst [vmem:[#allocation51_spill] sm:$0xff] %v6394_v30 }
  0x7d   :  { %561 = vmatmul.mubr.f32.vlgmr.msra.gmra.mrb[2].mxu1 %v7628_v7  ;;  %713 = vmatprep.mubr.f32.mxu0 %v7628_v7  ;;  %7632 = vst [vmem:[#allocation44_spill] sm:$0xff] %v6373_v51  ;;  %v6385_v58 = vpack.c.bf16 %v599_v8, %v595_v0  ;;  %v603_v0 = vld [vmem:[#allocation5 + $0x90] sm:$0xff] }
  0x7e   :  { %784 = vmatprep.mubr.f32.mxu1 %v7628_v7  ;;  %4332 = vmatpush1.bf16.msra.mxu0 %v6370_v60  ;;  %v607_v8 = vld [vmem:[#allocation5 + $0xb0] sm:$0xff] }
  0x7f   :  { %4364 = vmatpush1.bf16.msra.mxu1 %v6373_v51  ;;  %4334 = vmatprep.subr.bf16.mxu0 %v6378_v44  ;;  %7636 = vst [vmem:[#allocation48_spill] sm:$0xff] %v6385_v58  ;;  %v602_v51 = vld [vmem:[#allocation5 + $0x88] sm:$0xff]  ;;  %v6406_v44 = vpack.c.bf16 %v613_v31, %v609_v61 }
  0x80   :  { %4366 = vmatprep.subr.bf16.mxu1 %v6380_v23  ;;  %v6390_v60 = vpack.c.bf16 %v606_v34, %v602_v51  ;;  %v6397_v23 = vpack.c.bf16 %v607_v8, %v603_v0  ;;  %v614_v51 = vld [vmem:[#allocation5 + $0xe8] sm:$0xff]  ;;  %v612_v34 = vld [vmem:[#allocation5 + $0xd8] sm:$0xff]  ;;  %v611_v0 = vld [vmem:[#allocation5 + $0xd0] sm:$0xff] }
  0x81   :  { %v6404_v32 = vpack.c.bf16 %v616_v48, %v612_v34  ;;  %7643 = vst [vmem:[#allocation55_spill] sm:$0xff] %v6406_v44  ;;  %v615_v8 = vld [vmem:[#allocation5 + $0xf0] sm:$0xff]  ;;  %v617_v34 = vld [vmem:[#allocation5 + $0x100] sm:$0xff] }
  0x82   :  { %4336 = vmatpush1.bf16.msra.mxu0 %v6382_v26  ;;  %7637 = vst [vmem:[#allocation49_spill] sm:$0xff] %v6390_v60  ;;  %7640 = vst [vmem:[#allocation52_spill] sm:$0xff] %v6397_v23  ;;  %v621_v48 = vld [vmem:[#allocation5 + $0x120] sm:$0xff] }
  0x83   :  { %4368 = vmatpush1.bf16.msra.mxu1 %v6385_v58  ;;  %4338 = vmatprep.subr.bf16.mxu0 %v6390_v60  ;;  %v610_v58 = vld [vmem:[#allocation5 + $0xc8] sm:$0xff]  ;;  %7642 = vst [vmem:[#allocation54_spill] sm:$0xff] %v6404_v32  ;;  %v6418_v60 = vpack.c.bf16 %v621_v48, %v617_v34  ;;  %v627_v48 = vld [vmem:[#allocation5 + $0x150] sm:$0xff] }
  0x84   :  { %4370 = vmatprep.subr.bf16.mxu1 %v6392_v5  ;;  %v6402_v26 = vpack.c.bf16 %v614_v51, %v610_v58  ;;  %v6409_v5 = vpack.c.bf16 %v615_v8, %v611_v0  ;;  %v622_v58 = vld [vmem:[#allocation5 + $0x128] sm:$0xff]  ;;  %v620_v51 = vld [vmem:[#allocation5 + $0x118] sm:$0xff]  ;;  %v619_v0 = vld [vmem:[#allocation5 + $0x110] sm:$0xff] }
  0x85   :  { %7647 = vst [vmem:[#allocation59_spill] sm:$0xff] %v6418_v60  ;;  %v623_v8 = vld [vmem:[#allocation5 + $0x130] sm:$0xff] }
  0x86   :  { %4340 = vmatpush1.bf16.msra.mxu0 %v6394_v30  ;;  %7641 = vst [vmem:[#allocation53_spill] sm:$0xff] %v6402_v26  ;;  %7644 = vst [vmem:[#allocation56_spill] sm:$0xff] %v6409_v5  ;;  %v624_v30 = vld [vmem:[#allocation5 + $0x138] sm:$0xff] }
  0x87   :  { %4372 = vmatpush1.bf16.msra.mxu1 %v6397_v23  ;;  %4342 = vmatprep.subr.bf16.mxu0 %v6402_v26  ;;  %v618_v23 = vld [vmem:[#allocation5 + $0x108] sm:$0xff]  ;;  %v6416_v31 = vpack.c.bf16 %v624_v30, %v620_v51  ;;  %v625_v30 = vld [vmem:[#allocation5 + $0x140] sm:$0xff] }
  0x88   :  { %4374 = vmatprep.subr.bf16.mxu1 %v6404_v32  ;;  %v6414_v61 = vpack.c.bf16 %v622_v58, %v618_v23  ;;  %v626_v32 = vld [vmem:[#allocation5 + $0x148] sm:$0xff]  ;;  %v632_v23 = vld [vmem:[#allocation5 + $0x178] sm:$0xff]  ;;  %v629_v58 = vld [vmem:[#allocation5 + $0x160] sm:$0xff] }
  0x89   :  { %7646 = vst [vmem:[#allocation58_spill] sm:$0xff] %v6416_v31  ;;  %v630_v26 = vld [vmem:[#allocation5 + $0x168] sm:$0xff]  ;;  %v6430_v34 = vpack.c.bf16 %v629_v58, %v625_v30 }
  0x8a   :  { %4344 = vmatpush1.bf16.msra.mxu0 %v6406_v44  ;;  %7645 = vst [vmem:[#allocation57_spill] sm:$0xff] %v6414_v61  ;;  %v6422_v44 = vpack.c.bf16 %v623_v8, %v619_v0  ;;  %v6425_v16 = vpack.c.bf16 %v630_v26, %v626_v32  ;;  %v634_v8 = vld [vmem:[#allocation5 + $0x188] sm:$0xff]  ;;  %v636_v32 = vld [vmem:[#allocation5 + $0x198] sm:$0xff] }
  0x8b   :  { %4376 = vmatpush1.bf16.msra.mxu1 %v6409_v5  ;;  %4346 = vmatprep.subr.bf16.mxu0 %v6414_v61  ;;  %v628_v5 = vld [vmem:[#allocation5 + $0x158] sm:$0xff]  ;;  %7651 = vst [vmem:[#allocation63_spill] sm:$0xff] %v6430_v34  ;;  %v638_v26 = vld [vmem:[#allocation5 + $0x1a8] sm:$0xff] }
  0x8c   :  { %4378 = vmatprep.subr.bf16.mxu1 %v6416_v31  ;;  %7648 = vst [vmem:[#allocation60_spill] sm:$0xff] %v6422_v44  ;;  %7649 = vst [vmem:[#allocation61_spill] sm:$0xff] %v6425_v16  ;;  %v6428_v51 = vpack.c.bf16 %v632_v23, %v628_v5  ;;  %v631_v31 = vld [vmem:[#allocation5 + $0x170] sm:$0xff]  ;;  %v633_v5 = vld [vmem:[#allocation5 + $0x180] sm:$0xff] }
  0x8d   :  { %v6433_v0 = vpack.c.bf16 %v631_v31, %v627_v48  ;;  %v637_v23 = vld [vmem:[#allocation5 + $0x1a0] sm:$0xff]  ;;  %v635_v31 = vld [vmem:[#allocation5 + $0x190] sm:$0xff] }
  0x8e   :  { %4348 = vmatpush1.bf16.msra.mxu0 %v6418_v60  ;;  %7650 = vst [vmem:[#allocation62_spill] sm:$0xff] %v6428_v51  ;;  %v6437_v60 = vpack.c.bf16 %v638_v26, %v634_v8  ;;  %v6442_v58 = vpack.c.bf16 %v637_v23, %v633_v5  ;;  %v639_v48 = vld [vmem:[#allocation5 + $0x1b0] sm:$0xff]  ;;  %v646_v8 = vld [vmem:[#allocation5 + $0x1e8] sm:$0xff]  ;;  %v644_v26 = vld [vmem:[#allocation5 + $0x1d8] sm:$0xff] }
  0x8f   :  { %4380 = vmatpush1.bf16.msra.mxu1 %v6422_v44  ;;  %4350 = vmatprep.subr.bf16.mxu0 %v6425_v16  ;;  %7652 = vst [vmem:[#allocation64_spill] sm:$0xff] %v6433_v0  ;;  %v640_v44 = vld [vmem:[#allocation5 + $0x1b8] sm:$0xff] }
  0x90   :  { %4382 = vmatprep.subr.bf16.mxu1 %v6428_v51  ;;  %7653 = vst [vmem:[#allocation65_spill] sm:$0xff] %v6437_v60  ;;  %v6440_v30 = vpack.c.bf16 %v640_v44, %v636_v32  ;;  %7655 = vst [vmem:[#allocation67_spill] sm:$0xff] %v6442_v58  ;;  %v6445_v51 = vpack.c.bf16 %v639_v48, %v635_v31  ;;  %v641_v44 = vld [vmem:[#allocation5 + $0x1c0] sm:$0xff]  ;;  %v643_v31 = vld [vmem:[#allocation5 + $0x1d0] sm:$0xff] }
  0x91   :  { %v645_v32 = vld [vmem:[#allocation5 + $0x1e0] sm:$0xff]  ;;  %v647_v48 = vld [vmem:[#allocation5 + $0x1f0] sm:$0xff] }
  0x92   :  { %4352 = vmatpush1.bf16.msra.mxu0 %v6430_v34  ;;  %7654 = vst [vmem:[#allocation66_spill] sm:$0xff] %v6440_v30  ;;  %7656 = vst [vmem:[#allocation68_spill] sm:$0xff] %v6445_v51  ;;  %v642_v34 = vld [vmem:[#allocation5 + $0x1c8] sm:$0xff]  ;;  %v6454_v23 = vpack.c.bf16 %v645_v32, %v641_v44 }
  0x93   :  { %4384 = vmatpush1.bf16.msra.mxu1 %v6433_v0  ;;  %4354 = vmatprep.subr.bf16.mxu0 %v6437_v60  ;;  %v6449_v16 = vpack.c.bf16 %v646_v8, %v642_v34  ;;  %v648_v0 = vld [vmem:[#allocation5 + $0x1f8] sm:$0xff]  ;;  %v83_v34 = vlaneseq }
  0x94   :  { %4386 = vmatprep.subr.bf16.mxu1 %v6440_v30  ;;  %v6452_v5 = vpack.c.bf16 %v648_v0, %v644_v26  ;;  %7659 = vst [vmem:[#allocation71_spill] sm:$0xff] %v6454_v23  ;;  %v6457_v30 = vpack.c.bf16 %v647_v48, %v643_v31  ;;  %v76_v26 = vld [vmem:[%s7442_s1] sm:$0xf] }
  0x95   :  { %7657 = vst [vmem:[#allocation69_spill] sm:$0xff] %v6449_v16  ;;  %v84_v0 = vshrl.u32 %v83_v34, 7  ;;  %v107_v48 = vld [vmem:[%s7443_s2] sm:$0xf] }
  0x96   :  { %4356 = vmatpush1.bf16.msra.mxu0 %v6442_v58  ;;  %7658 = vst [vmem:[#allocation70_spill] sm:$0xff] %v6452_v5  ;;  %7660 = vst [vmem:[#allocation72_spill] sm:$0xff] %v6457_v30 }
  0x97   :  { %4388 = vmatpush1.bf16.msra.mxu1 %v6445_v51  ;;  %4358 = vmatprep.subr.bf16.mxu0 %v6449_v16  ;;  %v6464_v8 = vsub.s32 0, %v84_v0  ;;  %v6469_v44 = vsub.s32 1, %v84_v0  ;;  %v6474_v31 = vsub.s32 2, %v84_v0 }
  0x98   :  { %4390 = vmatprep.subr.bf16.mxu1 %v6452_v5  ;;  %v6489_v5 = vsub.s32 3, %v84_v0 }
  0x99   :  { %v6472_v32 = vrot.slane %v76_v26, %v6464_v8  ;;  %v6493_v51 = vrot.slane %v107_v48, %v6469_v44  ;;  %v6498_v61 = vrot.slane %v107_v48, %v6474_v31 }
  0x9a   :  { %4360 = vmatpush1.bf16.msra.mxu0 %v6454_v23  ;;  %v6487_v23 = vrot.slane %v76_v26, %v6474_v31 }
  0x9b   :  { %4392 = vmatpush1.bf16.msra.mxu1 %v6457_v30  ;;  %4394 = vmatprep.subr.bf16.mxu0 %v6154_v6  ;;  %7661 = vst [vmem:[#allocation73_spill] sm:$0xff] %v6472_v32  ;;  %v6484_v30 = vrot.slane %v107_v48, %v6464_v8  ;;  %7665 = vst [vmem:[#allocation77_spill] sm:$0xff] %v6493_v51 }
  0x9c   :  { %4426 = vmatprep.subr.bf16.mxu1 %v6156_v10  ;;  %v6480_v10 = vrot.slane %v76_v26, %v6469_v44  ;;  %7664 = vst [vmem:[#allocation76_spill] sm:$0xff] %v6487_v23  ;;  %7666 = vst [vmem:[#allocation78_spill] sm:$0xff] %v6498_v61 }
  0x9d   :  { %7663 = vst [vmem:[#allocation75_spill] sm:$0xff] %v6484_v30 }
  0x9e   :  { %7662 = vst [vmem:[#allocation74_spill] sm:$0xff] %v6480_v10 }
  0xda   :  { %v80_v34 = vpop.permute.xlu0 %79 }
  0xdb   :  { %v103_v6 = vmul.f32 %v6472_v32, %v80_v34  ;;  %v104_v16 = vmul.f32 %v6480_v10, %v80_v34  ;;  %v105_v60 = vmul.f32 %v6487_v23, %v80_v34  ;;  %v6501_v32 = vrot.slane %v76_v26, %v6489_v5 }
  0xdd   :  { %v129_v58 = vadd.f32 %v6484_v30, %v103_v6  ;;  %7667 = vst [vmem:[#allocation79_spill] sm:$0xff] %v6501_v32  ;;  %v130_v63 = vadd.f32 %v6493_v51, %v104_v16  ;;  %v131_v50 = vadd.f32 %v6498_v61, %v105_v60  ;;  %v106_v17 = vmul.f32 %v6501_v32, %v80_v34 }
  0xde   :  { %v6507_v6 = vrot.slane %v107_v48, %v6489_v5 }
  0xe0   :  { %v132_v40 = vadd.f32 %v6507_v6, %v106_v17  ;;  %v197_v17 = vld [vmem:[%s7447_s6] sm:$0xf] }
 0x14f   :  { %v491_v1 = vpop.f32.mrb[2].mxu0 }
 0x150   :  { %v492_v0 = vadd.f32 %v491_v1, %v129_v58  ;;  %v562_v10 = vpop.f32.mrb[2].mxu1  ;;  %v493_v47 = vpop.f32.mrb[3].mxu0 }
 0x151   :  { %v494_v23 = vadd.f32 %v493_v47, %v130_v63  ;;  %v564_v30 = vpop.f32.mrb[3].mxu1  ;;  %v563_v26 = vadd.f32 %v562_v10, %v131_v50 }
 0x152   :  { %v567_v49 = vmul.f32 0.5, %v492_v0  ;;  %v565_v1 = vadd.f32 %v564_v30, %v132_v40 }
 0x153   :  { %v571_v43 = vmul.f32 0.5, %v494_v23 }
 0x154   :  { %5810 = vtanh.f32 %v567_v49  ;;  %v576_v16 = vmul.f32 0.5, %v565_v1 }
 0x155   :  { %5812 = vtanh.f32 %v571_v43 }
 0x156   :  { %5814 = vtanh.f32 %v563_v26  ;;  %v6562_v26 = vrot.slane %v197_v17, %v6474_v31 }
 0x157   :  { %5816 = vtanh.f32 %v576_v16 }
 0x15e   :  { %v5811_v60 = vpop.eup %5810 }
 0x15f   :  { %v5813_v58 = vpop.eup %5812  ;;  %v569_v61 = vmul.f32 0.5, %v5811_v60 }
 0x160   :  { %v573_v51 = vmul.f32 0.5, %v5813_v58  ;;  %v5815_v48 = vpop.eup %5814 }
 0x161   :  { %v570_v34 = vadd.f32 0.5, %v569_v61  ;;  %v5817_v10 = vpop.eup %5816  ;;  %v6555_v61 = vrot.slane %v197_v17, %v6464_v8 }
 0x162   :  { %v574_v32 = vadd.f32 0.5, %v573_v51  ;;  %v578_v49 = vmul.f32 0.5, %v5817_v10  ;;  %v6558_v51 = vrot.slane %v197_v17, %v6469_v44 }
 0x163   :  { %v581_v47 = vmul.f32 %v5815_v48, %v570_v34  ;;  %v6567_v48 = vrot.slane %v197_v17, %v6489_v5 }
 0x164   :  { %v580_v63 = vmul.f32 0.0, %v574_v32  ;;  %v579_v43 = vadd.f32 0.5, %v578_v49 }
 0x166   :  { %v6510_v0 = vadd.f32 %v581_v47, %v580_v63 }
 0x168   :  { %5818 = vtanh.f32 %v6510_v0 }
 0x172   :  { %v5819_v50 = vpop.eup %5818 }
 0x173   :  { %v6513_v40 = vmul.f32 %v5819_v50, %v579_v43 }
 0x175   :  { %714 = vmatmul.mubr.f32.vlgmr.msra.gmra.mrb[0].mxu0 %v6513_v40  ;;  %785 = vmatmul.mubr.f32.vlgmr.msra.gmra.mrb[0].mxu1 %v6513_v40 }
 0x176   :  { %4396 = vmatpush1.bf16.msra.mxu0 %v6158_v11  ;;  %4428 = vmatpush1.bf16.msra.mxu1 %v6161_v15 }
 0x177   :  { %4398 = vmatprep.subr.bf16.mxu0 %v6165_v19  ;;  %4430 = vmatprep.subr.bf16.mxu1 %v6167_v20 }
 0x178   :  { %891 = vmatprep.mubr.f32.mxu0 %v7628_v7  ;;  %962 = vmatprep.mubr.f32.mxu1 %v7628_v7 }
 0x17a   :  { %4400 = vmatpush1.bf16.msra.mxu0 %v6170_v24  ;;  %4432 = vmatpush1.bf16.msra.mxu1 %v6174_v28 }
 0x17b   :  { %4402 = vmatprep.subr.bf16.mxu0 %v6176_v29  ;;  %4434 = vmatprep.subr.bf16.mxu1 %v6178_v33 }
 0x17e   :  { %4404 = vmatpush1.bf16.msra.mxu0 %v6181_v37  ;;  %4436 = vmatpush1.bf16.msra.mxu1 %v6185_v41 }
 0x17f   :  { %4406 = vmatprep.subr.bf16.mxu0 %v6187_v42  ;;  %4438 = vmatprep.subr.bf16.mxu1 %v6190_v46 }
 0x182   :  { %4408 = vmatpush1.bf16.msra.mxu0 %v6193_v53  ;;  %4440 = vmatpush1.bf16.msra.mxu1 %v6197_v54 }
 0x183   :  { %4410 = vmatprep.subr.bf16.mxu0 %v6199_v55  ;;  %4442 = vmatprep.subr.bf16.mxu1 %v6202_v59 }
 0x186   :  { %4412 = vmatpush1.bf16.msra.mxu0 %v6205_v2  ;;  %4444 = vmatpush1.bf16.msra.mxu1 %v6209_v3 }
 0x187   :  { %4414 = vmatprep.subr.bf16.mxu0 %v6211_v4  ;;  %4446 = vmatprep.subr.bf16.mxu1 %v6214_v9 }
 0x18a   :  { %4416 = vmatpush1.bf16.msra.mxu0 %v6217_v18  ;;  %4448 = vmatpush1.bf16.msra.mxu1 %v6221_v21 }
 0x18b   :  { %4418 = vmatprep.subr.bf16.mxu0 %v6223_v22  ;;  %4450 = vmatprep.subr.bf16.mxu1 %v6226_v27 }
 0x18e   :  { %4420 = vmatpush1.bf16.msra.mxu0 %v6229_v36  ;;  %4452 = vmatpush1.bf16.msra.mxu1 %v6233_v38 }
 0x18f   :  { %4422 = vmatprep.subr.bf16.mxu0 %v6235_v39  ;;  %4454 = vmatprep.subr.bf16.mxu1 %v6238_v45 }
 0x192   :  { %4424 = vmatpush1.bf16.msra.mxu0 %v6241_v52  ;;  %4456 = vmatpush1.bf16.msra.mxu1 %v6245_v56 }
 0x193   :  { %4458 = vmatprep.subr.bf16.mxu0 %v6247_v57  ;;  %4490 = vmatprep.subr.bf16.mxu1 %v6250_v62 }
 0x248   :  { %v715_v30 = vpop.f32.mrb[0].mxu0  ;;  %v786_v23 = vpop.f32.mrb[0].mxu1 }
 0x249   :  { %v5737_v32 = vadd.f32 %v715_v30, %v6555_v61  ;;  %v717_v1 = vpop.f32.mrb[1].mxu0  ;;  %v788_v16 = vpop.f32.mrb[1].mxu1  ;;  %v5739_v8 = vadd.f32 %v786_v23, %v6562_v26 }
 0x24a   :  { %v5738_v60 = vadd.f32 %v717_v1, %v6558_v51  ;;  %v5740_v44 = vadd.f32 %v788_v16, %v6567_v48 }
 0x24b   :  { %v795_v58 = vmul.f32 0.5, %v5737_v32 }
 0x24c   :  { %v799_v34 = vmul.f32 0.5, %v5738_v60  ;;  %v804_v47 = vmul.f32 0.5, %v5740_v44  ;;  %v7670_v44 = vld [vmem:[#allocation18_spill] sm:$0xff] }
 0x24d   :  { %5820 = vtanh.f32 %v795_v58 }
 0x24e   :  { %5822 = vtanh.f32 %v799_v34  ;;  %v7668_v34 = vld [vmem:[#allocation16_spill] sm:$0xff] }
 0x24f   :  { %5824 = vtanh.f32 %v5739_v8  ;;  %v7669_v8 = vld [vmem:[#allocation17_spill] sm:$0xff] }
 0x250   :  { %5826 = vtanh.f32 %v804_v47  ;;  %v7671_v47 = vld [vmem:[#allocation19_spill] sm:$0xff] }
 0x257   :  { %v5821_v63 = vpop.eup %5820 }
 0x258   :  { %v5823_v31 = vpop.eup %5822  ;;  %v797_v10 = vmul.f32 0.5, %v5821_v63  ;;  %v7672_v63 = vld [vmem:[#allocation20_spill] sm:$0xff] }
 0x259   :  { %v801_v49 = vmul.f32 0.5, %v5823_v31  ;;  %v5825_v50 = vpop.eup %5824  ;;  %v7673_v31 = vld [vmem:[#allocation21_spill] sm:$0xff] }
 0x25a   :  { %v798_v43 = vadd.f32 0.5, %v797_v10  ;;  %v5827_v5 = vpop.eup %5826  ;;  %v7674_v10 = vld [vmem:[#allocation22_spill] sm:$0xff] }
 0x25b   :  { %v802_v30 = vadd.f32 0.5, %v801_v49  ;;  %v806_v17 = vmul.f32 0.5, %v5827_v5  ;;  %v7675_v49 = vld [vmem:[#allocation23_spill] sm:$0xff]  ;;  %v7681_v5 = vld [vmem:[#allocation29_spill] sm:$0xff] }
 0x25c   :  { %v809_v32 = vmul.f32 %v5825_v50, %v798_v43  ;;  %v7676_v43 = vld [vmem:[#allocation24_spill] sm:$0xff]  ;;  %v7677_v50 = vld [vmem:[#allocation25_spill] sm:$0xff] }
 0x25d   :  { %v808_v1 = vmul.f32 0.0, %v802_v30  ;;  %v807_v23 = vadd.f32 0.5, %v806_v17  ;;  %v7678_v30 = vld [vmem:[#allocation26_spill] sm:$0xff] }
 0x25e   :  { %v7682_v17 = vld [vmem:[#allocation30_spill] sm:$0xff] }
 0x25f   :  { %v6570_v60 = vadd.f32 %v809_v32, %v808_v1  ;;  %v7679_v32 = vld [vmem:[#allocation27_spill] sm:$0xff]  ;;  %v7680_v1 = vld [vmem:[#allocation28_spill] sm:$0xff] }
 0x261   :  { %5828 = vtanh.f32 %v6570_v60 }
 0x26b   :  { %v5829_v58 = vpop.eup %5828 }
 0x26c   :  { %v812_v16 = vmul.f32 %v5829_v58, %v807_v23  ;;  %v7683_v23 = vld [vmem:[#allocation31_spill] sm:$0xff]  ;;  %v7684_v58 = vld [vmem:[#allocation32_spill] sm:$0xff] }
 0x26e   :  { %892 = vmatmul.mubr.f32.vlgmr.msra.gmra.mrb[4].mxu0 %v812_v16  ;;  %963 = vmatmul.mubr.f32.vlgmr.msra.gmra.mrb[4].mxu1 %v812_v16  ;;  %v7685_v16 = vld [vmem:[#allocation33_spill] sm:$0xff] }
 0x26f   :  { %4460 = vmatpush1.bf16.msra.mxu0 %v6253_v12  ;;  %4492 = vmatpush1.bf16.msra.mxu1 %v6257_v13 }
 0x270   :  { %4462 = vmatprep.subr.bf16.mxu0 %v6259_v14  ;;  %4494 = vmatprep.subr.bf16.mxu1 %v6262_v25  ;;  %v7733_v25 = vld [vmem:[#allocation79_spill] sm:$0xff] }
 0x271   :  { %1033 = vmatprep.mubr.f32.mxu0 %v7628_v7  ;;  %1104 = vmatprep.mubr.f32.mxu1 %v7628_v7 }
 0x273   :  { %4464 = vmatpush1.bf16.msra.mxu0 %v6267_v35  ;;  %4496 = vmatpush1.bf16.msra.mxu1 %v7668_v34  ;;  %v7732_v35 = vld [vmem:[#allocation78_spill] sm:$0xff] }
 0x274   :  { %4466 = vmatprep.subr.bf16.mxu0 %v7669_v8  ;;  %4498 = vmatprep.subr.bf16.mxu1 %v7670_v44 }
 0x277   :  { %4468 = vmatpush1.bf16.msra.mxu0 %v7671_v47  ;;  %4500 = vmatpush1.bf16.msra.mxu1 %v7672_v63 }
 0x278   :  { %4470 = vmatprep.subr.bf16.mxu0 %v7673_v31  ;;  %4502 = vmatprep.subr.bf16.mxu1 %v7674_v10 }
 0x27b   :  { %4472 = vmatpush1.bf16.msra.mxu0 %v7675_v49  ;;  %4504 = vmatpush1.bf16.msra.mxu1 %v7676_v43  ;;  %v7686_v49 = vld [vmem:[#allocation34_spill] sm:$0xff]  ;;  %v7687_v43 = vld [vmem:[#allocation35_spill] sm:$0xff] }
 0x27c   :  { %4474 = vmatprep.subr.bf16.mxu0 %v7677_v50  ;;  %4506 = vmatprep.subr.bf16.mxu1 %v7678_v30  ;;  %v7688_v50 = vld [vmem:[#allocation36_spill] sm:$0xff]  ;;  %v7689_v30 = vld [vmem:[#allocation37_spill] sm:$0xff] }
 0x27f   :  { %4476 = vmatpush1.bf16.msra.mxu0 %v7679_v32  ;;  %4508 = vmatpush1.bf16.msra.mxu1 %v7680_v1  ;;  %v7690_v32 = vld [vmem:[#allocation38_spill] sm:$0xff]  ;;  %v7691_v1 = vld [vmem:[#allocation39_spill] sm:$0xff] }
 0x280   :  { %4478 = vmatprep.subr.bf16.mxu0 %v7681_v5  ;;  %4510 = vmatprep.subr.bf16.mxu1 %v7682_v17  ;;  %v7692_v5 = vld [vmem:[#allocation40_spill] sm:$0xff]  ;;  %v7693_v17 = vld [vmem:[#allocation41_spill] sm:$0xff] }
 0x283   :  { %4480 = vmatpush1.bf16.msra.mxu0 %v7683_v23  ;;  %4512 = vmatpush1.bf16.msra.mxu1 %v7684_v58  ;;  %v7694_v23 = vld [vmem:[#allocation42_spill] sm:$0xff] }
 0x284   :  { %4482 = vmatprep.subr.bf16.mxu0 %v7685_v16  ;;  %4514 = vmatprep.subr.bf16.mxu1 %v7686_v49  ;;  %v7695_v49 = vld [vmem:[#allocation43_spill] sm:$0xff]  ;;  %v7709_v16 = vld [vmem:[#allocation57_spill] sm:$0xff] }
 0x287   :  { %4484 = vmatpush1.bf16.msra.mxu0 %v7687_v43  ;;  %4516 = vmatpush1.bf16.msra.mxu1 %v7688_v50  ;;  %v7696_v43 = vld [vmem:[#allocation44_spill] sm:$0xff]  ;;  %v7697_v50 = vld [vmem:[#allocation45_spill] sm:$0xff] }
 0x288   :  { %4486 = vmatprep.subr.bf16.mxu0 %v7689_v30  ;;  %4518 = vmatprep.subr.bf16.mxu1 %v7690_v32  ;;  %v7698_v30 = vld [vmem:[#allocation46_spill] sm:$0xff]  ;;  %v7708_v32 = vld [vmem:[#allocation56_spill] sm:$0xff] }
 0x28b   :  { %4488 = vmatpush1.bf16.msra.mxu0 %v7691_v1  ;;  %4520 = vmatpush1.bf16.msra.mxu1 %v7692_v5  ;;  %v7699_v5 = vld [vmem:[#allocation47_spill] sm:$0xff]  ;;  %v7702_v1 = vld [vmem:[#allocation50_spill] sm:$0xff] }
 0x28c   :  { %4522 = vmatprep.subr.bf16.mxu0 %v7693_v17  ;;  %4554 = vmatprep.subr.bf16.mxu1 %v7694_v23  ;;  %v7700_v17 = vld [vmem:[#allocation48_spill] sm:$0xff]  ;;  %v7701_v23 = vld [vmem:[#allocation49_spill] sm:$0xff] }
 0x28e   :  { %1034 = vmatmul.mubr.f32.vlgmr.msra.gmra.mrb[6].mxu0 %v6513_v40  ;;  %1105 = vmatmul.mubr.f32.vlgmr.msra.gmra.mrb[6].mxu1 %v6513_v40  ;;  %v7703_v40 = vld [vmem:[#allocation51_spill] sm:$0xff] }
 0x28f   :  { %4524 = vmatpush1.bf16.msra.mxu0 %v7695_v49  ;;  %4556 = vmatpush1.bf16.msra.mxu1 %v7696_v43  ;;  %v7704_v49 = vld [vmem:[#allocation52_spill] sm:$0xff]  ;;  %v7705_v43 = vld [vmem:[#allocation53_spill] sm:$0xff] }
 0x290   :  { %4526 = vmatprep.subr.bf16.mxu0 %v7697_v50  ;;  %4558 = vmatprep.subr.bf16.mxu1 %v7698_v30  ;;  %v7706_v50 = vld [vmem:[#allocation54_spill] sm:$0xff]  ;;  %v7707_v30 = vld [vmem:[#allocation55_spill] sm:$0xff] }
 0x291   :  { %1193 = vmatprep.mubr.f32.mxu0 %v7628_v7  ;;  %1264 = vmatprep.mubr.f32.mxu1 %v7628_v7 }
 0x293   :  { %4528 = vmatpush1.bf16.msra.mxu0 %v7699_v5  ;;  %4560 = vmatpush1.bf16.msra.mxu1 %v7700_v17  ;;  %v7710_v5 = vld [vmem:[#allocation58_spill] sm:$0xff]  ;;  %v7711_v17 = vld [vmem:[#allocation59_spill] sm:$0xff] }
 0x294   :  { %4530 = vmatprep.subr.bf16.mxu0 %v7701_v23  ;;  %4562 = vmatprep.subr.bf16.mxu1 %v7702_v1  ;;  %v7712_v23 = vld [vmem:[#allocation60_spill] sm:$0xff]  ;;  %v7713_v1 = vld [vmem:[#allocation61_spill] sm:$0xff] }
 0x297   :  { %4532 = vmatpush1.bf16.msra.mxu0 %v7703_v40  ;;  %4564 = vmatpush1.bf16.msra.mxu1 %v7704_v49  ;;  %v7714_v40 = vld [vmem:[#allocation62_spill] sm:$0xff]  ;;  %v7715_v49 = vld [vmem:[#allocation63_spill] sm:$0xff] }
 0x298   :  { %4534 = vmatprep.subr.bf16.mxu0 %v7705_v43  ;;  %4566 = vmatprep.subr.bf16.mxu1 %v7706_v50  ;;  %v7716_v43 = vld [vmem:[#allocation64_spill] sm:$0xff]  ;;  %v7717_v50 = vld [vmem:[#allocation65_spill] sm:$0xff] }
 0x29b   :  { %4536 = vmatpush1.bf16.msra.mxu0 %v7707_v30  ;;  %4568 = vmatpush1.bf16.msra.mxu1 %v7708_v32  ;;  %v7718_v30 = vld [vmem:[#allocation66_spill] sm:$0xff]  ;;  %v7719_v32 = vld [vmem:[#allocation67_spill] sm:$0xff] }
 0x29c   :  { %4538 = vmatprep.subr.bf16.mxu0 %v7709_v16  ;;  %4570 = vmatprep.subr.bf16.mxu1 %v7710_v5  ;;  %v7720_v16 = vld [vmem:[#allocation68_spill] sm:$0xff]  ;;  %v7721_v5 = vld [vmem:[#allocation69_spill] sm:$0xff] }
 0x29f   :  { %4540 = vmatpush1.bf16.msra.mxu0 %v7711_v17  ;;  %4572 = vmatpush1.bf16.msra.mxu1 %v7712_v23  ;;  %v7722_v17 = vld [vmem:[#allocation70_spill] sm:$0xff]  ;;  %v7723_v23 = vld [vmem:[#allocation71_spill] sm:$0xff] }
 0x2a0   :  { %4542 = vmatprep.subr.bf16.mxu0 %v7713_v1  ;;  %4574 = vmatprep.subr.bf16.mxu1 %v7714_v40  ;;  %v7724_v1 = vld [vmem:[#allocation72_spill] sm:$0xff]  ;;  %v7725_v40 = vld [vmem:[#allocation10_spill] sm:$0xff] }
 0x2a3   :  { %4544 = vmatpush1.bf16.msra.mxu0 %v7715_v49  ;;  %4576 = vmatpush1.bf16.msra.mxu1 %v7716_v43  ;;  %v7726_v49 = vld [vmem:[#allocation11_spill] sm:$0xff]  ;;  %v817_v43 = vpop.permute.xlu0 %816 }
 0x2a4   :  { %4546 = vmatprep.subr.bf16.mxu0 %v7717_v50  ;;  %4578 = vmatprep.subr.bf16.mxu1 %v7718_v30  ;;  %v7727_v50 = vld [vmem:[#allocation73_spill] sm:$0xff]  ;;  %v7728_v30 = vld [vmem:[#allocation74_spill] sm:$0xff]  ;;  %v822_v14 = vmul.f32 %v817_v43, %v7733_v25 }
 0x2a5   :  { %v819_v58 = vmul.f32 %v817_v43, %v7727_v50  ;;  %v820_v10 = vmul.f32 %v817_v43, %v7728_v30 }
 0x2a7   :  { %4548 = vmatpush1.bf16.msra.mxu0 %v7719_v32  ;;  %4580 = vmatpush1.bf16.msra.mxu1 %v7720_v16  ;;  %v7729_v32 = vld [vmem:[#allocation75_spill] sm:$0xff]  ;;  %v7730_v16 = vld [vmem:[#allocation76_spill] sm:$0xff] }
 0x2a8   :  { %4550 = vmatprep.subr.bf16.mxu0 %v7721_v5  ;;  %4582 = vmatprep.subr.bf16.mxu1 %v7722_v17  ;;  %v823_v31 = vadd.f32 %v819_v58, %v7729_v32  ;;  %v821_v63 = vmul.f32 %v817_v43, %v7730_v16  ;;  %v7731_v17 = vld [vmem:[#allocation77_spill] sm:$0xff]  ;;  %v826_v58 = vadd.f32 %v822_v14, %v6507_v6 }
 0x2a9   :  { %v824_v44 = vadd.f32 %v820_v10, %v7731_v17 }
 0x2ab   :  { %4552 = vmatpush1.bf16.msra.mxu0 %v7723_v23  ;;  %4584 = vmatpush1.bf16.msra.mxu1 %v7724_v1 }
 0x2ac   :  { %4586 = vmatprep.subr.bf16.mxu0 %v7725_v40  ;;  %4618 = vmatprep.subr.bf16.mxu1 %v7726_v49  ;;  %v825_v49 = vadd.f32 %v821_v63, %v7732_v35 }
 0x361   :  { %v1035_v5 = vpop.f32.mrb[6].mxu0  ;;  %v1106_v47 = vpop.f32.mrb[6].mxu1 }
 0x362   :  { %v1036_v23 = vadd.f32 %v1035_v5, %v823_v31  ;;  %v1037_v8 = vpop.f32.mrb[7].mxu0  ;;  %v1108_v1 = vpop.f32.mrb[7].mxu1  ;;  %v1107_v30 = vadd.f32 %v1106_v47, %v825_v49 }
 0x363   :  { %v1038_v34 = vadd.f32 %v1037_v8, %v824_v44  ;;  %v1109_v16 = vadd.f32 %v1108_v1, %v826_v58  ;;  %v3693_v1 = vld [vmem:[%s7441_s0 + $0x38] sm:$0xff] }
 0x364   :  { %v1111_v40 = vmul.f32 0.5, %v1036_v23 }
 0x365   :  { %v1115_v50 = vmul.f32 0.5, %v1038_v34  ;;  %v1120_v32 = vmul.f32 0.5, %v1109_v16 }
 0x366   :  { %5830 = vtanh.f32 %v1111_v40 }
 0x367   :  { %5832 = vtanh.f32 %v1115_v50 }
 0x368   :  { %5834 = vtanh.f32 %v1107_v30 }
 0x369   :  { %5836 = vtanh.f32 %v1120_v32  ;;  %v2733_v32 = vld [vmem:[%s7441_s0 + $0x28] sm:$0xff] }
 0x370   :  { %v5831_v13 = vpop.eup %5830 }
 0x371   :  { %v5833_v10 = vpop.eup %5832  ;;  %v1113_v31 = vmul.f32 0.5, %v5831_v13  ;;  %v1293_v13 = vld [vmem:[%s7441_s0 + $0x10] sm:$0xff] }
 0x372   :  { %v1117_v5 = vmul.f32 0.5, %v5833_v10  ;;  %v5835_v44 = vpop.eup %5834  ;;  %1296 = vperm.xlu1 %5809, %v1293_v13  }
 0x373   :  { %v1114_v8 = vadd.f32 0.5, %v1113_v31  ;;  %v5837_v47 = vpop.eup %5836 }
 0x374   :  { %v1118_v23 = vadd.f32 0.5, %v1117_v5  ;;  %v1122_v14 = vmul.f32 0.5, %v5837_v47 }
 0x375   :  { %v1125_v63 = vmul.f32 %v5835_v44, %v1114_v8 }
 0x376   :  { %v1124_v43 = vmul.f32 %v1118_v23, %v6510_v0  ;;  %v1123_v49 = vadd.f32 0.5, %v1122_v14  ;;  %v1773_v0 = vld [vmem:[%s7441_s0 + $0x18] sm:$0xff] }
 0x377   :  { %1776 = vperm.xlu1 %5809, %v1773_v0  }
 0x378   :  { %v6652_v34 = vadd.f32 %v1125_v63, %v1124_v43 }
 0x37a   :  { %5838 = vtanh.f32 %v6652_v34 }
 0x37b   :  { %2736 = vperm.xlu1 %5809, %v2733_v32  }
 0x37f   :  { %3696 = vperm.xlu1 %5809, %v3693_v1  }
 0x384   :  { %v5839_v50 = vpop.eup %5838 }
 0x385   :  { %v6655_v30 = vmul.f32 %v5839_v50, %v1123_v49 }
 0x387   :  { %1194 = vmatmul.mubr.f32.vlgmr.msra.gmra.mrb[4].mxu0 %v6655_v30  ;;  %1265 = vmatmul.mubr.f32.vlgmr.msra.gmra.mrb[4].mxu1 %v6655_v30 }
 0x388   :  { %4588 = vmatpush1.bf16.msra.mxu0 %v6158_v11  ;;  %4620 = vmatpush1.bf16.msra.mxu1 %v6161_v15 }
 0x389   :  { %4590 = vmatprep.subr.bf16.mxu0 %v6165_v19  ;;  %4622 = vmatprep.subr.bf16.mxu1 %v6167_v20 }
 0x38a   :  { %1371 = vmatprep.mubr.f32.mxu0 %v7628_v7  ;;  %1442 = vmatprep.mubr.f32.mxu1 %v7628_v7 }
 0x38c   :  { %4592 = vmatpush1.bf16.msra.mxu0 %v6170_v24  ;;  %4624 = vmatpush1.bf16.msra.mxu1 %v6174_v28 }
 0x38d   :  { %4594 = vmatprep.subr.bf16.mxu0 %v6176_v29  ;;  %4626 = vmatprep.subr.bf16.mxu1 %v6178_v33 }
 0x390   :  { %4596 = vmatpush1.bf16.msra.mxu0 %v6181_v37  ;;  %4628 = vmatpush1.bf16.msra.mxu1 %v6185_v41 }
 0x391   :  { %4598 = vmatprep.subr.bf16.mxu0 %v6187_v42  ;;  %4630 = vmatprep.subr.bf16.mxu1 %v6190_v46 }
 0x394   :  { %4600 = vmatpush1.bf16.msra.mxu0 %v6193_v53  ;;  %4632 = vmatpush1.bf16.msra.mxu1 %v6197_v54 }
 0x395   :  { %4602 = vmatprep.subr.bf16.mxu0 %v6199_v55  ;;  %4634 = vmatprep.subr.bf16.mxu1 %v6202_v59 }
 0x398   :  { %4604 = vmatpush1.bf16.msra.mxu0 %v6205_v2  ;;  %4636 = vmatpush1.bf16.msra.mxu1 %v6209_v3 }
 0x399   :  { %4606 = vmatprep.subr.bf16.mxu0 %v6211_v4  ;;  %4638 = vmatprep.subr.bf16.mxu1 %v6214_v9 }
 0x39c   :  { %4608 = vmatpush1.bf16.msra.mxu0 %v6217_v18  ;;  %4640 = vmatpush1.bf16.msra.mxu1 %v6221_v21 }
 0x39d   :  { %4610 = vmatprep.subr.bf16.mxu0 %v6223_v22  ;;  %4642 = vmatprep.subr.bf16.mxu1 %v6226_v27 }
 0x3a0   :  { %4612 = vmatpush1.bf16.msra.mxu0 %v6229_v36  ;;  %4644 = vmatpush1.bf16.msra.mxu1 %v6233_v38 }
 0x3a1   :  { %4614 = vmatprep.subr.bf16.mxu0 %v6235_v39  ;;  %4646 = vmatprep.subr.bf16.mxu1 %v6238_v45 }
 0x3a4   :  { %4616 = vmatpush1.bf16.msra.mxu0 %v6241_v52  ;;  %4648 = vmatpush1.bf16.msra.mxu1 %v6245_v56 }
 0x3a5   :  { %4650 = vmatprep.subr.bf16.mxu0 %v6247_v57  ;;  %4682 = vmatprep.subr.bf16.mxu1 %v6250_v62 }
 0x45a   :  { %v1195_v16 = vpop.f32.mrb[4].mxu0  ;;  %v1266_v40 = vpop.f32.mrb[4].mxu1 }
 0x45b   :  { %v5741_v58 = vadd.f32 %v1195_v16, %v6555_v61  ;;  %v1197_v10 = vpop.f32.mrb[5].mxu0  ;;  %v1268_v31 = vpop.f32.mrb[5].mxu1  ;;  %v5743_v23 = vadd.f32 %v1266_v40, %v6562_v26 }
 0x45c   :  { %v5742_v5 = vadd.f32 %v1197_v10, %v6558_v51  ;;  %v5744_v63 = vadd.f32 %v1268_v31, %v6567_v48 }
 0x45d   :  { %v1275_v8 = vmul.f32 0.5, %v5741_v58 }
 0x45e   :  { %v1279_v44 = vmul.f32 0.5, %v5742_v5  ;;  %v1284_v43 = vmul.f32 0.5, %v5744_v63  ;;  %v7736_v63 = vld [vmem:[#allocation14_spill] sm:$0xff] }
 0x45f   :  { %5840 = vtanh.f32 %v1275_v8 }
 0x460   :  { %5842 = vtanh.f32 %v1279_v44  ;;  %v7734_v44 = vld [vmem:[#allocation12_spill] sm:$0xff] }
 0x461   :  { %5844 = vtanh.f32 %v5743_v23  ;;  %v7735_v23 = vld [vmem:[#allocation13_spill] sm:$0xff] }
 0x462   :  { %5846 = vtanh.f32 %v1284_v43  ;;  %v7738_v43 = vld [vmem:[#allocation16_spill] sm:$0xff] }
 0x469   :  { %v5841_v47 = vpop.eup %5840 }
 0x46a   :  { %v5843_v14 = vpop.eup %5842  ;;  %v1277_v49 = vmul.f32 0.5, %v5841_v47  ;;  %v7739_v47 = vld [vmem:[#allocation17_spill] sm:$0xff] }
 0x46b   :  { %v1281_v50 = vmul.f32 0.5, %v5843_v14  ;;  %v5845_v0 = vpop.eup %5844  ;;  %v7740_v14 = vld [vmem:[#allocation18_spill] sm:$0xff] }
 0x46c   :  { %v1278_v13 = vadd.f32 0.5, %v1277_v49  ;;  %v5847_v40 = vpop.eup %5846  ;;  %v7741_v49 = vld [vmem:[#allocation19_spill] sm:$0xff] }
 0x46d   :  { %v1282_v32 = vadd.f32 0.5, %v1281_v50  ;;  %v1286_v10 = vmul.f32 0.5, %v5847_v40  ;;  %v7742_v50 = vld [vmem:[#allocation20_spill] sm:$0xff]  ;;  %v7748_v40 = vld [vmem:[#allocation26_spill] sm:$0xff] }
 0x46e   :  { %v1289_v1 = vmul.f32 %v5845_v0, %v1278_v13  ;;  %v7743_v13 = vld [vmem:[#allocation21_spill] sm:$0xff]  ;;  %v7744_v0 = vld [vmem:[#allocation22_spill] sm:$0xff] }
 0x46f   :  { %v1288_v16 = vmul.f32 %v1282_v32, %v6570_v60  ;;  %v1287_v5 = vadd.f32 0.5, %v1286_v10  ;;  %v7737_v60 = vld [vmem:[#allocation15_spill] sm:$0xff] }
 0x470   :  { %v7745_v32 = vld [vmem:[#allocation23_spill] sm:$0xff] }
 0x471   :  { %v6710_v58 = vadd.f32 %v1289_v1, %v1288_v16  ;;  %v7746_v1 = vld [vmem:[#allocation24_spill] sm:$0xff]  ;;  %v7747_v16 = vld [vmem:[#allocation25_spill] sm:$0xff]  ;;  %v7749_v10 = vld [vmem:[#allocation27_spill] sm:$0xff] }
 0x473   :  { %5848 = vtanh.f32 %v6710_v58 }
 0x47d   :  { %v5849_v31 = vpop.eup %5848 }
 0x47e   :  { %v1292_v8 = vmul.f32 %v5849_v31, %v1287_v5  ;;  %v7750_v5 = vld [vmem:[#allocation28_spill] sm:$0xff]  ;;  %v7751_v31 = vld [vmem:[#allocation29_spill] sm:$0xff] }
 0x480   :  { %1372 = vmatmul.mubr.f32.vlgmr.msra.gmra.mrb[8].mxu0 %v1292_v8  ;;  %1443 = vmatmul.mubr.f32.vlgmr.msra.gmra.mrb[8].mxu1 %v1292_v8  ;;  %v7752_v8 = vld [vmem:[#allocation30_spill] sm:$0xff] }
 0x481   :  { %4652 = vmatpush1.bf16.msra.mxu0 %v6253_v12  ;;  %4684 = vmatpush1.bf16.msra.mxu1 %v7734_v44 }
 0x482   :  { %4654 = vmatprep.subr.bf16.mxu0 %v7735_v23  ;;  %4686 = vmatprep.subr.bf16.mxu1 %v7736_v63 }
 0x483   :  { %1513 = vmatprep.mubr.f32.mxu0 %v7628_v7  ;;  %1584 = vmatprep.mubr.f32.mxu1 %v7628_v7 }
 0x485   :  { %4656 = vmatpush1.bf16.msra.mxu0 %v7737_v60  ;;  %4688 = vmatpush1.bf16.msra.mxu1 %v7738_v43 }
 0x486   :  { %4658 = vmatprep.subr.bf16.mxu0 %v7739_v47  ;;  %4690 = vmatprep.subr.bf16.mxu1 %v7740_v14 }
 0x489   :  { %4660 = vmatpush1.bf16.msra.mxu0 %v7741_v49  ;;  %4692 = vmatpush1.bf16.msra.mxu1 %v7742_v50  ;;  %v7753_v50 = vld [vmem:[#allocation31_spill] sm:$0xff] }
 0x48a   :  { %4662 = vmatprep.subr.bf16.mxu0 %v7743_v13  ;;  %4694 = vmatprep.subr.bf16.mxu1 %v7744_v0  ;;  %v7754_v13 = vld [vmem:[#allocation32_spill] sm:$0xff]  ;;  %v7755_v0 = vld [vmem:[#allocation33_spill] sm:$0xff] }
 0x48d   :  { %4664 = vmatpush1.bf16.msra.mxu0 %v7745_v32  ;;  %4696 = vmatpush1.bf16.msra.mxu1 %v7746_v1  ;;  %v7756_v32 = vld [vmem:[#allocation34_spill] sm:$0xff]  ;;  %v7757_v1 = vld [vmem:[#allocation35_spill] sm:$0xff] }
 0x48e   :  { %4666 = vmatprep.subr.bf16.mxu0 %v7747_v16  ;;  %4698 = vmatprep.subr.bf16.mxu1 %v7748_v40  ;;  %v7758_v16 = vld [vmem:[#allocation36_spill] sm:$0xff]  ;;  %v7759_v40 = vld [vmem:[#allocation37_spill] sm:$0xff] }
 0x491   :  { %4668 = vmatpush1.bf16.msra.mxu0 %v7749_v10  ;;  %4700 = vmatpush1.bf16.msra.mxu1 %v7750_v5  ;;  %v7760_v10 = vld [vmem:[#allocation38_spill] sm:$0xff]  ;;  %v7761_v5 = vld [vmem:[#allocation39_spill] sm:$0xff] }
 0x492   :  { %4670 = vmatprep.subr.bf16.mxu0 %v7751_v31  ;;  %4702 = vmatprep.subr.bf16.mxu1 %v7752_v8  ;;  %v7762_v31 = vld [vmem:[#allocation40_spill] sm:$0xff]  ;;  %v7763_v8 = vld [vmem:[#allocation41_spill] sm:$0xff] }
 0x495   :  { %4672 = vmatpush1.bf16.msra.mxu0 %v7753_v50  ;;  %4704 = vmatpush1.bf16.msra.mxu1 %v7754_v13  ;;  %v7764_v50 = vld [vmem:[#allocation42_spill] sm:$0xff] }
 0x496   :  { %4674 = vmatprep.subr.bf16.mxu0 %v7755_v0  ;;  %4706 = vmatprep.subr.bf16.mxu1 %v7756_v32  ;;  %v7765_v32 = vld [vmem:[#allocation43_spill] sm:$0xff]  ;;  %v7779_v0 = vld [vmem:[#allocation57_spill] sm:$0xff] }
 0x499   :  { %4676 = vmatpush1.bf16.msra.mxu0 %v7757_v1  ;;  %4708 = vmatpush1.bf16.msra.mxu1 %v7758_v16  ;;  %v7766_v1 = vld [vmem:[#allocation44_spill] sm:$0xff]  ;;  %v7767_v16 = vld [vmem:[#allocation45_spill] sm:$0xff] }
 0x49a   :  { %4678 = vmatprep.subr.bf16.mxu0 %v7759_v40  ;;  %4710 = vmatprep.subr.bf16.mxu1 %v7760_v10  ;;  %v7768_v40 = vld [vmem:[#allocation46_spill] sm:$0xff]  ;;  %v7778_v10 = vld [vmem:[#allocation56_spill] sm:$0xff] }
 0x49d   :  { %4680 = vmatpush1.bf16.msra.mxu0 %v7761_v5  ;;  %4712 = vmatpush1.bf16.msra.mxu1 %v7762_v31  ;;  %v7769_v31 = vld [vmem:[#allocation47_spill] sm:$0xff]  ;;  %v7772_v5 = vld [vmem:[#allocation50_spill] sm:$0xff] }
 0x49e   :  { %4714 = vmatprep.subr.bf16.mxu0 %v7763_v8  ;;  %4746 = vmatprep.subr.bf16.mxu1 %v7764_v50  ;;  %v7770_v8 = vld [vmem:[#allocation48_spill] sm:$0xff]  ;;  %v7771_v50 = vld [vmem:[#allocation49_spill] sm:$0xff] }
 0x4a0   :  { %1514 = vmatmul.mubr.f32.vlgmr.msra.gmra.mrb[10].mxu0 %v6655_v30  ;;  %1585 = vmatmul.mubr.f32.vlgmr.msra.gmra.mrb[10].mxu1 %v6655_v30  ;;  %v7773_v30 = vld [vmem:[#allocation51_spill] sm:$0xff] }
 0x4a1   :  { %4716 = vmatpush1.bf16.msra.mxu0 %v7765_v32  ;;  %4748 = vmatpush1.bf16.msra.mxu1 %v7766_v1  ;;  %v7774_v32 = vld [vmem:[#allocation52_spill] sm:$0xff]  ;;  %v7775_v1 = vld [vmem:[#allocation53_spill] sm:$0xff] }
 0x4a2   :  { %4718 = vmatprep.subr.bf16.mxu0 %v7767_v16  ;;  %4750 = vmatprep.subr.bf16.mxu1 %v7768_v40  ;;  %v7776_v16 = vld [vmem:[#allocation54_spill] sm:$0xff]  ;;  %v7777_v40 = vld [vmem:[#allocation55_spill] sm:$0xff] }
 0x4a3   :  { %1673 = vmatprep.mubr.f32.mxu0 %v7628_v7  ;;  %1744 = vmatprep.mubr.f32.mxu1 %v7628_v7 }
 0x4a5   :  { %4720 = vmatpush1.bf16.msra.mxu0 %v7769_v31  ;;  %4752 = vmatpush1.bf16.msra.mxu1 %v7770_v8  ;;  %v7780_v31 = vld [vmem:[#allocation58_spill] sm:$0xff]  ;;  %v7781_v8 = vld [vmem:[#allocation59_spill] sm:$0xff] }
 0x4a6   :  { %4722 = vmatprep.subr.bf16.mxu0 %v7771_v50  ;;  %4754 = vmatprep.subr.bf16.mxu1 %v7772_v5  ;;  %v7782_v50 = vld [vmem:[#allocation60_spill] sm:$0xff]  ;;  %v7783_v5 = vld [vmem:[#allocation61_spill] sm:$0xff] }
 0x4a9   :  { %4724 = vmatpush1.bf16.msra.mxu0 %v7773_v30  ;;  %4756 = vmatpush1.bf16.msra.mxu1 %v7774_v32  ;;  %v7784_v30 = vld [vmem:[#allocation62_spill] sm:$0xff]  ;;  %v7785_v32 = vld [vmem:[#allocation63_spill] sm:$0xff] }
 0x4aa   :  { %4726 = vmatprep.subr.bf16.mxu0 %v7775_v1  ;;  %4758 = vmatprep.subr.bf16.mxu1 %v7776_v16  ;;  %v7786_v1 = vld [vmem:[#allocation64_spill] sm:$0xff]  ;;  %v7787_v16 = vld [vmem:[#allocation65_spill] sm:$0xff] }
 0x4ad   :  { %4728 = vmatpush1.bf16.msra.mxu0 %v7777_v40  ;;  %4760 = vmatpush1.bf16.msra.mxu1 %v7778_v10  ;;  %v7788_v40 = vld [vmem:[#allocation66_spill] sm:$0xff]  ;;  %v7789_v10 = vld [vmem:[#allocation67_spill] sm:$0xff] }
 0x4ae   :  { %4730 = vmatprep.subr.bf16.mxu0 %v7779_v0  ;;  %4762 = vmatprep.subr.bf16.mxu1 %v7780_v31  ;;  %v7790_v0 = vld [vmem:[#allocation68_spill] sm:$0xff]  ;;  %v7791_v31 = vld [vmem:[#allocation69_spill] sm:$0xff] }
 0x4b1   :  { %4732 = vmatpush1.bf16.msra.mxu0 %v7781_v8  ;;  %4764 = vmatpush1.bf16.msra.mxu1 %v7782_v50  ;;  %v7792_v8 = vld [vmem:[#allocation70_spill] sm:$0xff]  ;;  %v7793_v50 = vld [vmem:[#allocation71_spill] sm:$0xff] }
 0x4b2   :  { %4734 = vmatprep.subr.bf16.mxu0 %v7783_v5  ;;  %4766 = vmatprep.subr.bf16.mxu1 %v7784_v30  ;;  %v7794_v5 = vld [vmem:[#allocation72_spill] sm:$0xff]  ;;  %v7795_v30 = vld [vmem:[#allocation10_spill] sm:$0xff] }
 0x4b5   :  { %4736 = vmatpush1.bf16.msra.mxu0 %v7785_v32  ;;  %4768 = vmatpush1.bf16.msra.mxu1 %v7786_v1  ;;  %v7796_v32 = vld [vmem:[#allocation11_spill] sm:$0xff]  ;;  %v1297_v1 = vpop.permute.xlu1 %1296 }
 0x4b6   :  { %4738 = vmatprep.subr.bf16.mxu0 %v7787_v16  ;;  %4770 = vmatprep.subr.bf16.mxu1 %v7788_v40  ;;  %v7797_v16 = vld [vmem:[#allocation73_spill] sm:$0xff]  ;;  %v7798_v40 = vld [vmem:[#allocation74_spill] sm:$0xff] }
 0x4b7   :  { %v1299_v13 = vmul.f32 %v1297_v1, %v7797_v16  ;;  %v1300_v49 = vmul.f32 %v1297_v1, %v7798_v40 }
 0x4b9   :  { %4740 = vmatpush1.bf16.msra.mxu0 %v7789_v10  ;;  %4772 = vmatpush1.bf16.msra.mxu1 %v7790_v0  ;;  %v7799_v10 = vld [vmem:[#allocation75_spill] sm:$0xff]  ;;  %v7800_v0 = vld [vmem:[#allocation76_spill] sm:$0xff] }
 0x4ba   :  { %4742 = vmatprep.subr.bf16.mxu0 %v7791_v31  ;;  %4774 = vmatprep.subr.bf16.mxu1 %v7792_v8  ;;  %v1303_v14 = vadd.f32 %v1299_v13, %v7799_v10  ;;  %v1301_v47 = vmul.f32 %v1297_v1, %v7800_v0  ;;  %v1304_v31 = vadd.f32 %v1300_v49, %v7731_v17 }
 0x4bd   :  { %4744 = vmatpush1.bf16.msra.mxu0 %v7793_v50  ;;  %4776 = vmatpush1.bf16.msra.mxu1 %v7794_v5  ;;  %v1305_v5 = vadd.f32 %v1301_v47, %v7732_v35 }
 0x4be   :  { %4778 = vmatprep.subr.bf16.mxu0 %v7795_v30  ;;  %4810 = vmatprep.subr.bf16.mxu1 %v7796_v32  ;;  %v1302_v30 = vmul.f32 %v1297_v1, %v7733_v25 }
 0x4c0   :  { %v1306_v13 = vadd.f32 %v1302_v30, %v6507_v6 }
 0x573   :  { %v1515_v8 = vpop.f32.mrb[10].mxu0  ;;  %v1586_v43 = vpop.f32.mrb[10].mxu1 }
 0x574   :  { %v1516_v50 = vadd.f32 %v1515_v8, %v1303_v14  ;;  %v1517_v60 = vpop.f32.mrb[11].mxu0  ;;  %v1588_v32 = vpop.f32.mrb[11].mxu1  ;;  %v1587_v40 = vadd.f32 %v1586_v43, %v1305_v5 }
 0x575   :  { %v1518_v63 = vadd.f32 %v1517_v60, %v1304_v31  ;;  %v1589_v0 = vadd.f32 %v1588_v32, %v1306_v13 }
 0x576   :  { %v1591_v23 = vmul.f32 0.5, %v1516_v50 }
 0x577   :  { %v1595_v16 = vmul.f32 0.5, %v1518_v63  ;;  %v1600_v49 = vmul.f32 0.5, %v1589_v0 }
 0x578   :  { %5850 = vtanh.f32 %v1591_v23 }
 0x579   :  { %5852 = vtanh.f32 %v1595_v16 }
 0x57a   :  { %5854 = vtanh.f32 %v1587_v40 }
 0x57b   :  { %5856 = vtanh.f32 %v1600_v49 }
 0x582   :  { %v5851_v17 = vpop.eup %5850 }
 0x583   :  { %v5853_v10 = vpop.eup %5852  ;;  %v1593_v14 = vmul.f32 0.5, %v5851_v17 }
 0x584   :  { %v1597_v8 = vmul.f32 0.5, %v5853_v10  ;;  %v5855_v35 = vpop.eup %5854 }
 0x585   :  { %v1594_v47 = vadd.f32 0.5, %v1593_v14  ;;  %v5857_v23 = vpop.eup %5856 }
 0x586   :  { %v1598_v1 = vadd.f32 0.5, %v1597_v8  ;;  %v1602_v43 = vmul.f32 0.5, %v5857_v23 }
 0x587   :  { %v1605_v25 = vmul.f32 %v5855_v35, %v1594_v47 }
 0x588   :  { %v1604_v60 = vmul.f32 %v1598_v1, %v6652_v34  ;;  %v1603_v50 = vadd.f32 0.5, %v1602_v43 }
 0x58a   :  { %v6792_v63 = vadd.f32 %v1605_v25, %v1604_v60 }
 0x58c   :  { %5858 = vtanh.f32 %v6792_v63 }
 0x596   :  { %v5859_v32 = vpop.eup %5858 }
 0x597   :  { %v6795_v0 = vmul.f32 %v5859_v32, %v1603_v50 }
 0x599   :  { %1674 = vmatmul.mubr.f32.vlgmr.msra.gmra.mrb[8].mxu0 %v6795_v0  ;;  %1745 = vmatmul.mubr.f32.vlgmr.msra.gmra.mrb[8].mxu1 %v6795_v0 }
 0x59a   :  { %4780 = vmatpush1.bf16.msra.mxu0 %v6158_v11  ;;  %4812 = vmatpush1.bf16.msra.mxu1 %v6161_v15 }
 0x59b   :  { %4782 = vmatprep.subr.bf16.mxu0 %v6165_v19  ;;  %4814 = vmatprep.subr.bf16.mxu1 %v6167_v20 }
 0x59c   :  { %1851 = vmatprep.mubr.f32.mxu0 %v7628_v7  ;;  %1922 = vmatprep.mubr.f32.mxu1 %v7628_v7 }
 0x59e   :  { %4784 = vmatpush1.bf16.msra.mxu0 %v6170_v24  ;;  %4816 = vmatpush1.bf16.msra.mxu1 %v6174_v28 }
 0x59f   :  { %4786 = vmatprep.subr.bf16.mxu0 %v6176_v29  ;;  %4818 = vmatprep.subr.bf16.mxu1 %v6178_v33 }
 0x5a2   :  { %4788 = vmatpush1.bf16.msra.mxu0 %v6181_v37  ;;  %4820 = vmatpush1.bf16.msra.mxu1 %v6185_v41 }
 0x5a3   :  { %4790 = vmatprep.subr.bf16.mxu0 %v6187_v42  ;;  %4822 = vmatprep.subr.bf16.mxu1 %v6190_v46 }
 0x5a6   :  { %4792 = vmatpush1.bf16.msra.mxu0 %v6193_v53  ;;  %4824 = vmatpush1.bf16.msra.mxu1 %v6197_v54 }
 0x5a7   :  { %4794 = vmatprep.subr.bf16.mxu0 %v6199_v55  ;;  %4826 = vmatprep.subr.bf16.mxu1 %v6202_v59 }
 0x5aa   :  { %4796 = vmatpush1.bf16.msra.mxu0 %v6205_v2  ;;  %4828 = vmatpush1.bf16.msra.mxu1 %v6209_v3 }
 0x5ab   :  { %4798 = vmatprep.subr.bf16.mxu0 %v6211_v4  ;;  %4830 = vmatprep.subr.bf16.mxu1 %v6214_v9 }
 0x5ae   :  { %4800 = vmatpush1.bf16.msra.mxu0 %v6217_v18  ;;  %4832 = vmatpush1.bf16.msra.mxu1 %v6221_v21 }
 0x5af   :  { %4802 = vmatprep.subr.bf16.mxu0 %v6223_v22  ;;  %4834 = vmatprep.subr.bf16.mxu1 %v6226_v27 }
 0x5b2   :  { %4804 = vmatpush1.bf16.msra.mxu0 %v6229_v36  ;;  %4836 = vmatpush1.bf16.msra.mxu1 %v6233_v38 }
 0x5b3   :  { %4806 = vmatprep.subr.bf16.mxu0 %v6235_v39  ;;  %4838 = vmatprep.subr.bf16.mxu1 %v6238_v45 }
 0x5b6   :  { %4808 = vmatpush1.bf16.msra.mxu0 %v6241_v52  ;;  %4840 = vmatpush1.bf16.msra.mxu1 %v6245_v56 }
 0x5b7   :  { %4842 = vmatprep.subr.bf16.mxu0 %v6247_v57  ;;  %4874 = vmatprep.subr.bf16.mxu1 %v6250_v62 }
 0x66c   :  { %v1675_v25 = vpop.f32.mrb[8].mxu0  ;;  %v1746_v35 = vpop.f32.mrb[8].mxu1 }
 0x66d   :  { %v5745_v17 = vadd.f32 %v1675_v25, %v6555_v61  ;;  %v1677_v34 = vpop.f32.mrb[9].mxu0  ;;  %v1748_v16 = vpop.f32.mrb[9].mxu1  ;;  %v5747_v31 = vadd.f32 %v1746_v35, %v6562_v26 }
 0x66e   :  { %v5746_v40 = vadd.f32 %v1677_v34, %v6558_v51  ;;  %v5748_v30 = vadd.f32 %v1748_v16, %v6567_v48 }
 0x66f   :  { %v1755_v10 = vmul.f32 0.5, %v5745_v17 }
 0x670   :  { %v1759_v5 = vmul.f32 0.5, %v5746_v40  ;;  %v1764_v13 = vmul.f32 0.5, %v5748_v30  ;;  %v7801_v40 = vld [vmem:[#allocation13_spill] sm:$0xff]  ;;  %v7806_v30 = vld [vmem:[#allocation18_spill] sm:$0xff] }
 0x671   :  { %5860 = vtanh.f32 %v1755_v10  ;;  %v7802_v10 = vld [vmem:[#allocation14_spill] sm:$0xff] }
 0x672   :  { %5862 = vtanh.f32 %v1759_v5  ;;  %v7804_v5 = vld [vmem:[#allocation16_spill] sm:$0xff] }
 0x673   :  { %5864 = vtanh.f32 %v5747_v31  ;;  %v7805_v31 = vld [vmem:[#allocation17_spill] sm:$0xff] }
 0x674   :  { %5866 = vtanh.f32 %v1764_v13  ;;  %v7807_v13 = vld [vmem:[#allocation19_spill] sm:$0xff] }
 0x67b   :  { %v5861_v49 = vpop.eup %5860 }
 0x67c   :  { %v5863_v14 = vpop.eup %5862  ;;  %v1757_v8 = vmul.f32 0.5, %v5861_v49  ;;  %v7808_v49 = vld [vmem:[#allocation20_spill] sm:$0xff] }
 0x67d   :  { %v1761_v47 = vmul.f32 0.5, %v5863_v14  ;;  %v5865_v60 = vpop.eup %5864  ;;  %v7809_v14 = vld [vmem:[#allocation21_spill] sm:$0xff] }
 0x67e   :  { %v1758_v1 = vadd.f32 0.5, %v1757_v8  ;;  %v5867_v25 = vpop.eup %5866  ;;  %v7810_v8 = vld [vmem:[#allocation22_spill] sm:$0xff] }
 0x67f   :  { %v1762_v23 = vadd.f32 0.5, %v1761_v47  ;;  %v1766_v35 = vmul.f32 0.5, %v5867_v25  ;;  %v7811_v47 = vld [vmem:[#allocation23_spill] sm:$0xff]  ;;  %v7817_v25 = vld [vmem:[#allocation29_spill] sm:$0xff] }
 0x680   :  { %v1769_v43 = vmul.f32 %v5865_v60, %v1758_v1  ;;  %v7812_v1 = vld [vmem:[#allocation24_spill] sm:$0xff]  ;;  %v7813_v60 = vld [vmem:[#allocation25_spill] sm:$0xff] }
 0x681   :  { %v1768_v50 = vmul.f32 %v1762_v23, %v6710_v58  ;;  %v1767_v17 = vadd.f32 0.5, %v1766_v35  ;;  %v7803_v58 = vld [vmem:[#allocation15_spill] sm:$0xff]  ;;  %v7814_v23 = vld [vmem:[#allocation26_spill] sm:$0xff] }
 0x682   :  { %v7818_v35 = vld [vmem:[#allocation30_spill] sm:$0xff] }
 0x683   :  { %v6838_v32 = vadd.f32 %v1769_v43, %v1768_v50  ;;  %v7815_v43 = vld [vmem:[#allocation27_spill] sm:$0xff]  ;;  %v7816_v50 = vld [vmem:[#allocation28_spill] sm:$0xff] }
 0x685   :  { %5868 = vtanh.f32 %v6838_v32 }
 0x68f   :  { %v5869_v34 = vpop.eup %5868 }
 0x690   :  { %v1772_v16 = vmul.f32 %v5869_v34, %v1767_v17  ;;  %v7819_v17 = vld [vmem:[#allocation31_spill] sm:$0xff]  ;;  %v7820_v34 = vld [vmem:[#allocation32_spill] sm:$0xff] }
 0x692   :  { %1852 = vmatmul.mubr.f32.vlgmr.msra.gmra.mrb[12].mxu0 %v1772_v16  ;;  %1923 = vmatmul.mubr.f32.vlgmr.msra.gmra.mrb[12].mxu1 %v1772_v16  ;;  %v7821_v16 = vld [vmem:[#allocation33_spill] sm:$0xff] }
 0x693   :  { %4844 = vmatpush1.bf16.msra.mxu0 %v6253_v12  ;;  %4876 = vmatpush1.bf16.msra.mxu1 %v7734_v44 }
 0x694   :  { %4846 = vmatprep.subr.bf16.mxu0 %v7801_v40  ;;  %4878 = vmatprep.subr.bf16.mxu1 %v7802_v10  ;;  %v7869_v10 = vld [vmem:[#allocation79_spill] sm:$0xff] }
 0x695   :  { %1993 = vmatprep.mubr.f32.mxu0 %v7628_v7  ;;  %2064 = vmatprep.mubr.f32.mxu1 %v7628_v7 }
 0x697   :  { %4848 = vmatpush1.bf16.msra.mxu0 %v7803_v58  ;;  %4880 = vmatpush1.bf16.msra.mxu1 %v7804_v5  ;;  %v7868_v58 = vld [vmem:[#allocation78_spill] sm:$0xff] }
 0x698   :  { %4850 = vmatprep.subr.bf16.mxu0 %v7805_v31  ;;  %4882 = vmatprep.subr.bf16.mxu1 %v7806_v30 }
 0x69b   :  { %4852 = vmatpush1.bf16.msra.mxu0 %v7807_v13  ;;  %4884 = vmatpush1.bf16.msra.mxu1 %v7808_v49 }
 0x69c   :  { %4854 = vmatprep.subr.bf16.mxu0 %v7809_v14  ;;  %4886 = vmatprep.subr.bf16.mxu1 %v7810_v8 }
 0x69f   :  { %4856 = vmatpush1.bf16.msra.mxu0 %v7811_v47  ;;  %4888 = vmatpush1.bf16.msra.mxu1 %v7812_v1  ;;  %v7822_v47 = vld [vmem:[#allocation34_spill] sm:$0xff]  ;;  %v7823_v1 = vld [vmem:[#allocation35_spill] sm:$0xff] }
 0x6a0   :  { %4858 = vmatprep.subr.bf16.mxu0 %v7813_v60  ;;  %4890 = vmatprep.subr.bf16.mxu1 %v7814_v23  ;;  %v7824_v60 = vld [vmem:[#allocation36_spill] sm:$0xff]  ;;  %v7825_v23 = vld [vmem:[#allocation37_spill] sm:$0xff] }
 0x6a3   :  { %4860 = vmatpush1.bf16.msra.mxu0 %v7815_v43  ;;  %4892 = vmatpush1.bf16.msra.mxu1 %v7816_v50  ;;  %v7826_v43 = vld [vmem:[#allocation38_spill] sm:$0xff]  ;;  %v7827_v50 = vld [vmem:[#allocation39_spill] sm:$0xff] }
 0x6a4   :  { %4862 = vmatprep.subr.bf16.mxu0 %v7817_v25  ;;  %4894 = vmatprep.subr.bf16.mxu1 %v7818_v35  ;;  %v7828_v25 = vld [vmem:[#allocation40_spill] sm:$0xff]  ;;  %v7829_v35 = vld [vmem:[#allocation41_spill] sm:$0xff] }
 0x6a7   :  { %4864 = vmatpush1.bf16.msra.mxu0 %v7819_v17  ;;  %4896 = vmatpush1.bf16.msra.mxu1 %v7820_v34  ;;  %v7830_v17 = vld [vmem:[#allocation42_spill] sm:$0xff] }
 0x6a8   :  { %4866 = vmatprep.subr.bf16.mxu0 %v7821_v16  ;;  %4898 = vmatprep.subr.bf16.mxu1 %v7822_v47  ;;  %v7831_v47 = vld [vmem:[#allocation43_spill] sm:$0xff]  ;;  %v7845_v16 = vld [vmem:[#allocation57_spill] sm:$0xff] }
 0x6ab   :  { %4868 = vmatpush1.bf16.msra.mxu0 %v7823_v1  ;;  %4900 = vmatpush1.bf16.msra.mxu1 %v7824_v60  ;;  %v7832_v1 = vld [vmem:[#allocation44_spill] sm:$0xff]  ;;  %v7833_v60 = vld [vmem:[#allocation45_spill] sm:$0xff] }
 0x6ac   :  { %4870 = vmatprep.subr.bf16.mxu0 %v7825_v23  ;;  %4902 = vmatprep.subr.bf16.mxu1 %v7826_v43  ;;  %v7834_v23 = vld [vmem:[#allocation46_spill] sm:$0xff]  ;;  %v7844_v43 = vld [vmem:[#allocation56_spill] sm:$0xff] }
 0x6af   :  { %4872 = vmatpush1.bf16.msra.mxu0 %v7827_v50  ;;  %4904 = vmatpush1.bf16.msra.mxu1 %v7828_v25  ;;  %v7835_v25 = vld [vmem:[#allocation47_spill] sm:$0xff]  ;;  %v7838_v50 = vld [vmem:[#allocation50_spill] sm:$0xff] }
 0x6b0   :  { %4906 = vmatprep.subr.bf16.mxu0 %v7829_v35  ;;  %4938 = vmatprep.subr.bf16.mxu1 %v7830_v17  ;;  %v7836_v35 = vld [vmem:[#allocation48_spill] sm:$0xff]  ;;  %v7837_v17 = vld [vmem:[#allocation49_spill] sm:$0xff] }
 0x6b2   :  { %1994 = vmatmul.mubr.f32.vlgmr.msra.gmra.mrb[14].mxu0 %v6795_v0  ;;  %2065 = vmatmul.mubr.f32.vlgmr.msra.gmra.mrb[14].mxu1 %v6795_v0  ;;  %v7839_v0 = vld [vmem:[#allocation51_spill] sm:$0xff] }
 0x6b3   :  { %4908 = vmatpush1.bf16.msra.mxu0 %v7831_v47  ;;  %4940 = vmatpush1.bf16.msra.mxu1 %v7832_v1  ;;  %v7840_v47 = vld [vmem:[#allocation52_spill] sm:$0xff]  ;;  %v7841_v1 = vld [vmem:[#allocation53_spill] sm:$0xff] }
 0x6b4   :  { %4910 = vmatprep.subr.bf16.mxu0 %v7833_v60  ;;  %4942 = vmatprep.subr.bf16.mxu1 %v7834_v23  ;;  %v7842_v60 = vld [vmem:[#allocation54_spill] sm:$0xff]  ;;  %v7843_v23 = vld [vmem:[#allocation55_spill] sm:$0xff] }
 0x6b5   :  { %2153 = vmatprep.mubr.f32.mxu0 %v7628_v7  ;;  %2224 = vmatprep.mubr.f32.mxu1 %v7628_v7 }
 0x6b7   :  { %4912 = vmatpush1.bf16.msra.mxu0 %v7835_v25  ;;  %4944 = vmatpush1.bf16.msra.mxu1 %v7836_v35  ;;  %v7846_v25 = vld [vmem:[#allocation58_spill] sm:$0xff]  ;;  %v7847_v35 = vld [vmem:[#allocation59_spill] sm:$0xff] }
 0x6b8   :  { %4914 = vmatprep.subr.bf16.mxu0 %v7837_v17  ;;  %4946 = vmatprep.subr.bf16.mxu1 %v7838_v50  ;;  %v7848_v17 = vld [vmem:[#allocation60_spill] sm:$0xff]  ;;  %v7849_v50 = vld [vmem:[#allocation61_spill] sm:$0xff] }
 0x6bb   :  { %4916 = vmatpush1.bf16.msra.mxu0 %v7839_v0  ;;  %4948 = vmatpush1.bf16.msra.mxu1 %v7840_v47  ;;  %v7850_v0 = vld [vmem:[#allocation62_spill] sm:$0xff]  ;;  %v7851_v47 = vld [vmem:[#allocation63_spill] sm:$0xff] }
 0x6bc   :  { %4918 = vmatprep.subr.bf16.mxu0 %v7841_v1  ;;  %4950 = vmatprep.subr.bf16.mxu1 %v7842_v60  ;;  %v7852_v1 = vld [vmem:[#allocation64_spill] sm:$0xff]  ;;  %v7853_v60 = vld [vmem:[#allocation65_spill] sm:$0xff] }
 0x6bf   :  { %4920 = vmatpush1.bf16.msra.mxu0 %v7843_v23  ;;  %4952 = vmatpush1.bf16.msra.mxu1 %v7844_v43  ;;  %v7854_v23 = vld [vmem:[#allocation66_spill] sm:$0xff]  ;;  %v7855_v43 = vld [vmem:[#allocation67_spill] sm:$0xff] }
 0x6c0   :  { %4922 = vmatprep.subr.bf16.mxu0 %v7845_v16  ;;  %4954 = vmatprep.subr.bf16.mxu1 %v7846_v25  ;;  %v7856_v16 = vld [vmem:[#allocation68_spill] sm:$0xff]  ;;  %v7857_v25 = vld [vmem:[#allocation69_spill] sm:$0xff] }
 0x6c3   :  { %4924 = vmatpush1.bf16.msra.mxu0 %v7847_v35  ;;  %4956 = vmatpush1.bf16.msra.mxu1 %v7848_v17  ;;  %v7858_v35 = vld [vmem:[#allocation70_spill] sm:$0xff]  ;;  %v7859_v17 = vld [vmem:[#allocation71_spill] sm:$0xff] }
 0x6c4   :  { %4926 = vmatprep.subr.bf16.mxu0 %v7849_v50  ;;  %4958 = vmatprep.subr.bf16.mxu1 %v7850_v0  ;;  %v7860_v50 = vld [vmem:[#allocation72_spill] sm:$0xff]  ;;  %v7861_v0 = vld [vmem:[#allocation10_spill] sm:$0xff] }
 0x6c7   :  { %4928 = vmatpush1.bf16.msra.mxu0 %v7851_v47  ;;  %4960 = vmatpush1.bf16.msra.mxu1 %v7852_v1  ;;  %v7862_v47 = vld [vmem:[#allocation11_spill] sm:$0xff]  ;;  %v1777_v1 = vpop.permute.xlu1 %1776 }
 0x6c8   :  { %4930 = vmatprep.subr.bf16.mxu0 %v7853_v60  ;;  %4962 = vmatprep.subr.bf16.mxu1 %v7854_v23  ;;  %v7863_v60 = vld [vmem:[#allocation73_spill] sm:$0xff]  ;;  %v7864_v23 = vld [vmem:[#allocation74_spill] sm:$0xff]  ;;  %v1782_v40 = vmul.f32 %v1777_v1, %v7869_v10 }
 0x6c9   :  { %v1779_v34 = vmul.f32 %v1777_v1, %v7863_v60  ;;  %v1780_v8 = vmul.f32 %v1777_v1, %v7864_v23 }
 0x6cb   :  { %4932 = vmatpush1.bf16.msra.mxu0 %v7855_v43  ;;  %4964 = vmatpush1.bf16.msra.mxu1 %v7856_v16  ;;  %v7865_v43 = vld [vmem:[#allocation75_spill] sm:$0xff]  ;;  %v7866_v16 = vld [vmem:[#allocation76_spill] sm:$0xff] }
 0x6cc   :  { %4934 = vmatprep.subr.bf16.mxu0 %v7857_v25  ;;  %4966 = vmatprep.subr.bf16.mxu1 %v7858_v35  ;;  %v1783_v14 = vadd.f32 %v1779_v34, %v7865_v43  ;;  %v1781_v49 = vmul.f32 %v1777_v1, %v7866_v16  ;;  %v7867_v35 = vld [vmem:[#allocation77_spill] sm:$0xff]  ;;  %v1786_v34 = vadd.f32 %v1782_v40, %v6507_v6 }
 0x6cd   :  { %v1784_v30 = vadd.f32 %v1780_v8, %v7867_v35 }
 0x6cf   :  { %4936 = vmatpush1.bf16.msra.mxu0 %v7859_v17  ;;  %4968 = vmatpush1.bf16.msra.mxu1 %v7860_v50 }
 0x6d0   :  { %4970 = vmatprep.subr.bf16.mxu0 %v7861_v0  ;;  %5002 = vmatprep.subr.bf16.mxu1 %v7862_v47  ;;  %v1785_v47 = vadd.f32 %v1781_v49, %v7868_v58 }
 0x785   :  { %v1995_v25 = vpop.f32.mrb[14].mxu0  ;;  %v2066_v13 = vpop.f32.mrb[14].mxu1 }
 0x786   :  { %v1996_v17 = vadd.f32 %v1995_v25, %v1783_v14  ;;  %v1997_v31 = vpop.f32.mrb[15].mxu0  ;;  %v2068_v50 = vpop.f32.mrb[15].mxu1  ;;  %v2067_v23 = vadd.f32 %v2066_v13, %v1785_v47 }
 0x787   :  { %v1998_v5 = vadd.f32 %v1997_v31, %v1784_v30  ;;  %v2069_v16 = vadd.f32 %v2068_v50, %v1786_v34 }
 0x788   :  { %v2071_v0 = vmul.f32 0.5, %v1996_v17 }
 0x789   :  { %v2075_v60 = vmul.f32 0.5, %v1998_v5  ;;  %v2080_v43 = vmul.f32 0.5, %v2069_v16 }
 0x78a   :  { %5870 = vtanh.f32 %v2071_v0 }
 0x78b   :  { %5872 = vtanh.f32 %v2075_v60 }
 0x78c   :  { %5874 = vtanh.f32 %v2067_v23 }
 0x78d   :  { %5876 = vtanh.f32 %v2080_v43 }
 0x794   :  { %v5871_v44 = vpop.eup %5870 }
 0x795   :  { %v5873_v8 = vpop.eup %5872  ;;  %v2073_v14 = vmul.f32 0.5, %v5871_v44 }
 0x796   :  { %v2077_v25 = vmul.f32 0.5, %v5873_v8  ;;  %v5875_v30 = vpop.eup %5874 }
 0x797   :  { %v2074_v31 = vadd.f32 0.5, %v2073_v14  ;;  %v5877_v13 = vpop.eup %5876 }
 0x798   :  { %v2078_v17 = vadd.f32 0.5, %v2077_v25  ;;  %v2082_v40 = vmul.f32 0.5, %v5877_v13 }
 0x799   :  { %v2085_v49 = vmul.f32 %v5875_v30, %v2074_v31 }
 0x79a   :  { %v2084_v1 = vmul.f32 %v2078_v17, %v6792_v63  ;;  %v2083_v47 = vadd.f32 0.5, %v2082_v40 }
 0x79c   :  { %v6920_v5 = vadd.f32 %v2085_v49, %v2084_v1 }
 0x79e   :  { %5878 = vtanh.f32 %v6920_v5 }
 0x7a8   :  { %v5879_v60 = vpop.eup %5878 }
 0x7a9   :  { %v6923_v23 = vmul.f32 %v5879_v60, %v2083_v47 }
 0x7ab   :  { %2154 = vmatmul.mubr.f32.vlgmr.msra.gmra.mrb[12].mxu0 %v6923_v23  ;;  %2225 = vmatmul.mubr.f32.vlgmr.msra.gmra.mrb[12].mxu1 %v6923_v23 }
 0x7ac   :  { %4972 = vmatpush1.bf16.msra.mxu0 %v6158_v11  ;;  %5004 = vmatpush1.bf16.msra.mxu1 %v6161_v15 }
 0x7ad   :  { %4974 = vmatprep.subr.bf16.mxu0 %v6165_v19  ;;  %5006 = vmatprep.subr.bf16.mxu1 %v6167_v20 }
 0x7ae   :  { %2331 = vmatprep.mubr.f32.mxu0 %v7628_v7  ;;  %2402 = vmatprep.mubr.f32.mxu1 %v7628_v7 }
 0x7b0   :  { %4976 = vmatpush1.bf16.msra.mxu0 %v6170_v24  ;;  %5008 = vmatpush1.bf16.msra.mxu1 %v6174_v28 }
 0x7b1   :  { %4978 = vmatprep.subr.bf16.mxu0 %v6176_v29  ;;  %5010 = vmatprep.subr.bf16.mxu1 %v6178_v33 }
 0x7b4   :  { %4980 = vmatpush1.bf16.msra.mxu0 %v6181_v37  ;;  %5012 = vmatpush1.bf16.msra.mxu1 %v6185_v41 }
 0x7b5   :  { %4982 = vmatprep.subr.bf16.mxu0 %v6187_v42  ;;  %5014 = vmatprep.subr.bf16.mxu1 %v6190_v46 }
 0x7b8   :  { %4984 = vmatpush1.bf16.msra.mxu0 %v6193_v53  ;;  %5016 = vmatpush1.bf16.msra.mxu1 %v6197_v54 }
 0x7b9   :  { %4986 = vmatprep.subr.bf16.mxu0 %v6199_v55  ;;  %5018 = vmatprep.subr.bf16.mxu1 %v6202_v59 }
 0x7bc   :  { %4988 = vmatpush1.bf16.msra.mxu0 %v6205_v2  ;;  %5020 = vmatpush1.bf16.msra.mxu1 %v6209_v3 }
 0x7bd   :  { %4990 = vmatprep.subr.bf16.mxu0 %v6211_v4  ;;  %5022 = vmatprep.subr.bf16.mxu1 %v6214_v9 }
 0x7c0   :  { %4992 = vmatpush1.bf16.msra.mxu0 %v6217_v18  ;;  %5024 = vmatpush1.bf16.msra.mxu1 %v6221_v21 }
 0x7c1   :  { %4994 = vmatprep.subr.bf16.mxu0 %v6223_v22  ;;  %5026 = vmatprep.subr.bf16.mxu1 %v6226_v27 }
 0x7c4   :  { %4996 = vmatpush1.bf16.msra.mxu0 %v6229_v36  ;;  %5028 = vmatpush1.bf16.msra.mxu1 %v6233_v38 }
 0x7c5   :  { %4998 = vmatprep.subr.bf16.mxu0 %v6235_v39  ;;  %5030 = vmatprep.subr.bf16.mxu1 %v6238_v45 }
 0x7c8   :  { %5000 = vmatpush1.bf16.msra.mxu0 %v6241_v52  ;;  %5032 = vmatpush1.bf16.msra.mxu1 %v6245_v56 }
 0x7c9   :  { %5034 = vmatprep.subr.bf16.mxu0 %v6247_v57  ;;  %5066 = vmatprep.subr.bf16.mxu1 %v6250_v62 }
 0x87e   :  { %v2155_v44 = vpop.f32.mrb[12].mxu0  ;;  %v2226_v63 = vpop.f32.mrb[12].mxu1 }
 0x87f   :  { %v5749_v43 = vadd.f32 %v2155_v44, %v6555_v61  ;;  %v2157_v50 = vpop.f32.mrb[13].mxu0  ;;  %v2228_v16 = vpop.f32.mrb[13].mxu1  ;;  %v5751_v14 = vadd.f32 %v2226_v63, %v6562_v26 }
 0x880   :  { %v5750_v0 = vadd.f32 %v2157_v50, %v6558_v51  ;;  %v5752_v25 = vadd.f32 %v2228_v16, %v6567_v48 }
 0x881   :  { %v2235_v34 = vmul.f32 0.5, %v5749_v43 }
 0x882   :  { %v2239_v8 = vmul.f32 0.5, %v5750_v0  ;;  %v2244_v31 = vmul.f32 0.5, %v5752_v25  ;;  %v7872_v25 = vld [vmem:[#allocation14_spill] sm:$0xff] }
 0x883   :  { %5880 = vtanh.f32 %v2235_v34 }
 0x884   :  { %5882 = vtanh.f32 %v2239_v8  ;;  %v7870_v8 = vld [vmem:[#allocation12_spill] sm:$0xff] }
 0x885   :  { %5884 = vtanh.f32 %v5751_v14  ;;  %v7871_v14 = vld [vmem:[#allocation13_spill] sm:$0xff] }
 0x886   :  { %5886 = vtanh.f32 %v2244_v31  ;;  %v7874_v31 = vld [vmem:[#allocation16_spill] sm:$0xff] }
 0x88d   :  { %v5881_v30 = vpop.eup %5880 }
 0x88e   :  { %v5883_v17 = vpop.eup %5882  ;;  %v2237_v49 = vmul.f32 0.5, %v5881_v30  ;;  %v7875_v30 = vld [vmem:[#allocation17_spill] sm:$0xff] }
 0x88f   :  { %v2241_v1 = vmul.f32 0.5, %v5883_v17  ;;  %v5885_v40 = vpop.eup %5884  ;;  %v7876_v17 = vld [vmem:[#allocation18_spill] sm:$0xff] }
 0x890   :  { %v2238_v13 = vadd.f32 0.5, %v2237_v49  ;;  %v5887_v63 = vpop.eup %5886  ;;  %v7877_v49 = vld [vmem:[#allocation19_spill] sm:$0xff] }
 0x891   :  { %v2242_v47 = vadd.f32 0.5, %v2241_v1  ;;  %v2246_v50 = vmul.f32 0.5, %v5887_v63  ;;  %v7878_v1 = vld [vmem:[#allocation20_spill] sm:$0xff]  ;;  %v7884_v63 = vld [vmem:[#allocation26_spill] sm:$0xff] }
 0x892   :  { %v2249_v60 = vmul.f32 %v5885_v40, %v2238_v13  ;;  %v7879_v13 = vld [vmem:[#allocation21_spill] sm:$0xff]  ;;  %v7880_v40 = vld [vmem:[#allocation22_spill] sm:$0xff] }
 0x893   :  { %v2248_v44 = vmul.f32 %v2242_v47, %v6838_v32  ;;  %v2247_v0 = vadd.f32 0.5, %v2246_v50  ;;  %v7873_v32 = vld [vmem:[#allocation15_spill] sm:$0xff] }
 0x894   :  { %v7881_v47 = vld [vmem:[#allocation23_spill] sm:$0xff] }
 0x895   :  { %v6966_v43 = vadd.f32 %v2249_v60, %v2248_v44  ;;  %v7882_v60 = vld [vmem:[#allocation24_spill] sm:$0xff]  ;;  %v7883_v44 = vld [vmem:[#allocation25_spill] sm:$0xff]  ;;  %v7885_v50 = vld [vmem:[#allocation27_spill] sm:$0xff] }
 0x897   :  { %5888 = vtanh.f32 %v6966_v43 }
 0x8a1   :  { %v5889_v16 = vpop.eup %5888 }
 0x8a2   :  { %v2252_v34 = vmul.f32 %v5889_v16, %v2247_v0  ;;  %v7886_v0 = vld [vmem:[#allocation28_spill] sm:$0xff]  ;;  %v7887_v16 = vld [vmem:[#allocation29_spill] sm:$0xff] }
 0x8a4   :  { %2332 = vmatmul.mubr.f32.vlgmr.msra.gmra.mrb[16].mxu0 %v2252_v34  ;;  %2403 = vmatmul.mubr.f32.vlgmr.msra.gmra.mrb[16].mxu1 %v2252_v34  ;;  %v7888_v34 = vld [vmem:[#allocation30_spill] sm:$0xff] }
 0x8a5   :  { %5036 = vmatpush1.bf16.msra.mxu0 %v6253_v12  ;;  %5068 = vmatpush1.bf16.msra.mxu1 %v7870_v8 }
 0x8a6   :  { %5038 = vmatprep.subr.bf16.mxu0 %v7871_v14  ;;  %5070 = vmatprep.subr.bf16.mxu1 %v7872_v25 }
 0x8a7   :  { %2473 = vmatprep.mubr.f32.mxu0 %v7628_v7  ;;  %2544 = vmatprep.mubr.f32.mxu1 %v7628_v7 }
 0x8a9   :  { %5040 = vmatpush1.bf16.msra.mxu0 %v7873_v32  ;;  %5072 = vmatpush1.bf16.msra.mxu1 %v7874_v31 }
 0x8aa   :  { %5042 = vmatprep.subr.bf16.mxu0 %v7875_v30  ;;  %5074 = vmatprep.subr.bf16.mxu1 %v7876_v17 }
 0x8ad   :  { %5044 = vmatpush1.bf16.msra.mxu0 %v7877_v49  ;;  %5076 = vmatpush1.bf16.msra.mxu1 %v7878_v1  ;;  %v7889_v1 = vld [vmem:[#allocation31_spill] sm:$0xff] }
 0x8ae   :  { %5046 = vmatprep.subr.bf16.mxu0 %v7879_v13  ;;  %5078 = vmatprep.subr.bf16.mxu1 %v7880_v40  ;;  %v7890_v13 = vld [vmem:[#allocation32_spill] sm:$0xff]  ;;  %v7891_v40 = vld [vmem:[#allocation33_spill] sm:$0xff] }
 0x8b1   :  { %5048 = vmatpush1.bf16.msra.mxu0 %v7881_v47  ;;  %5080 = vmatpush1.bf16.msra.mxu1 %v7882_v60  ;;  %v7892_v47 = vld [vmem:[#allocation34_spill] sm:$0xff]  ;;  %v7893_v60 = vld [vmem:[#allocation35_spill] sm:$0xff] }
 0x8b2   :  { %5050 = vmatprep.subr.bf16.mxu0 %v7883_v44  ;;  %5082 = vmatprep.subr.bf16.mxu1 %v7884_v63  ;;  %v7894_v44 = vld [vmem:[#allocation36_spill] sm:$0xff]  ;;  %v7895_v63 = vld [vmem:[#allocation37_spill] sm:$0xff] }
 0x8b5   :  { %5052 = vmatpush1.bf16.msra.mxu0 %v7885_v50  ;;  %5084 = vmatpush1.bf16.msra.mxu1 %v7886_v0  ;;  %v7896_v50 = vld [vmem:[#allocation38_spill] sm:$0xff]  ;;  %v7897_v0 = vld [vmem:[#allocation39_spill] sm:$0xff] }
 0x8b6   :  { %5054 = vmatprep.subr.bf16.mxu0 %v7887_v16  ;;  %5086 = vmatprep.subr.bf16.mxu1 %v7888_v34  ;;  %v7898_v16 = vld [vmem:[#allocation40_spill] sm:$0xff]  ;;  %v7899_v34 = vld [vmem:[#allocation41_spill] sm:$0xff] }
 0x8b9   :  { %5056 = vmatpush1.bf16.msra.mxu0 %v7889_v1  ;;  %5088 = vmatpush1.bf16.msra.mxu1 %v7890_v13  ;;  %v7900_v1 = vld [vmem:[#allocation42_spill] sm:$0xff] }
 0x8ba   :  { %5058 = vmatprep.subr.bf16.mxu0 %v7891_v40  ;;  %5090 = vmatprep.subr.bf16.mxu1 %v7892_v47  ;;  %v7901_v47 = vld [vmem:[#allocation43_spill] sm:$0xff]  ;;  %v7915_v40 = vld [vmem:[#allocation57_spill] sm:$0xff] }
 0x8bd   :  { %5060 = vmatpush1.bf16.msra.mxu0 %v7893_v60  ;;  %5092 = vmatpush1.bf16.msra.mxu1 %v7894_v44  ;;  %v7902_v60 = vld [vmem:[#allocation44_spill] sm:$0xff]  ;;  %v7903_v44 = vld [vmem:[#allocation45_spill] sm:$0xff] }
 0x8be   :  { %5062 = vmatprep.subr.bf16.mxu0 %v7895_v63  ;;  %5094 = vmatprep.subr.bf16.mxu1 %v7896_v50  ;;  %v7904_v63 = vld [vmem:[#allocation46_spill] sm:$0xff]  ;;  %v7914_v50 = vld [vmem:[#allocation56_spill] sm:$0xff] }
 0x8c1   :  { %5064 = vmatpush1.bf16.msra.mxu0 %v7897_v0  ;;  %5096 = vmatpush1.bf16.msra.mxu1 %v7898_v16  ;;  %v7905_v16 = vld [vmem:[#allocation47_spill] sm:$0xff]  ;;  %v7908_v0 = vld [vmem:[#allocation50_spill] sm:$0xff] }
 0x8c2   :  { %5098 = vmatprep.subr.bf16.mxu0 %v7899_v34  ;;  %5130 = vmatprep.subr.bf16.mxu1 %v7900_v1  ;;  %v7906_v34 = vld [vmem:[#allocation48_spill] sm:$0xff]  ;;  %v7907_v1 = vld [vmem:[#allocation49_spill] sm:$0xff] }
 0x8c4   :  { %2474 = vmatmul.mubr.f32.vlgmr.msra.gmra.mrb[18].mxu0 %v6923_v23  ;;  %2545 = vmatmul.mubr.f32.vlgmr.msra.gmra.mrb[18].mxu1 %v6923_v23  ;;  %v7909_v23 = vld [vmem:[#allocation51_spill] sm:$0xff] }
 0x8c5   :  { %5100 = vmatpush1.bf16.msra.mxu0 %v7901_v47  ;;  %5132 = vmatpush1.bf16.msra.mxu1 %v7902_v60  ;;  %v7910_v47 = vld [vmem:[#allocation52_spill] sm:$0xff]  ;;  %v7911_v60 = vld [vmem:[#allocation53_spill] sm:$0xff] }
 0x8c6   :  { %5102 = vmatprep.subr.bf16.mxu0 %v7903_v44  ;;  %5134 = vmatprep.subr.bf16.mxu1 %v7904_v63  ;;  %v7912_v44 = vld [vmem:[#allocation54_spill] sm:$0xff]  ;;  %v7913_v63 = vld [vmem:[#allocation55_spill] sm:$0xff] }
 0x8c7   :  { %2633 = vmatprep.mubr.f32.mxu0 %v7628_v7  ;;  %2704 = vmatprep.mubr.f32.mxu1 %v7628_v7 }
 0x8c9   :  { %5104 = vmatpush1.bf16.msra.mxu0 %v7905_v16  ;;  %5136 = vmatpush1.bf16.msra.mxu1 %v7906_v34  ;;  %v7916_v16 = vld [vmem:[#allocation58_spill] sm:$0xff]  ;;  %v7917_v34 = vld [vmem:[#allocation59_spill] sm:$0xff] }
 0x8ca   :  { %5106 = vmatprep.subr.bf16.mxu0 %v7907_v1  ;;  %5138 = vmatprep.subr.bf16.mxu1 %v7908_v0  ;;  %v7918_v1 = vld [vmem:[#allocation60_spill] sm:$0xff]  ;;  %v7919_v0 = vld [vmem:[#allocation61_spill] sm:$0xff] }
 0x8cd   :  { %5108 = vmatpush1.bf16.msra.mxu0 %v7909_v23  ;;  %5140 = vmatpush1.bf16.msra.mxu1 %v7910_v47  ;;  %v7920_v23 = vld [vmem:[#allocation62_spill] sm:$0xff]  ;;  %v7921_v47 = vld [vmem:[#allocation63_spill] sm:$0xff] }
 0x8ce   :  { %5110 = vmatprep.subr.bf16.mxu0 %v7911_v60  ;;  %5142 = vmatprep.subr.bf16.mxu1 %v7912_v44  ;;  %v7922_v60 = vld [vmem:[#allocation64_spill] sm:$0xff]  ;;  %v7923_v44 = vld [vmem:[#allocation65_spill] sm:$0xff] }
 0x8d1   :  { %5112 = vmatpush1.bf16.msra.mxu0 %v7913_v63  ;;  %5144 = vmatpush1.bf16.msra.mxu1 %v7914_v50  ;;  %v7924_v63 = vld [vmem:[#allocation66_spill] sm:$0xff]  ;;  %v7925_v50 = vld [vmem:[#allocation67_spill] sm:$0xff] }
 0x8d2   :  { %5114 = vmatprep.subr.bf16.mxu0 %v7915_v40  ;;  %5146 = vmatprep.subr.bf16.mxu1 %v7916_v16  ;;  %v7926_v40 = vld [vmem:[#allocation68_spill] sm:$0xff]  ;;  %v7927_v16 = vld [vmem:[#allocation69_spill] sm:$0xff] }
 0x8d5   :  { %5116 = vmatpush1.bf16.msra.mxu0 %v7917_v34  ;;  %5148 = vmatpush1.bf16.msra.mxu1 %v7918_v1  ;;  %v7928_v34 = vld [vmem:[#allocation70_spill] sm:$0xff]  ;;  %v7929_v1 = vld [vmem:[#allocation71_spill] sm:$0xff] }
 0x8d6   :  { %5118 = vmatprep.subr.bf16.mxu0 %v7919_v0  ;;  %5150 = vmatprep.subr.bf16.mxu1 %v7920_v23  ;;  %v7930_v0 = vld [vmem:[#allocation72_spill] sm:$0xff]  ;;  %v7931_v23 = vld [vmem:[#allocation10_spill] sm:$0xff] }
 0x8d9   :  { %5120 = vmatpush1.bf16.msra.mxu0 %v7921_v47  ;;  %5152 = vmatpush1.bf16.msra.mxu1 %v7922_v60  ;;  %v7932_v47 = vld [vmem:[#allocation11_spill] sm:$0xff]  ;;  %v2257_v60 = vpop.permute.xlu0 %2256 }
 0x8da   :  { %5122 = vmatprep.subr.bf16.mxu0 %v7923_v44  ;;  %5154 = vmatprep.subr.bf16.mxu1 %v7924_v63  ;;  %v7933_v44 = vld [vmem:[#allocation73_spill] sm:$0xff]  ;;  %v7934_v63 = vld [vmem:[#allocation74_spill] sm:$0xff]  ;;  %v2262_v14 = vmul.f32 %v2257_v60, %v7869_v10 }
 0x8db   :  { %v2259_v13 = vmul.f32 %v2257_v60, %v7933_v44  ;;  %v2260_v49 = vmul.f32 %v2257_v60, %v7934_v63 }
 0x8dd   :  { %5124 = vmatpush1.bf16.msra.mxu0 %v7925_v50  ;;  %5156 = vmatpush1.bf16.msra.mxu1 %v7926_v40  ;;  %v7935_v50 = vld [vmem:[#allocation75_spill] sm:$0xff]  ;;  %v7936_v40 = vld [vmem:[#allocation76_spill] sm:$0xff] }
 0x8de   :  { %5126 = vmatprep.subr.bf16.mxu0 %v7927_v16  ;;  %5158 = vmatprep.subr.bf16.mxu1 %v7928_v34  ;;  %v2263_v17 = vadd.f32 %v2259_v13, %v7935_v50  ;;  %v2261_v30 = vmul.f32 %v2257_v60, %v7936_v40  ;;  %v2264_v34 = vadd.f32 %v2260_v49, %v7867_v35 }
 0x8df   :  { %v2266_v13 = vadd.f32 %v2262_v14, %v6507_v6 }
 0x8e1   :  { %5128 = vmatpush1.bf16.msra.mxu0 %v7929_v1  ;;  %5160 = vmatpush1.bf16.msra.mxu1 %v7930_v0 }
 0x8e2   :  { %5162 = vmatprep.subr.bf16.mxu0 %v7931_v23  ;;  %5194 = vmatprep.subr.bf16.mxu1 %v7932_v47  ;;  %v2265_v47 = vadd.f32 %v2261_v30, %v7868_v58 }
 0x997   :  { %v2475_v16 = vpop.f32.mrb[18].mxu0  ;;  %v2546_v31 = vpop.f32.mrb[18].mxu1 }
 0x998   :  { %v2476_v1 = vadd.f32 %v2475_v16, %v2263_v17  ;;  %v2477_v32 = vpop.f32.mrb[19].mxu0  ;;  %v2548_v0 = vpop.f32.mrb[19].mxu1  ;;  %v2547_v63 = vadd.f32 %v2546_v31, %v2265_v47 }
 0x999   :  { %v2478_v25 = vadd.f32 %v2477_v32, %v2264_v34  ;;  %v2549_v40 = vadd.f32 %v2548_v0, %v2266_v13 }
 0x99a   :  { %v2551_v23 = vmul.f32 0.5, %v2476_v1 }
 0x99b   :  { %v2555_v44 = vmul.f32 0.5, %v2478_v25  ;;  %v2560_v50 = vmul.f32 0.5, %v2549_v40 }
 0x99c   :  { %5890 = vtanh.f32 %v2551_v23 }
 0x99d   :  { %5892 = vtanh.f32 %v2555_v44 }
 0x99e   :  { %5894 = vtanh.f32 %v2547_v63 }
 0x99f   :  { %5896 = vtanh.f32 %v2560_v50 }
 0x9a6   :  { %v5891_v8 = vpop.eup %5890 }
 0x9a7   :  { %v5893_v49 = vpop.eup %5892  ;;  %v2553_v17 = vmul.f32 0.5, %v5891_v8 }
 0x9a8   :  { %v2557_v16 = vmul.f32 0.5, %v5893_v49  ;;  %v5895_v1 = vpop.eup %5894 }
 0x9a9   :  { %v2554_v32 = vadd.f32 0.5, %v2553_v17  ;;  %v5897_v31 = vpop.eup %5896 }
 0x9aa   :  { %v2558_v34 = vadd.f32 0.5, %v2557_v16  ;;  %v2562_v14 = vmul.f32 0.5, %v5897_v31 }
 0x9ab   :  { %v2565_v30 = vmul.f32 %v5895_v1, %v2554_v32 }
 0x9ac   :  { %v2564_v60 = vmul.f32 %v2558_v34, %v6920_v5  ;;  %v2563_v47 = vadd.f32 0.5, %v2562_v14 }
 0x9ae   :  { %v7048_v25 = vadd.f32 %v2565_v30, %v2564_v60 }
 0x9b0   :  { %5898 = vtanh.f32 %v7048_v25 }
 0x9ba   :  { %v5899_v44 = vpop.eup %5898 }
 0x9bb   :  { %v7051_v40 = vmul.f32 %v5899_v44, %v2563_v47 }
 0x9bd   :  { %2634 = vmatmul.mubr.f32.vlgmr.msra.gmra.mrb[16].mxu0 %v7051_v40  ;;  %2705 = vmatmul.mubr.f32.vlgmr.msra.gmra.mrb[16].mxu1 %v7051_v40 }
 0x9be   :  { %5164 = vmatpush1.bf16.msra.mxu0 %v6158_v11  ;;  %5196 = vmatpush1.bf16.msra.mxu1 %v6161_v15 }
 0x9bf   :  { %5166 = vmatprep.subr.bf16.mxu0 %v6165_v19  ;;  %5198 = vmatprep.subr.bf16.mxu1 %v6167_v20 }
 0x9c0   :  { %2811 = vmatprep.mubr.f32.mxu0 %v7628_v7  ;;  %2882 = vmatprep.mubr.f32.mxu1 %v7628_v7 }
 0x9c2   :  { %5168 = vmatpush1.bf16.msra.mxu0 %v6170_v24  ;;  %5200 = vmatpush1.bf16.msra.mxu1 %v6174_v28 }
 0x9c3   :  { %5170 = vmatprep.subr.bf16.mxu0 %v6176_v29  ;;  %5202 = vmatprep.subr.bf16.mxu1 %v6178_v33 }
 0x9c6   :  { %5172 = vmatpush1.bf16.msra.mxu0 %v6181_v37  ;;  %5204 = vmatpush1.bf16.msra.mxu1 %v6185_v41 }
 0x9c7   :  { %5174 = vmatprep.subr.bf16.mxu0 %v6187_v42  ;;  %5206 = vmatprep.subr.bf16.mxu1 %v6190_v46 }
 0x9ca   :  { %5176 = vmatpush1.bf16.msra.mxu0 %v6193_v53  ;;  %5208 = vmatpush1.bf16.msra.mxu1 %v6197_v54 }
 0x9cb   :  { %5178 = vmatprep.subr.bf16.mxu0 %v6199_v55  ;;  %5210 = vmatprep.subr.bf16.mxu1 %v6202_v59 }
 0x9ce   :  { %5180 = vmatpush1.bf16.msra.mxu0 %v6205_v2  ;;  %5212 = vmatpush1.bf16.msra.mxu1 %v6209_v3 }
 0x9cf   :  { %5182 = vmatprep.subr.bf16.mxu0 %v6211_v4  ;;  %5214 = vmatprep.subr.bf16.mxu1 %v6214_v9 }
 0x9d2   :  { %5184 = vmatpush1.bf16.msra.mxu0 %v6217_v18  ;;  %5216 = vmatpush1.bf16.msra.mxu1 %v6221_v21 }
 0x9d3   :  { %5186 = vmatprep.subr.bf16.mxu0 %v6223_v22  ;;  %5218 = vmatprep.subr.bf16.mxu1 %v6226_v27 }
 0x9d6   :  { %5188 = vmatpush1.bf16.msra.mxu0 %v6229_v36  ;;  %5220 = vmatpush1.bf16.msra.mxu1 %v6233_v38 }
 0x9d7   :  { %5190 = vmatprep.subr.bf16.mxu0 %v6235_v39  ;;  %5222 = vmatprep.subr.bf16.mxu1 %v6238_v45 }
 0x9da   :  { %5192 = vmatpush1.bf16.msra.mxu0 %v6241_v52  ;;  %5224 = vmatpush1.bf16.msra.mxu1 %v6245_v56 }
 0x9db   :  { %5226 = vmatprep.subr.bf16.mxu0 %v6247_v57  ;;  %5258 = vmatprep.subr.bf16.mxu1 %v6250_v62 }
 0xa90   :  { %v2635_v5 = vpop.f32.mrb[16].mxu0  ;;  %v2706_v8 = vpop.f32.mrb[16].mxu1 }
 0xa91   :  { %v5753_v63 = vadd.f32 %v2635_v5, %v6555_v61  ;;  %v2637_v50 = vpop.f32.mrb[17].mxu0  ;;  %v2708_v0 = vpop.f32.mrb[17].mxu1  ;;  %v5755_v17 = vadd.f32 %v2706_v8, %v6562_v26 }
 0xa92   :  { %v5754_v23 = vadd.f32 %v2637_v50, %v6558_v51  ;;  %v5756_v16 = vadd.f32 %v2708_v0, %v6567_v48 }
 0xa93   :  { %v2715_v13 = vmul.f32 0.5, %v5753_v63 }
 0xa94   :  { %v2719_v49 = vmul.f32 0.5, %v5754_v23  ;;  %v2724_v32 = vmul.f32 0.5, %v5756_v16  ;;  %v7939_v16 = vld [vmem:[#allocation14_spill] sm:$0xff] }
 0xa95   :  { %5900 = vtanh.f32 %v2715_v13 }
 0xa96   :  { %5902 = vtanh.f32 %v2719_v49  ;;  %v7937_v49 = vld [vmem:[#allocation12_spill] sm:$0xff] }
 0xa97   :  { %5904 = vtanh.f32 %v5755_v17  ;;  %v7938_v17 = vld [vmem:[#allocation13_spill] sm:$0xff] }
 0xa98   :  { %5906 = vtanh.f32 %v2724_v32  ;;  %v7941_v32 = vld [vmem:[#allocation16_spill] sm:$0xff] }
 0xa9f   :  { %v5901_v1 = vpop.eup %5900 }
 0xaa0   :  { %v5903_v34 = vpop.eup %5902  ;;  %v2717_v30 = vmul.f32 0.5, %v5901_v1  ;;  %v7942_v1 = vld [vmem:[#allocation17_spill] sm:$0xff] }
 0xaa1   :  { %v2721_v60 = vmul.f32 0.5, %v5903_v34  ;;  %v5905_v14 = vpop.eup %5904  ;;  %v7943_v34 = vld [vmem:[#allocation18_spill] sm:$0xff] }
 0xaa2   :  { %v2718_v31 = vadd.f32 0.5, %v2717_v30  ;;  %v5907_v8 = vpop.eup %5906  ;;  %v7944_v30 = vld [vmem:[#allocation19_spill] sm:$0xff] }
 0xaa3   :  { %v2722_v47 = vadd.f32 0.5, %v2721_v60  ;;  %v2726_v50 = vmul.f32 0.5, %v5907_v8  ;;  %v7945_v60 = vld [vmem:[#allocation20_spill] sm:$0xff]  ;;  %v7951_v8 = vld [vmem:[#allocation26_spill] sm:$0xff] }
 0xaa4   :  { %v2729_v44 = vmul.f32 %v5905_v14, %v2718_v31  ;;  %v7946_v31 = vld [vmem:[#allocation21_spill] sm:$0xff]  ;;  %v7947_v14 = vld [vmem:[#allocation22_spill] sm:$0xff] }
 0xaa5   :  { %v2728_v5 = vmul.f32 %v2722_v47, %v6966_v43  ;;  %v2727_v23 = vadd.f32 0.5, %v2726_v50  ;;  %v7940_v43 = vld [vmem:[#allocation15_spill] sm:$0xff] }
 0xaa6   :  { %v7948_v47 = vld [vmem:[#allocation23_spill] sm:$0xff] }
 0xaa7   :  { %v7094_v63 = vadd.f32 %v2729_v44, %v2728_v5  ;;  %v7949_v44 = vld [vmem:[#allocation24_spill] sm:$0xff]  ;;  %v7950_v5 = vld [vmem:[#allocation25_spill] sm:$0xff]  ;;  %v7952_v50 = vld [vmem:[#allocation27_spill] sm:$0xff] }
 0xaa9   :  { %5908 = vtanh.f32 %v7094_v63 }
 0xab3   :  { %v5909_v0 = vpop.eup %5908 }
 0xab4   :  { %v2732_v13 = vmul.f32 %v5909_v0, %v2727_v23  ;;  %v7953_v23 = vld [vmem:[#allocation28_spill] sm:$0xff]  ;;  %v7954_v0 = vld [vmem:[#allocation29_spill] sm:$0xff] }
 0xab6   :  { %2812 = vmatmul.mubr.f32.vlgmr.msra.gmra.mrb[20].mxu0 %v2732_v13  ;;  %2883 = vmatmul.mubr.f32.vlgmr.msra.gmra.mrb[20].mxu1 %v2732_v13  ;;  %v7955_v13 = vld [vmem:[#allocation30_spill] sm:$0xff] }
 0xab7   :  { %5228 = vmatpush1.bf16.msra.mxu0 %v6253_v12  ;;  %5260 = vmatpush1.bf16.msra.mxu1 %v7937_v49 }
 0xab8   :  { %5230 = vmatprep.subr.bf16.mxu0 %v7938_v17  ;;  %5262 = vmatprep.subr.bf16.mxu1 %v7939_v16 }
 0xab9   :  { %2953 = vmatprep.mubr.f32.mxu0 %v7628_v7  ;;  %3024 = vmatprep.mubr.f32.mxu1 %v7628_v7 }
 0xabb   :  { %5232 = vmatpush1.bf16.msra.mxu0 %v7940_v43  ;;  %5264 = vmatpush1.bf16.msra.mxu1 %v7941_v32 }
 0xabc   :  { %5234 = vmatprep.subr.bf16.mxu0 %v7942_v1  ;;  %5266 = vmatprep.subr.bf16.mxu1 %v7943_v34 }
 0xabf   :  { %5236 = vmatpush1.bf16.msra.mxu0 %v7944_v30  ;;  %5268 = vmatpush1.bf16.msra.mxu1 %v7945_v60  ;;  %v7956_v60 = vld [vmem:[#allocation31_spill] sm:$0xff] }
 0xac0   :  { %5238 = vmatprep.subr.bf16.mxu0 %v7946_v31  ;;  %5270 = vmatprep.subr.bf16.mxu1 %v7947_v14  ;;  %v7957_v31 = vld [vmem:[#allocation32_spill] sm:$0xff]  ;;  %v7958_v14 = vld [vmem:[#allocation33_spill] sm:$0xff] }
 0xac3   :  { %5240 = vmatpush1.bf16.msra.mxu0 %v7948_v47  ;;  %5272 = vmatpush1.bf16.msra.mxu1 %v7949_v44  ;;  %v7959_v47 = vld [vmem:[#allocation34_spill] sm:$0xff]  ;;  %v7960_v44 = vld [vmem:[#allocation35_spill] sm:$0xff] }
 0xac4   :  { %5242 = vmatprep.subr.bf16.mxu0 %v7950_v5  ;;  %5274 = vmatprep.subr.bf16.mxu1 %v7951_v8  ;;  %v7961_v5 = vld [vmem:[#allocation36_spill] sm:$0xff]  ;;  %v7962_v8 = vld [vmem:[#allocation37_spill] sm:$0xff] }
 0xac7   :  { %5244 = vmatpush1.bf16.msra.mxu0 %v7952_v50  ;;  %5276 = vmatpush1.bf16.msra.mxu1 %v7953_v23  ;;  %v7963_v50 = vld [vmem:[#allocation38_spill] sm:$0xff]  ;;  %v7964_v23 = vld [vmem:[#allocation39_spill] sm:$0xff] }
 0xac8   :  { %5246 = vmatprep.subr.bf16.mxu0 %v7954_v0  ;;  %5278 = vmatprep.subr.bf16.mxu1 %v7955_v13  ;;  %v7965_v0 = vld [vmem:[#allocation40_spill] sm:$0xff]  ;;  %v7966_v13 = vld [vmem:[#allocation41_spill] sm:$0xff] }
 0xacb   :  { %5248 = vmatpush1.bf16.msra.mxu0 %v7956_v60  ;;  %5280 = vmatpush1.bf16.msra.mxu1 %v7957_v31  ;;  %v7967_v60 = vld [vmem:[#allocation42_spill] sm:$0xff] }
 0xacc   :  { %5250 = vmatprep.subr.bf16.mxu0 %v7958_v14  ;;  %5282 = vmatprep.subr.bf16.mxu1 %v7959_v47  ;;  %v7968_v47 = vld [vmem:[#allocation43_spill] sm:$0xff]  ;;  %v7982_v14 = vld [vmem:[#allocation57_spill] sm:$0xff] }
 0xacf   :  { %5252 = vmatpush1.bf16.msra.mxu0 %v7960_v44  ;;  %5284 = vmatpush1.bf16.msra.mxu1 %v7961_v5  ;;  %v7969_v44 = vld [vmem:[#allocation44_spill] sm:$0xff]  ;;  %v7970_v5 = vld [vmem:[#allocation45_spill] sm:$0xff] }
 0xad0   :  { %5254 = vmatprep.subr.bf16.mxu0 %v7962_v8  ;;  %5286 = vmatprep.subr.bf16.mxu1 %v7963_v50  ;;  %v7971_v8 = vld [vmem:[#allocation46_spill] sm:$0xff]  ;;  %v7981_v50 = vld [vmem:[#allocation56_spill] sm:$0xff] }
 0xad3   :  { %5256 = vmatpush1.bf16.msra.mxu0 %v7964_v23  ;;  %5288 = vmatpush1.bf16.msra.mxu1 %v7965_v0  ;;  %v7972_v0 = vld [vmem:[#allocation47_spill] sm:$0xff]  ;;  %v7975_v23 = vld [vmem:[#allocation50_spill] sm:$0xff] }
 0xad4   :  { %5290 = vmatprep.subr.bf16.mxu0 %v7966_v13  ;;  %5322 = vmatprep.subr.bf16.mxu1 %v7967_v60  ;;  %v7973_v13 = vld [vmem:[#allocation48_spill] sm:$0xff]  ;;  %v7974_v60 = vld [vmem:[#allocation49_spill] sm:$0xff] }
 0xad6   :  { %2954 = vmatmul.mubr.f32.vlgmr.msra.gmra.mrb[22].mxu0 %v7051_v40  ;;  %3025 = vmatmul.mubr.f32.vlgmr.msra.gmra.mrb[22].mxu1 %v7051_v40  ;;  %v7976_v40 = vld [vmem:[#allocation51_spill] sm:$0xff] }
 0xad7   :  { %5292 = vmatpush1.bf16.msra.mxu0 %v7968_v47  ;;  %5324 = vmatpush1.bf16.msra.mxu1 %v7969_v44  ;;  %v7977_v47 = vld [vmem:[#allocation52_spill] sm:$0xff]  ;;  %v7978_v44 = vld [vmem:[#allocation53_spill] sm:$0xff] }
 0xad8   :  { %5294 = vmatprep.subr.bf16.mxu0 %v7970_v5  ;;  %5326 = vmatprep.subr.bf16.mxu1 %v7971_v8  ;;  %v7979_v5 = vld [vmem:[#allocation54_spill] sm:$0xff]  ;;  %v7980_v8 = vld [vmem:[#allocation55_spill] sm:$0xff] }
 0xad9   :  { %3113 = vmatprep.mubr.f32.mxu0 %v7628_v7  ;;  %3184 = vmatprep.mubr.f32.mxu1 %v7628_v7 }
 0xadb   :  { %5296 = vmatpush1.bf16.msra.mxu0 %v7972_v0  ;;  %5328 = vmatpush1.bf16.msra.mxu1 %v7973_v13  ;;  %v7983_v0 = vld [vmem:[#allocation58_spill] sm:$0xff]  ;;  %v7984_v13 = vld [vmem:[#allocation59_spill] sm:$0xff] }
 0xadc   :  { %5298 = vmatprep.subr.bf16.mxu0 %v7974_v60  ;;  %5330 = vmatprep.subr.bf16.mxu1 %v7975_v23  ;;  %v7985_v60 = vld [vmem:[#allocation60_spill] sm:$0xff]  ;;  %v7986_v23 = vld [vmem:[#allocation61_spill] sm:$0xff] }
 0xadf   :  { %5300 = vmatpush1.bf16.msra.mxu0 %v7976_v40  ;;  %5332 = vmatpush1.bf16.msra.mxu1 %v7977_v47  ;;  %v7987_v40 = vld [vmem:[#allocation62_spill] sm:$0xff]  ;;  %v7988_v47 = vld [vmem:[#allocation63_spill] sm:$0xff] }
 0xae0   :  { %5302 = vmatprep.subr.bf16.mxu0 %v7978_v44  ;;  %5334 = vmatprep.subr.bf16.mxu1 %v7979_v5  ;;  %v7989_v44 = vld [vmem:[#allocation64_spill] sm:$0xff]  ;;  %v7990_v5 = vld [vmem:[#allocation65_spill] sm:$0xff] }
 0xae3   :  { %5304 = vmatpush1.bf16.msra.mxu0 %v7980_v8  ;;  %5336 = vmatpush1.bf16.msra.mxu1 %v7981_v50  ;;  %v7991_v8 = vld [vmem:[#allocation66_spill] sm:$0xff]  ;;  %v7992_v50 = vld [vmem:[#allocation67_spill] sm:$0xff] }
 0xae4   :  { %5306 = vmatprep.subr.bf16.mxu0 %v7982_v14  ;;  %5338 = vmatprep.subr.bf16.mxu1 %v7983_v0  ;;  %v7993_v14 = vld [vmem:[#allocation68_spill] sm:$0xff]  ;;  %v7994_v0 = vld [vmem:[#allocation69_spill] sm:$0xff] }
 0xae7   :  { %5308 = vmatpush1.bf16.msra.mxu0 %v7984_v13  ;;  %5340 = vmatpush1.bf16.msra.mxu1 %v7985_v60  ;;  %v7995_v13 = vld [vmem:[#allocation70_spill] sm:$0xff]  ;;  %v7996_v60 = vld [vmem:[#allocation71_spill] sm:$0xff] }
 0xae8   :  { %5310 = vmatprep.subr.bf16.mxu0 %v7986_v23  ;;  %5342 = vmatprep.subr.bf16.mxu1 %v7987_v40  ;;  %v7997_v23 = vld [vmem:[#allocation72_spill] sm:$0xff]  ;;  %v7998_v40 = vld [vmem:[#allocation10_spill] sm:$0xff] }
 0xaeb   :  { %5312 = vmatpush1.bf16.msra.mxu0 %v7988_v47  ;;  %5344 = vmatpush1.bf16.msra.mxu1 %v7989_v44  ;;  %v7999_v47 = vld [vmem:[#allocation11_spill] sm:$0xff]  ;;  %v2737_v44 = vpop.permute.xlu1 %2736 }
 0xaec   :  { %5314 = vmatprep.subr.bf16.mxu0 %v7990_v5  ;;  %5346 = vmatprep.subr.bf16.mxu1 %v7991_v8  ;;  %v8000_v5 = vld [vmem:[#allocation73_spill] sm:$0xff]  ;;  %v8001_v8 = vld [vmem:[#allocation74_spill] sm:$0xff]  ;;  %v2742_v17 = vmul.f32 %v2737_v44, %v7869_v10 }
 0xaed   :  { %v2739_v31 = vmul.f32 %v2737_v44, %v8000_v5  ;;  %v2740_v30 = vmul.f32 %v2737_v44, %v8001_v8 }
 0xaef   :  { %5316 = vmatpush1.bf16.msra.mxu0 %v7992_v50  ;;  %5348 = vmatpush1.bf16.msra.mxu1 %v7993_v14  ;;  %v8002_v50 = vld [vmem:[#allocation75_spill] sm:$0xff]  ;;  %v8003_v14 = vld [vmem:[#allocation76_spill] sm:$0xff] }
 0xaf0   :  { %5318 = vmatprep.subr.bf16.mxu0 %v7994_v0  ;;  %5350 = vmatprep.subr.bf16.mxu1 %v7995_v13  ;;  %v2743_v34 = vadd.f32 %v2739_v31, %v8002_v50  ;;  %v2741_v1 = vmul.f32 %v2737_v44, %v8003_v14  ;;  %v2744_v13 = vadd.f32 %v2740_v30, %v7867_v35 }
 0xaf1   :  { %v2746_v31 = vadd.f32 %v2742_v17, %v6507_v6 }
 0xaf3   :  { %5320 = vmatpush1.bf16.msra.mxu0 %v7996_v60  ;;  %5352 = vmatpush1.bf16.msra.mxu1 %v7997_v23 }
 0xaf4   :  { %5354 = vmatprep.subr.bf16.mxu0 %v7998_v40  ;;  %5386 = vmatprep.subr.bf16.mxu1 %v7999_v47  ;;  %v2745_v47 = vadd.f32 %v2741_v1, %v7868_v58 }
 0xba9   :  { %v2955_v0 = vpop.f32.mrb[22].mxu0  ;;  %v3026_v32 = vpop.f32.mrb[22].mxu1 }
 0xbaa   :  { %v2956_v60 = vadd.f32 %v2955_v0, %v2743_v34  ;;  %v2957_v43 = vpop.f32.mrb[23].mxu0  ;;  %v3028_v23 = vpop.f32.mrb[23].mxu1  ;;  %v3027_v8 = vadd.f32 %v3026_v32, %v2745_v47 }
 0xbab   :  { %v2958_v16 = vadd.f32 %v2957_v43, %v2744_v13  ;;  %v3029_v14 = vadd.f32 %v3028_v23, %v2746_v31 }
 0xbac   :  { %v3031_v40 = vmul.f32 0.5, %v2956_v60 }
 0xbad   :  { %v3035_v5 = vmul.f32 0.5, %v2958_v16  ;;  %v3040_v50 = vmul.f32 0.5, %v3029_v14 }
 0xbae   :  { %5910 = vtanh.f32 %v3031_v40 }
 0xbaf   :  { %5912 = vtanh.f32 %v3035_v5 }
 0xbb0   :  { %5914 = vtanh.f32 %v3027_v8 }
 0xbb1   :  { %5916 = vtanh.f32 %v3040_v50 }
 0xbb8   :  { %v5911_v49 = vpop.eup %5910 }
 0xbb9   :  { %v5913_v30 = vpop.eup %5912  ;;  %v3033_v34 = vmul.f32 0.5, %v5911_v49 }
 0xbba   :  { %v3037_v0 = vmul.f32 0.5, %v5913_v30  ;;  %v5915_v60 = vpop.eup %5914 }
 0xbbb   :  { %v3034_v43 = vadd.f32 0.5, %v3033_v34  ;;  %v5917_v32 = vpop.eup %5916 }
 0xbbc   :  { %v3038_v13 = vadd.f32 0.5, %v3037_v0  ;;  %v3042_v17 = vmul.f32 0.5, %v5917_v32 }
 0xbbd   :  { %v3045_v1 = vmul.f32 %v5915_v60, %v3034_v43 }
 0xbbe   :  { %v3044_v44 = vmul.f32 %v3038_v13, %v7048_v25  ;;  %v3043_v47 = vadd.f32 0.5, %v3042_v17 }
 0xbc0   :  { %v7176_v16 = vadd.f32 %v3045_v1, %v3044_v44 }
 0xbc2   :  { %5918 = vtanh.f32 %v7176_v16 }
 0xbcc   :  { %v5919_v5 = vpop.eup %5918 }
 0xbcd   :  { %v7179_v14 = vmul.f32 %v5919_v5, %v3043_v47 }
 0xbcf   :  { %3114 = vmatmul.mubr.f32.vlgmr.msra.gmra.mrb[20].mxu0 %v7179_v14  ;;  %3185 = vmatmul.mubr.f32.vlgmr.msra.gmra.mrb[20].mxu1 %v7179_v14 }
 0xbd0   :  { %5356 = vmatpush1.bf16.msra.mxu0 %v6158_v11  ;;  %5388 = vmatpush1.bf16.msra.mxu1 %v6161_v15 }
 0xbd1   :  { %5358 = vmatprep.subr.bf16.mxu0 %v6165_v19  ;;  %5390 = vmatprep.subr.bf16.mxu1 %v6167_v20 }
 0xbd2   :  { %3291 = vmatprep.mubr.f32.mxu0 %v7628_v7  ;;  %3362 = vmatprep.mubr.f32.mxu1 %v7628_v7 }
 0xbd4   :  { %5360 = vmatpush1.bf16.msra.mxu0 %v6170_v24  ;;  %5392 = vmatpush1.bf16.msra.mxu1 %v6174_v28 }
 0xbd5   :  { %5362 = vmatprep.subr.bf16.mxu0 %v6176_v29  ;;  %5394 = vmatprep.subr.bf16.mxu1 %v6178_v33 }
 0xbd8   :  { %5364 = vmatpush1.bf16.msra.mxu0 %v6181_v37  ;;  %5396 = vmatpush1.bf16.msra.mxu1 %v6185_v41 }
 0xbd9   :  { %5366 = vmatprep.subr.bf16.mxu0 %v6187_v42  ;;  %5398 = vmatprep.subr.bf16.mxu1 %v6190_v46 }
 0xbdc   :  { %5368 = vmatpush1.bf16.msra.mxu0 %v6193_v53  ;;  %5400 = vmatpush1.bf16.msra.mxu1 %v6197_v54 }
 0xbdd   :  { %5370 = vmatprep.subr.bf16.mxu0 %v6199_v55  ;;  %5402 = vmatprep.subr.bf16.mxu1 %v6202_v59 }
 0xbe0   :  { %5372 = vmatpush1.bf16.msra.mxu0 %v6205_v2  ;;  %5404 = vmatpush1.bf16.msra.mxu1 %v6209_v3 }
 0xbe1   :  { %5374 = vmatprep.subr.bf16.mxu0 %v6211_v4  ;;  %5406 = vmatprep.subr.bf16.mxu1 %v6214_v9 }
 0xbe4   :  { %5376 = vmatpush1.bf16.msra.mxu0 %v6217_v18  ;;  %5408 = vmatpush1.bf16.msra.mxu1 %v6221_v21 }
 0xbe5   :  { %5378 = vmatprep.subr.bf16.mxu0 %v6223_v22  ;;  %5410 = vmatprep.subr.bf16.mxu1 %v6226_v27 }
 0xbe8   :  { %5380 = vmatpush1.bf16.msra.mxu0 %v6229_v36  ;;  %5412 = vmatpush1.bf16.msra.mxu1 %v6233_v38 }
 0xbe9   :  { %5382 = vmatprep.subr.bf16.mxu0 %v6235_v39  ;;  %5414 = vmatprep.subr.bf16.mxu1 %v6238_v45 }
 0xbec   :  { %5384 = vmatpush1.bf16.msra.mxu0 %v6241_v52  ;;  %5416 = vmatpush1.bf16.msra.mxu1 %v6245_v56 }
 0xbed   :  { %5418 = vmatprep.subr.bf16.mxu0 %v6247_v57  ;;  %5450 = vmatprep.subr.bf16.mxu1 %v6250_v62 }
 0xca2   :  { %v3115_v25 = vpop.f32.mrb[20].mxu0  ;;  %v3186_v49 = vpop.f32.mrb[20].mxu1 }
 0xca3   :  { %v5757_v8 = vadd.f32 %v3115_v25, %v6555_v61  ;;  %v3117_v50 = vpop.f32.mrb[21].mxu0  ;;  %v3188_v23 = vpop.f32.mrb[21].mxu1  ;;  %v5759_v34 = vadd.f32 %v3186_v49, %v6562_v26 }
 0xca4   :  { %v5758_v40 = vadd.f32 %v3117_v50, %v6558_v51  ;;  %v5760_v0 = vadd.f32 %v3188_v23, %v6567_v48 }
 0xca5   :  { %v3195_v31 = vmul.f32 0.5, %v5757_v8 }
 0xca6   :  { %v3199_v30 = vmul.f32 0.5, %v5758_v40  ;;  %v3204_v43 = vmul.f32 0.5, %v5760_v0  ;;  %v8006_v0 = vld [vmem:[#allocation14_spill] sm:$0xff] }
 0xca7   :  { %5920 = vtanh.f32 %v3195_v31 }
 0xca8   :  { %5922 = vtanh.f32 %v3199_v30  ;;  %v8004_v30 = vld [vmem:[#allocation12_spill] sm:$0xff] }
 0xca9   :  { %5924 = vtanh.f32 %v5759_v34  ;;  %v8005_v34 = vld [vmem:[#allocation13_spill] sm:$0xff] }
 0xcaa   :  { %5926 = vtanh.f32 %v3204_v43  ;;  %v8008_v43 = vld [vmem:[#allocation16_spill] sm:$0xff] }
 0xcb1   :  { %v5921_v60 = vpop.eup %5920 }
 0xcb2   :  { %v5923_v13 = vpop.eup %5922  ;;  %v3197_v1 = vmul.f32 0.5, %v5921_v60  ;;  %v8009_v60 = vld [vmem:[#allocation17_spill] sm:$0xff] }
 0xcb3   :  { %v3201_v44 = vmul.f32 0.5, %v5923_v13  ;;  %v5925_v17 = vpop.eup %5924  ;;  %v8010_v13 = vld [vmem:[#allocation18_spill] sm:$0xff] }
 0xcb4   :  { %v3198_v32 = vadd.f32 0.5, %v3197_v1  ;;  %v5927_v49 = vpop.eup %5926  ;;  %v8011_v1 = vld [vmem:[#allocation19_spill] sm:$0xff] }
 0xcb5   :  { %v3202_v47 = vadd.f32 0.5, %v3201_v44  ;;  %v3206_v50 = vmul.f32 0.5, %v5927_v49  ;;  %v8012_v44 = vld [vmem:[#allocation20_spill] sm:$0xff]  ;;  %v8018_v49 = vld [vmem:[#allocation26_spill] sm:$0xff] }
 0xcb6   :  { %v3209_v5 = vmul.f32 %v5925_v17, %v3198_v32  ;;  %v8013_v32 = vld [vmem:[#allocation21_spill] sm:$0xff]  ;;  %v8014_v17 = vld [vmem:[#allocation22_spill] sm:$0xff] }
 0xcb7   :  { %v3208_v25 = vmul.f32 %v3202_v47, %v7094_v63  ;;  %v3207_v40 = vadd.f32 0.5, %v3206_v50  ;;  %v8007_v63 = vld [vmem:[#allocation15_spill] sm:$0xff] }
 0xcb8   :  { %v8015_v47 = vld [vmem:[#allocation23_spill] sm:$0xff] }
 0xcb9   :  { %v7222_v8 = vadd.f32 %v3209_v5, %v3208_v25  ;;  %v8016_v5 = vld [vmem:[#allocation24_spill] sm:$0xff]  ;;  %v8017_v25 = vld [vmem:[#allocation25_spill] sm:$0xff]  ;;  %v8019_v50 = vld [vmem:[#allocation27_spill] sm:$0xff] }
 0xcbb   :  { %5928 = vtanh.f32 %v7222_v8 }
 0xcc5   :  { %v5929_v23 = vpop.eup %5928 }
 0xcc6   :  { %v3212_v31 = vmul.f32 %v5929_v23, %v3207_v40  ;;  %v8020_v40 = vld [vmem:[#allocation28_spill] sm:$0xff]  ;;  %v8021_v23 = vld [vmem:[#allocation29_spill] sm:$0xff] }
 0xcc8   :  { %3292 = vmatmul.mubr.f32.vlgmr.msra.gmra.mrb[24].mxu0 %v3212_v31  ;;  %3363 = vmatmul.mubr.f32.vlgmr.msra.gmra.mrb[24].mxu1 %v3212_v31  ;;  %v8022_v31 = vld [vmem:[#allocation30_spill] sm:$0xff] }
 0xcc9   :  { %5420 = vmatpush1.bf16.msra.mxu0 %v6253_v12  ;;  %5452 = vmatpush1.bf16.msra.mxu1 %v8004_v30 }
 0xcca   :  { %5422 = vmatprep.subr.bf16.mxu0 %v8005_v34  ;;  %5454 = vmatprep.subr.bf16.mxu1 %v8006_v0 }
 0xccb   :  { %3433 = vmatprep.mubr.f32.mxu0 %v7628_v7  ;;  %3504 = vmatprep.mubr.f32.mxu1 %v7628_v7 }
 0xccd   :  { %5424 = vmatpush1.bf16.msra.mxu0 %v8007_v63  ;;  %5456 = vmatpush1.bf16.msra.mxu1 %v8008_v43 }
 0xcce   :  { %5426 = vmatprep.subr.bf16.mxu0 %v8009_v60  ;;  %5458 = vmatprep.subr.bf16.mxu1 %v8010_v13 }
 0xcd1   :  { %5428 = vmatpush1.bf16.msra.mxu0 %v8011_v1  ;;  %5460 = vmatpush1.bf16.msra.mxu1 %v8012_v44  ;;  %v8023_v44 = vld [vmem:[#allocation31_spill] sm:$0xff] }
 0xcd2   :  { %5430 = vmatprep.subr.bf16.mxu0 %v8013_v32  ;;  %5462 = vmatprep.subr.bf16.mxu1 %v8014_v17  ;;  %v8024_v32 = vld [vmem:[#allocation32_spill] sm:$0xff]  ;;  %v8025_v17 = vld [vmem:[#allocation33_spill] sm:$0xff] }
 0xcd5   :  { %5432 = vmatpush1.bf16.msra.mxu0 %v8015_v47  ;;  %5464 = vmatpush1.bf16.msra.mxu1 %v8016_v5  ;;  %v8026_v47 = vld [vmem:[#allocation34_spill] sm:$0xff]  ;;  %v8027_v5 = vld [vmem:[#allocation35_spill] sm:$0xff] }
 0xcd6   :  { %5434 = vmatprep.subr.bf16.mxu0 %v8017_v25  ;;  %5466 = vmatprep.subr.bf16.mxu1 %v8018_v49  ;;  %v8028_v25 = vld [vmem:[#allocation36_spill] sm:$0xff]  ;;  %v8029_v49 = vld [vmem:[#allocation37_spill] sm:$0xff] }
 0xcd9   :  { %5436 = vmatpush1.bf16.msra.mxu0 %v8019_v50  ;;  %5468 = vmatpush1.bf16.msra.mxu1 %v8020_v40  ;;  %v8030_v50 = vld [vmem:[#allocation38_spill] sm:$0xff]  ;;  %v8031_v40 = vld [vmem:[#allocation39_spill] sm:$0xff] }
 0xcda   :  { %5438 = vmatprep.subr.bf16.mxu0 %v8021_v23  ;;  %5470 = vmatprep.subr.bf16.mxu1 %v8022_v31  ;;  %v8032_v23 = vld [vmem:[#allocation40_spill] sm:$0xff]  ;;  %v8033_v31 = vld [vmem:[#allocation41_spill] sm:$0xff] }
 0xcdd   :  { %5440 = vmatpush1.bf16.msra.mxu0 %v8023_v44  ;;  %5472 = vmatpush1.bf16.msra.mxu1 %v8024_v32  ;;  %v8034_v44 = vld [vmem:[#allocation42_spill] sm:$0xff] }
 0xcde   :  { %5442 = vmatprep.subr.bf16.mxu0 %v8025_v17  ;;  %5474 = vmatprep.subr.bf16.mxu1 %v8026_v47  ;;  %v8035_v47 = vld [vmem:[#allocation43_spill] sm:$0xff]  ;;  %v8049_v17 = vld [vmem:[#allocation57_spill] sm:$0xff] }
 0xce1   :  { %5444 = vmatpush1.bf16.msra.mxu0 %v8027_v5  ;;  %5476 = vmatpush1.bf16.msra.mxu1 %v8028_v25  ;;  %v8036_v5 = vld [vmem:[#allocation44_spill] sm:$0xff]  ;;  %v8037_v25 = vld [vmem:[#allocation45_spill] sm:$0xff] }
 0xce2   :  { %5446 = vmatprep.subr.bf16.mxu0 %v8029_v49  ;;  %5478 = vmatprep.subr.bf16.mxu1 %v8030_v50  ;;  %v8038_v49 = vld [vmem:[#allocation46_spill] sm:$0xff]  ;;  %v8048_v50 = vld [vmem:[#allocation56_spill] sm:$0xff] }
 0xce5   :  { %5448 = vmatpush1.bf16.msra.mxu0 %v8031_v40  ;;  %5480 = vmatpush1.bf16.msra.mxu1 %v8032_v23  ;;  %v8039_v23 = vld [vmem:[#allocation47_spill] sm:$0xff]  ;;  %v8042_v40 = vld [vmem:[#allocation50_spill] sm:$0xff] }
 0xce6   :  { %5482 = vmatprep.subr.bf16.mxu0 %v8033_v31  ;;  %5514 = vmatprep.subr.bf16.mxu1 %v8034_v44  ;;  %v8040_v31 = vld [vmem:[#allocation48_spill] sm:$0xff]  ;;  %v8041_v44 = vld [vmem:[#allocation49_spill] sm:$0xff] }
 0xce8   :  { %3434 = vmatmul.mubr.f32.vlgmr.msra.gmra.mrb[26].mxu0 %v7179_v14  ;;  %3505 = vmatmul.mubr.f32.vlgmr.msra.gmra.mrb[26].mxu1 %v7179_v14  ;;  %v8043_v14 = vld [vmem:[#allocation51_spill] sm:$0xff] }
 0xce9   :  { %5484 = vmatpush1.bf16.msra.mxu0 %v8035_v47  ;;  %5516 = vmatpush1.bf16.msra.mxu1 %v8036_v5  ;;  %v8044_v47 = vld [vmem:[#allocation52_spill] sm:$0xff]  ;;  %v8045_v5 = vld [vmem:[#allocation53_spill] sm:$0xff] }
 0xcea   :  { %5486 = vmatprep.subr.bf16.mxu0 %v8037_v25  ;;  %5518 = vmatprep.subr.bf16.mxu1 %v8038_v49  ;;  %v8046_v25 = vld [vmem:[#allocation54_spill] sm:$0xff]  ;;  %v8047_v49 = vld [vmem:[#allocation55_spill] sm:$0xff] }
 0xceb   :  { %3593 = vmatprep.mubr.f32.mxu0 %v7628_v7  ;;  %3664 = vmatprep.mubr.f32.mxu1 %v7628_v7 }
 0xced   :  { %5488 = vmatpush1.bf16.msra.mxu0 %v8039_v23  ;;  %5520 = vmatpush1.bf16.msra.mxu1 %v8040_v31  ;;  %v8050_v23 = vld [vmem:[#allocation58_spill] sm:$0xff]  ;;  %v8051_v31 = vld [vmem:[#allocation59_spill] sm:$0xff] }
 0xcee   :  { %5490 = vmatprep.subr.bf16.mxu0 %v8041_v44  ;;  %5522 = vmatprep.subr.bf16.mxu1 %v8042_v40  ;;  %v8052_v44 = vld [vmem:[#allocation60_spill] sm:$0xff]  ;;  %v8053_v40 = vld [vmem:[#allocation61_spill] sm:$0xff] }
 0xcf1   :  { %5492 = vmatpush1.bf16.msra.mxu0 %v8043_v14  ;;  %5524 = vmatpush1.bf16.msra.mxu1 %v8044_v47  ;;  %v8054_v14 = vld [vmem:[#allocation62_spill] sm:$0xff]  ;;  %v8055_v47 = vld [vmem:[#allocation63_spill] sm:$0xff] }
 0xcf2   :  { %5494 = vmatprep.subr.bf16.mxu0 %v8045_v5  ;;  %5526 = vmatprep.subr.bf16.mxu1 %v8046_v25  ;;  %v8056_v5 = vld [vmem:[#allocation64_spill] sm:$0xff]  ;;  %v8057_v25 = vld [vmem:[#allocation65_spill] sm:$0xff] }
 0xcf5   :  { %5496 = vmatpush1.bf16.msra.mxu0 %v8047_v49  ;;  %5528 = vmatpush1.bf16.msra.mxu1 %v8048_v50  ;;  %v8058_v49 = vld [vmem:[#allocation66_spill] sm:$0xff]  ;;  %v8059_v50 = vld [vmem:[#allocation67_spill] sm:$0xff] }
 0xcf6   :  { %5498 = vmatprep.subr.bf16.mxu0 %v8049_v17  ;;  %5530 = vmatprep.subr.bf16.mxu1 %v8050_v23  ;;  %v8060_v17 = vld [vmem:[#allocation68_spill] sm:$0xff]  ;;  %v8061_v23 = vld [vmem:[#allocation69_spill] sm:$0xff] }
 0xcf9   :  { %5500 = vmatpush1.bf16.msra.mxu0 %v8051_v31  ;;  %5532 = vmatpush1.bf16.msra.mxu1 %v8052_v44  ;;  %v8062_v31 = vld [vmem:[#allocation70_spill] sm:$0xff]  ;;  %v8063_v44 = vld [vmem:[#allocation71_spill] sm:$0xff] }
 0xcfa   :  { %5502 = vmatprep.subr.bf16.mxu0 %v8053_v40  ;;  %5534 = vmatprep.subr.bf16.mxu1 %v8054_v14  ;;  %v8064_v40 = vld [vmem:[#allocation72_spill] sm:$0xff]  ;;  %v8065_v14 = vld [vmem:[#allocation10_spill] sm:$0xff] }
 0xcfd   :  { %5504 = vmatpush1.bf16.msra.mxu0 %v8055_v47  ;;  %5536 = vmatpush1.bf16.msra.mxu1 %v8056_v5  ;;  %v8066_v47 = vld [vmem:[#allocation11_spill] sm:$0xff]  ;;  %v3217_v5 = vpop.permute.xlu0 %3216 }
 0xcfe   :  { %5506 = vmatprep.subr.bf16.mxu0 %v8057_v25  ;;  %5538 = vmatprep.subr.bf16.mxu1 %v8058_v49  ;;  %v8067_v25 = vld [vmem:[#allocation73_spill] sm:$0xff]  ;;  %v8068_v49 = vld [vmem:[#allocation74_spill] sm:$0xff]  ;;  %v3222_v34 = vmul.f32 %v3217_v5, %v7869_v10 }
 0xcff   :  { %v3219_v32 = vmul.f32 %v3217_v5, %v8067_v25  ;;  %v3220_v1 = vmul.f32 %v3217_v5, %v8068_v49 }
 0xd01   :  { %5508 = vmatpush1.bf16.msra.mxu0 %v8059_v50  ;;  %5540 = vmatpush1.bf16.msra.mxu1 %v8060_v17  ;;  %v8069_v50 = vld [vmem:[#allocation75_spill] sm:$0xff]  ;;  %v8070_v17 = vld [vmem:[#allocation76_spill] sm:$0xff] }
 0xd02   :  { %5510 = vmatprep.subr.bf16.mxu0 %v8061_v23  ;;  %5542 = vmatprep.subr.bf16.mxu1 %v8062_v31  ;;  %v3223_v13 = vadd.f32 %v3219_v32, %v8069_v50  ;;  %v3221_v60 = vmul.f32 %v3217_v5, %v8070_v17  ;;  %v3224_v31 = vadd.f32 %v3220_v1, %v7867_v35 }
 0xd03   :  { %v3226_v32 = vadd.f32 %v3222_v34, %v6507_v6 }
 0xd05   :  { %5512 = vmatpush1.bf16.msra.mxu0 %v8063_v44  ;;  %5544 = vmatpush1.bf16.msra.mxu1 %v8064_v40 }
 0xd06   :  { %5546 = vmatprep.subr.bf16.mxu0 %v8065_v14  ;;  %5578 = vmatprep.subr.bf16.mxu1 %v8066_v47  ;;  %v3225_v47 = vadd.f32 %v3221_v60, %v7868_v58 }
 0xdbb   :  { %v3435_v23 = vpop.f32.mrb[26].mxu0  ;;  %v3506_v43 = vpop.f32.mrb[26].mxu1 }
 0xdbc   :  { %v3436_v44 = vadd.f32 %v3435_v23, %v3223_v13  ;;  %v3437_v63 = vpop.f32.mrb[27].mxu0  ;;  %v3508_v40 = vpop.f32.mrb[27].mxu1  ;;  %v3507_v49 = vadd.f32 %v3506_v43, %v3225_v47  ;;  %v8084_v47 = vld [vmem:[#allocation25_spill] sm:$0xff] }
 0xdbd   :  { %v3438_v0 = vadd.f32 %v3437_v63, %v3224_v31  ;;  %v3509_v50 = vadd.f32 %v3508_v40, %v3226_v32  ;;  %v8082_v40 = vld [vmem:[#allocation23_spill] sm:$0xff]  ;;  %v8085_v32 = vld [vmem:[#allocation26_spill] sm:$0xff] }
 0xdbe   :  { %v3511_v14 = vmul.f32 0.5, %v3436_v44 }
 0xdbf   :  { %v3515_v25 = vmul.f32 0.5, %v3438_v0  ;;  %v3520_v17 = vmul.f32 0.5, %v3509_v50 }
 0xdc0   :  { %5930 = vtanh.f32 %v3511_v14  ;;  %v8083_v14 = vld [vmem:[#allocation24_spill] sm:$0xff] }
 0xdc1   :  { %5932 = vtanh.f32 %v3515_v25 }
 0xdc2   :  { %5934 = vtanh.f32 %v3507_v49 }
 0xdc3   :  { %5936 = vtanh.f32 %v3520_v17  ;;  %v8081_v17 = vld [vmem:[#allocation22_spill] sm:$0xff] }
 0xdca   :  { %v5931_v30 = vpop.eup %5930 }
 0xdcb   :  { %v5933_v1 = vpop.eup %5932  ;;  %v3513_v13 = vmul.f32 0.5, %v5931_v30  ;;  %v8080_v30 = vld [vmem:[#allocation21_spill] sm:$0xff] }
 0xdcc   :  { %v3517_v23 = vmul.f32 0.5, %v5933_v1  ;;  %v5935_v44 = vpop.eup %5934  ;;  %v8086_v1 = vld [vmem:[#allocation27_spill] sm:$0xff] }
 0xdcd   :  { %v3514_v63 = vadd.f32 0.5, %v3513_v13  ;;  %v5937_v43 = vpop.eup %5936  ;;  %v8087_v13 = vld [vmem:[#allocation28_spill] sm:$0xff] }
 0xdce   :  { %v3518_v31 = vadd.f32 0.5, %v3517_v23  ;;  %v3522_v34 = vmul.f32 0.5, %v5937_v43  ;;  %v8088_v23 = vld [vmem:[#allocation29_spill] sm:$0xff]  ;;  %v8094_v43 = vld [vmem:[#allocation35_spill] sm:$0xff] }
 0xdcf   :  { %v3525_v60 = vmul.f32 %v5935_v44, %v3514_v63  ;;  %v8089_v63 = vld [vmem:[#allocation30_spill] sm:$0xff]  ;;  %v8090_v44 = vld [vmem:[#allocation31_spill] sm:$0xff] }
 0xdd0   :  { %v3524_v5 = vmul.f32 %v3518_v31, %v7176_v16  ;;  %v3523_v25 = vadd.f32 0.5, %v3522_v34  ;;  %v8077_v16 = vld [vmem:[#allocation18_spill] sm:$0xff]  ;;  %v8091_v31 = vld [vmem:[#allocation32_spill] sm:$0xff] }
 0xdd1   :  { %v8095_v34 = vld [vmem:[#allocation36_spill] sm:$0xff] }
 0xdd2   :  { %v7304_v0 = vadd.f32 %v3525_v60, %v3524_v5  ;;  %v8092_v60 = vld [vmem:[#allocation33_spill] sm:$0xff]  ;;  %v8093_v5 = vld [vmem:[#allocation34_spill] sm:$0xff] }
 0xdd4   :  { %5938 = vtanh.f32 %v7304_v0 }
 0xdde   :  { %v5939_v49 = vpop.eup %5938 }
 0xddf   :  { %v7307_v50 = vmul.f32 %v5939_v49, %v3523_v25  ;;  %v8096_v25 = vld [vmem:[#allocation37_spill] sm:$0xff]  ;;  %v8097_v49 = vld [vmem:[#allocation38_spill] sm:$0xff] }
 0xde1   :  { %3594 = vmatmul.mubr.f32.vlgmr.msra.gmra.mrb[24].mxu0 %v7307_v50  ;;  %3665 = vmatmul.mubr.f32.vlgmr.msra.gmra.mrb[24].mxu1 %v7307_v50 }
 0xde2   :  { %5548 = vmatpush1.bf16.msra.mxu0 %v6158_v11  ;;  %5580 = vmatpush1.bf16.msra.mxu1 %v6161_v15 }
 0xde3   :  { %5550 = vmatprep.subr.bf16.mxu0 %v6165_v19  ;;  %5582 = vmatprep.subr.bf16.mxu1 %v6167_v20 }
 0xde4   :  { %3771 = vmatprep.mubr.f32.mxu0 %v7628_v7  ;;  %3842 = vmatprep.mubr.f32.mxu1 %v7628_v7 }
 0xde6   :  { %5552 = vmatpush1.bf16.msra.mxu0 %v6170_v24  ;;  %5584 = vmatpush1.bf16.msra.mxu1 %v6174_v28 }
 0xde7   :  { %5554 = vmatprep.subr.bf16.mxu0 %v6176_v29  ;;  %5586 = vmatprep.subr.bf16.mxu1 %v6178_v33 }
 0xdea   :  { %5556 = vmatpush1.bf16.msra.mxu0 %v6181_v37  ;;  %5588 = vmatpush1.bf16.msra.mxu1 %v6185_v41 }
 0xdeb   :  { %5558 = vmatprep.subr.bf16.mxu0 %v6187_v42  ;;  %5590 = vmatprep.subr.bf16.mxu1 %v6190_v46 }
 0xdee   :  { %5560 = vmatpush1.bf16.msra.mxu0 %v6193_v53  ;;  %5592 = vmatpush1.bf16.msra.mxu1 %v6197_v54 }
 0xdef   :  { %5562 = vmatprep.subr.bf16.mxu0 %v6199_v55  ;;  %5594 = vmatprep.subr.bf16.mxu1 %v6202_v59 }
 0xdf2   :  { %5564 = vmatpush1.bf16.msra.mxu0 %v6205_v2  ;;  %5596 = vmatpush1.bf16.msra.mxu1 %v6209_v3 }
 0xdf3   :  { %5566 = vmatprep.subr.bf16.mxu0 %v6211_v4  ;;  %5598 = vmatprep.subr.bf16.mxu1 %v6214_v9 }
 0xdf6   :  { %5568 = vmatpush1.bf16.msra.mxu0 %v6217_v18  ;;  %5600 = vmatpush1.bf16.msra.mxu1 %v6221_v21 }
 0xdf7   :  { %5570 = vmatprep.subr.bf16.mxu0 %v6223_v22  ;;  %5602 = vmatprep.subr.bf16.mxu1 %v6226_v27 }
 0xdfa   :  { %5572 = vmatpush1.bf16.msra.mxu0 %v6229_v36  ;;  %5604 = vmatpush1.bf16.msra.mxu1 %v6233_v38 }
 0xdfb   :  { %5574 = vmatprep.subr.bf16.mxu0 %v6235_v39  ;;  %5606 = vmatprep.subr.bf16.mxu1 %v6238_v45  ;;  %v8071_v39 = vld [vmem:[#allocation12_spill] sm:$0xff]  ;;  %v8072_v45 = vld [vmem:[#allocation13_spill] sm:$0xff] }
 0xdfe   :  { %5576 = vmatpush1.bf16.msra.mxu0 %v6241_v52  ;;  %5608 = vmatpush1.bf16.msra.mxu1 %v6245_v56  ;;  %v8073_v52 = vld [vmem:[#allocation14_spill] sm:$0xff]  ;;  %v8074_v56 = vld [vmem:[#allocation15_spill] sm:$0xff] }
 0xdff   :  { %5610 = vmatprep.subr.bf16.mxu0 %v6247_v57  ;;  %5642 = vmatprep.subr.bf16.mxu1 %v6250_v62  ;;  %v8075_v57 = vld [vmem:[#allocation16_spill] sm:$0xff]  ;;  %v8076_v62 = vld [vmem:[#allocation17_spill] sm:$0xff] }
 0xeb4   :  { %v3595_v11 = vpop.f32.mrb[24].mxu0  ;;  %v3666_v15 = vpop.f32.mrb[24].mxu1 }
 0xeb5   :  { %v5761_v19 = vadd.f32 %v3595_v11, %v6555_v61  ;;  %v3597_v20 = vpop.f32.mrb[25].mxu0  ;;  %v3668_v24 = vpop.f32.mrb[25].mxu1  ;;  %v5763_v37 = vadd.f32 %v3666_v15, %v6562_v26  ;;  %v8098_v11 = vld [vmem:[#allocation39_spill] sm:$0xff]  ;;  %v8099_v15 = vld [vmem:[#allocation40_spill] sm:$0xff] }
 0xeb6   :  { %v5762_v28 = vadd.f32 %v3597_v20, %v6558_v51  ;;  %v5764_v41 = vadd.f32 %v3668_v24, %v6567_v48  ;;  %v8101_v20 = vld [vmem:[#allocation42_spill] sm:$0xff]  ;;  %v8102_v24 = vld [vmem:[#allocation43_spill] sm:$0xff] }
 0xeb7   :  { %v3675_v29 = vmul.f32 0.5, %v5761_v19  ;;  %v8100_v19 = vld [vmem:[#allocation41_spill] sm:$0xff] }
 0xeb8   :  { %v3679_v33 = vmul.f32 0.5, %v5762_v28  ;;  %v3684_v42 = vmul.f32 0.5, %v5764_v41  ;;  %v8103_v28 = vld [vmem:[#allocation44_spill] sm:$0xff] }
 0xeb9   :  { %5940 = vtanh.f32 %v3675_v29  ;;  %v8104_v29 = vld [vmem:[#allocation45_spill] sm:$0xff]  ;;  %v8107_v41 = vld [vmem:[#allocation48_spill] sm:$0xff] }
 0xeba   :  { %5942 = vtanh.f32 %v3679_v33  ;;  %v8105_v33 = vld [vmem:[#allocation46_spill] sm:$0xff] }
 0xebb   :  { %5944 = vtanh.f32 %v5763_v37  ;;  %v8106_v37 = vld [vmem:[#allocation47_spill] sm:$0xff] }
 0xebc   :  { %5946 = vtanh.f32 %v3684_v42  ;;  %v8108_v42 = vld [vmem:[#allocation49_spill] sm:$0xff] }
 0xec3   :  { %v5941_v46 = vpop.eup %5940 }
 0xec4   :  { %v5943_v53 = vpop.eup %5942  ;;  %v3677_v54 = vmul.f32 0.5, %v5941_v46  ;;  %v8109_v46 = vld [vmem:[#allocation50_spill] sm:$0xff] }
 0xec5   :  { %v3681_v55 = vmul.f32 0.5, %v5943_v53  ;;  %v5945_v2 = vpop.eup %5944  ;;  %v8111_v53 = vld [vmem:[#allocation52_spill] sm:$0xff] }
 0xec6   :  { %v3678_v59 = vadd.f32 0.5, %v3677_v54  ;;  %v5947_v21 = vpop.eup %5946  ;;  %v8112_v54 = vld [vmem:[#allocation53_spill] sm:$0xff] }
 0xec7   :  { %v3682_v3 = vadd.f32 0.5, %v3681_v55  ;;  %v3686_v22 = vmul.f32 0.5, %v5947_v21  ;;  %v8113_v55 = vld [vmem:[#allocation54_spill] sm:$0xff]  ;;  %v8120_v21 = vld [vmem:[#allocation61_spill] sm:$0xff] }
 0xec8   :  { %v3689_v4 = vmul.f32 %v5945_v2, %v3678_v59  ;;  %v8114_v59 = vld [vmem:[#allocation55_spill] sm:$0xff]  ;;  %v8115_v2 = vld [vmem:[#allocation56_spill] sm:$0xff] }
 0xec9   :  { %v3688_v9 = vmul.f32 %v3682_v3, %v7222_v8  ;;  %v3687_v27 = vadd.f32 0.5, %v3686_v22  ;;  %v8078_v8 = vld [vmem:[#allocation19_spill] sm:$0xff]  ;;  %v8117_v3 = vld [vmem:[#allocation58_spill] sm:$0xff] }
 0xeca   :  { %v8121_v22 = vld [vmem:[#allocation62_spill] sm:$0xff] }
 0xecb   :  { %v7350_v18 = vadd.f32 %v3689_v4, %v3688_v9  ;;  %v8118_v4 = vld [vmem:[#allocation59_spill] sm:$0xff]  ;;  %v8119_v9 = vld [vmem:[#allocation60_spill] sm:$0xff] }
 0xecd   :  { %5948 = vtanh.f32 %v7350_v18 }
 0xed7   :  { %v5949_v36 = vpop.eup %5948 }
 0xed8   :  { %v3692_v38 = vmul.f32 %v5949_v36, %v3687_v27  ;;  %v8122_v27 = vld [vmem:[#allocation63_spill] sm:$0xff]  ;;  %v8123_v36 = vld [vmem:[#allocation64_spill] sm:$0xff] }
 0xeda   :  { %3772 = vmatmul.mubr.f32.vlgmr.msra.gmra.mrb[28].mxu0 %v3692_v38  ;;  %3843 = vmatmul.mubr.f32.vlgmr.msra.gmra.mrb[28].mxu1 %v3692_v38  ;;  %v8124_v38 = vld [vmem:[#allocation65_spill] sm:$0xff] }
 0xedb   :  { %5612 = vmatpush1.bf16.msra.mxu0 %v6253_v12  ;;  %5644 = vmatpush1.bf16.msra.mxu1 %v8071_v39  ;;  %v8079_v12 = vld [vmem:[#allocation20_spill] sm:$0xff]  ;;  %v8125_v39 = vld [vmem:[#allocation66_spill] sm:$0xff] }
 0xedc   :  { %5614 = vmatprep.subr.bf16.mxu0 %v8072_v45  ;;  %5646 = vmatprep.subr.bf16.mxu1 %v8073_v52  ;;  %v8126_v45 = vld [vmem:[#allocation67_spill] sm:$0xff]  ;;  %v8127_v52 = vld [vmem:[#allocation68_spill] sm:$0xff] }
 0xedd   :  { %3913 = vmatprep.mubr.f32.mxu0 %v7628_v7  ;;  %3984 = vmatprep.mubr.f32.mxu1 %v7628_v7 }
 0xedf   :  { %5616 = vmatpush1.bf16.msra.mxu0 %v8074_v56  ;;  %5648 = vmatpush1.bf16.msra.mxu1 %v8075_v57  ;;  %v8128_v56 = vld [vmem:[#allocation69_spill] sm:$0xff]  ;;  %v8129_v57 = vld [vmem:[#allocation70_spill] sm:$0xff] }
 0xee0   :  { %5618 = vmatprep.subr.bf16.mxu0 %v8076_v62  ;;  %5650 = vmatprep.subr.bf16.mxu1 %v8077_v16  ;;  %v8130_v62 = vld [vmem:[#allocation71_spill] sm:$0xff]  ;;  %v8131_v16 = vld [vmem:[#allocation72_spill] sm:$0xff] }
 0xee3   :  { %5620 = vmatpush1.bf16.msra.mxu0 %v8078_v8  ;;  %5652 = vmatpush1.bf16.msra.mxu1 %v8079_v12  ;;  %v3697_v8 = vpop.permute.xlu1 %3696  ;;  %v8132_v12 = vld [vmem:[#allocation73_spill] sm:$0xff] }
 0xee4   :  { %5622 = vmatprep.subr.bf16.mxu0 %v8080_v30  ;;  %5654 = vmatprep.subr.bf16.mxu1 %v8081_v17  ;;  %v3699_v30 = vmul.f32 %v3697_v8, %v8132_v12  ;;  %v8133_v17 = vld [vmem:[#allocation74_spill] sm:$0xff] }
 0xee7   :  { %5624 = vmatpush1.bf16.msra.mxu0 %v8082_v40  ;;  %5656 = vmatpush1.bf16.msra.mxu1 %v8083_v14  ;;  %v3700_v40 = vmul.f32 %v3697_v8, %v8133_v17  ;;  %v8134_v14 = vld [vmem:[#allocation76_spill] sm:$0xff] }
 0xee8   :  { %5626 = vmatprep.subr.bf16.mxu0 %v8084_v47  ;;  %5658 = vmatprep.subr.bf16.mxu1 %v8085_v32  ;;  %v3701_v47 = vmul.f32 %v3697_v8, %v8134_v14  ;;  %v8135_v32 = vld [vmem:[#allocation75_spill] sm:$0xff] }
 0xeeb   :  { %5628 = vmatpush1.bf16.msra.mxu0 %v8086_v1  ;;  %5660 = vmatpush1.bf16.msra.mxu1 %v8087_v13  ;;  %v3703_v1 = vadd.f32 %v3699_v30, %v8135_v32 }
 0xeec   :  { %5630 = vmatprep.subr.bf16.mxu0 %v8088_v23  ;;  %5662 = vmatprep.subr.bf16.mxu1 %v8089_v63  ;;  %v3704_v63 = vadd.f32 %v3700_v40, %v7867_v35  ;;  %v4200_v40 = vld [vmem:[#allocation2] ss:$0 sm:$0xff] }
 0xeef   :  { %5632 = vmatpush1.bf16.msra.mxu0 %v8090_v44  ;;  %5664 = vmatpush1.bf16.msra.mxu1 %v8091_v31 }
 0xef0   :  { %5634 = vmatprep.subr.bf16.mxu0 %v8092_v60  ;;  %5666 = vmatprep.subr.bf16.mxu1 %v8093_v5 }
 0xef3   :  { %5636 = vmatpush1.bf16.msra.mxu0 %v8094_v43  ;;  %5668 = vmatpush1.bf16.msra.mxu1 %v8095_v34  ;;  %v3702_v43 = vmul.f32 %v3697_v8, %v7869_v10 }
 0xef4   :  { %5638 = vmatprep.subr.bf16.mxu0 %v8096_v25  ;;  %5670 = vmatprep.subr.bf16.mxu1 %v8097_v49  ;;  %v3705_v25 = vadd.f32 %v3701_v47, %v7868_v58 }
 0xef7   :  { %5640 = vmatpush1.bf16.msra.mxu0 %v8098_v11  ;;  %5672 = vmatpush1.bf16.msra.mxu1 %v8099_v15  ;;  %v3706_v15 = vadd.f32 %v3702_v43, %v6507_v6 }
 0xef8   :  { %5674 = vmatprep.subr.bf16.mxu0 %v8100_v19  ;;  %5706 = vmatprep.subr.bf16.mxu1 %v8101_v20 }
 0xefa   :  { %3914 = vmatmul.mubr.f32.vlgmr.msra.gmra.mrb[30].mxu0 %v7307_v50  ;;  %3985 = vmatmul.mubr.f32.vlgmr.msra.gmra.mrb[30].mxu1 %v7307_v50  ;;  %v8110_v50 = vld [vmem:[#allocation51_spill] sm:$0xff] }
 0xefb   :  { %5676 = vmatpush1.bf16.msra.mxu0 %v8102_v24  ;;  %5708 = vmatpush1.bf16.msra.mxu1 %v8103_v28 }
 0xefc   :  { %5678 = vmatprep.subr.bf16.mxu0 %v8104_v29  ;;  %5710 = vmatprep.subr.bf16.mxu1 %v8105_v33 }
 0xefd   :  { %4073 = vmatprep.mubr.f32.mxu0 %v7628_v7  ;;  %4144 = vmatprep.mubr.f32.mxu1 %v7628_v7  ;;  %v8116_v7 = vld [vmem:[#allocation57_spill] sm:$0xff] }
 0xeff   :  { %5680 = vmatpush1.bf16.msra.mxu0 %v8106_v37  ;;  %5712 = vmatpush1.bf16.msra.mxu1 %v8107_v41 }
 0xf00   :  { %5682 = vmatprep.subr.bf16.mxu0 %v8108_v42  ;;  %5714 = vmatprep.subr.bf16.mxu1 %v8109_v46 }
 0xf03   :  { %5684 = vmatpush1.bf16.msra.mxu0 %v8110_v50  ;;  %5716 = vmatpush1.bf16.msra.mxu1 %v8111_v53 }
 0xf04   :  { %5686 = vmatprep.subr.bf16.mxu0 %v8112_v54  ;;  %5718 = vmatprep.subr.bf16.mxu1 %v8113_v55 }
 0xf07   :  { %5688 = vmatpush1.bf16.msra.mxu0 %v8114_v59  ;;  %5720 = vmatpush1.bf16.msra.mxu1 %v8115_v2 }
 0xf08   :  { %5690 = vmatprep.subr.bf16.mxu0 %v8116_v7  ;;  %5722 = vmatprep.subr.bf16.mxu1 %v8117_v3 }
 0xf0b   :  { %5692 = vmatpush1.bf16.msra.mxu0 %v8118_v4  ;;  %5724 = vmatpush1.bf16.msra.mxu1 %v8119_v9 }
 0xf0c   :  { %5694 = vmatprep.subr.bf16.mxu0 %v8120_v21  ;;  %5726 = vmatprep.subr.bf16.mxu1 %v8121_v22 }
 0xf0f   :  { %5696 = vmatpush1.bf16.msra.mxu0 %v8122_v27  ;;  %5728 = vmatpush1.bf16.msra.mxu1 %v8123_v36 }
 0xf10   :  { %5698 = vmatprep.subr.bf16.mxu0 %v8124_v38  ;;  %5730 = vmatprep.subr.bf16.mxu1 %v8125_v39 }
 0xf13   :  { %5700 = vmatpush1.bf16.msra.mxu0 %v8126_v45  ;;  %5732 = vmatpush1.bf16.msra.mxu1 %v8127_v52 }
 0xf14   :  { %5702 = vmatprep.subr.bf16.mxu0 %v8128_v56  ;;  %5734 = vmatprep.subr.bf16.mxu1 %v8129_v57 }
 0xf17   :  { %5704 = vmatpush1.bf16.msra.mxu0 %v8130_v62  ;;  %5736 = vmatpush1.bf16.msra.mxu1 %v8131_v16 }
 0xfcd   :  { %v3915_v13 = vpop.f32.mrb[30].mxu0  ;;  %v3986_v23 = vpop.f32.mrb[30].mxu1 }
 0xfce   :  { %v3916_v44 = vadd.f32 %v3915_v13, %v3703_v1  ;;  %v3917_v31 = vpop.f32.mrb[31].mxu0  ;;  %v3988_v60 = vpop.f32.mrb[31].mxu1  ;;  %v3987_v11 = vadd.f32 %v3986_v23, %v3705_v25 }
 0xfcf   :  { %v3918_v5 = vadd.f32 %v3917_v31, %v3704_v63  ;;  %v3989_v19 = vadd.f32 %v3988_v60, %v3706_v15 }
 0xfd0   :  { %v3991_v34 = vmul.f32 0.5, %v3916_v44 }
 0xfd1   :  { %v3995_v49 = vmul.f32 0.5, %v3918_v5  ;;  %v4000_v20 = vmul.f32 0.5, %v3989_v19 }
 0xfd2   :  { %5950 = vtanh.f32 %v3991_v34 }
 0xfd3   :  { %5952 = vtanh.f32 %v3995_v49 }
 0xfd4   :  { %5954 = vtanh.f32 %v3987_v11 }
 0xfd5   :  { %5956 = vtanh.f32 %v4000_v20 }
 0xfdc   :  { %v5951_v24 = vpop.eup %5950 }
 0xfdd   :  { %v5953_v35 = vpop.eup %5952  ;;  %v3993_v28 = vmul.f32 0.5, %v5951_v24 }
 0xfde   :  { %v3997_v29 = vmul.f32 0.5, %v5953_v35  ;;  %v5955_v37 = vpop.eup %5954 }
 0xfdf   :  { %v3994_v33 = vadd.f32 0.5, %v3993_v28  ;;  %v5957_v46 = vpop.eup %5956 }
 0xfe0   :  { %v3998_v10 = vadd.f32 0.5, %v3997_v29  ;;  %v4002_v50 = vmul.f32 0.5, %v5957_v46 }
 0xfe1   :  { %v4005_v41 = vmul.f32 %v5955_v37, %v3994_v33 }
 0xfe2   :  { %v4004_v58 = vmul.f32 %v3998_v10, %v7304_v0  ;;  %v4003_v53 = vadd.f32 0.5, %v4002_v50 }
 0xfe4   :  { %v4006_v42 = vadd.f32 %v4005_v41, %v4004_v58 }
 0xfe6   :  { %5958 = vtanh.f32 %v4006_v42 }
 0xff0   :  { %v5959_v6 = vpop.eup %5958 }
 0xff1   :  { %v4008_v54 = vmul.f32 %v5959_v6, %v4003_v53 }
 0xff3   :  { %4074 = vmatmul.mubr.f32.vlgmr.msra.gmra.mrb[28].mxu0 %v4008_v54  ;;  %4145 = vmatmul.mubr.f32.vlgmr.msra.gmra.mrb[28].mxu1 %v4008_v54 }
0x10c6   :  { %v4075_v55 = vpop.f32.mrb[28].mxu0  ;;  %v4146_v59 = vpop.f32.mrb[28].mxu1 }
0x10c7   :  { %v5765_v2 = vadd.f32 %v4075_v55, %v6555_v61  ;;  %v4077_v7 = vpop.f32.mrb[29].mxu0  ;;  %v4148_v3 = vpop.f32.mrb[29].mxu1  ;;  %v5767_v0 = vadd.f32 %v4146_v59, %v6562_v26 }
0x10c8   :  { %v5766_v4 = vadd.f32 %v4077_v7, %v6558_v51  ;;  %v5768_v22 = vadd.f32 %v4148_v3, %v6567_v48  ;;  %v4199_v48 = vld [vmem:[%s7448_s7] ss:$0 sm:$0xff] }
0x10c9   :  { %v4155_v9 = vmul.f32 0.5, %v5765_v2 }
0x10ca   :  { %v4159_v21 = vmul.f32 0.5, %v5766_v4  ;;  %v4164_v27 = vmul.f32 0.5, %v5768_v22 }
0x10cb   :  { %5960 = vtanh.f32 %v4155_v9 }
0x10cc   :  { %5962 = vtanh.f32 %v4159_v21 }
0x10cd   :  { %5964 = vtanh.f32 %v5767_v0 }
0x10ce   :  { %5966 = vtanh.f32 %v4164_v27 }
0x10d5   :  { %v5961_v36 = vpop.eup %5960 }
0x10d6   :  { %v5963_v38 = vpop.eup %5962  ;;  %v4157_v39 = vmul.f32 0.5, %v5961_v36 }
0x10d7   :  { %v4161_v45 = vmul.f32 0.5, %v5963_v38  ;;  %v5965_v52 = vpop.eup %5964 }
0x10d8   :  { %v4158_v61 = vadd.f32 0.5, %v4157_v39  ;;  %v5967_v16 = vpop.eup %5966 }
0x10d9   :  { %v4162_v56 = vadd.f32 0.5, %v4161_v45  ;;  %v4166_v26 = vmul.f32 0.5, %v5967_v16 }
0x10da   :  { %v4169_v57 = vmul.f32 %v5965_v52, %v4158_v61 }
0x10db   :  { %v4168_v51 = vmul.f32 %v4162_v56, %v7350_v18  ;;  %v4167_v8 = vadd.f32 0.5, %v4166_v26 }
0x10dd   :  { %v4170_v62 = vadd.f32 %v4169_v57, %v4168_v51 }
0x10df   :  { %5968 = vtanh.f32 %v4170_v62 }
0x10e9   :  { %v5969_v12 = vpop.eup %5968 }
0x10ea   :  { %v4172_v30 = vmul.f32 %v5969_v12, %v4167_v8 }
0x10ec   :  { %v4180_v17 = vmul.f32 %v4199_v48, %v4172_v30 }
0x10ee   :  { %4181 = vadd.xlane.f32.xlu0 %v4180_v17 }
0x117b   :  { %v4182_v14 = vpop.xlane.xlu0 %4181 }
0x117c   :  { %v4190_v47 = vadd.f32 %v4200_v40, %v4182_v14 }
0x117e   :  { %4192 = vst.msk [vmem:[%s7450_s9] sm:$0xff] %vm4191_vm0, %v4190_v47 }
0x117f   :  { %4197 = vsyncpa [#allocation4], 1 }
0x1180   :  { %4198 = vsyncpa [#allocation6], 1 }

</bundles_post_ra>
